<compile_context>
chip_gen: v6e
topology: v6e:2x2x1
jax: 0.10.0
libtpu: 0.0.40
codegen_flags: <defaults>
</compile_context>

<pallas_src>
import jax
import jax.numpy as jnp
from jax.experimental import pallas as pl
from jax.experimental.pallas import tpu as pltpu

LN_EPS = 1e-12                 # module default layer_norm_eps=1e-12
GELU_TANH_APPROX = True        # tanh GELU -> EUP slot (review); False = exact erf
EXACT_SOFTMAX_DIV = False      # True: exact divide instead of approx reciprocal


def _layernorm(x, g, b):
    mu = jnp.mean(x, axis=-1, keepdims=True)
    var = jnp.mean((x - mu) ** 2, axis=-1, keepdims=True)
    return (x - mu) * jax.lax.rsqrt(var + LN_EPS) * g + b


def _block_kernel(omg_ref, h_ref, base_ref,
                  ln1_g, ln1_b, w_q, b_q, w_kv, b_kv, w_o, b_o,
                  lnb_g, lnb_b, w_b, b_b,
                  ln2_g, ln2_b, w1, b1, w2, b2,
                  o_ref,
                  k_cache, v_cache):
    H, S, dh = k_cache.shape
    E = h_ref.shape[2]
    tS = base_ref.shape[1]
    s_idx = pl.program_id(1)
    f32, bf16 = jnp.float32, jnp.bfloat16

    # ---- K/V for the whole sequence: filled once per batch element ---------
    # Correctness relies on the seq-tile grid axis being the innermost axis and
    # marked "arbitrary" (sequential per core): s_idx == 0 always runs before
    # the other seq tiles of the same batch element, so the VMEM caches are
    # valid when read below.  Do NOT mark this axis "parallel".
    @pl.when(s_idx == 0)
    def _():
        # Chunked fill keeps the f32 (chunk, 2E) matmul intermediate small
        # instead of materializing an (S, 2E) f32 block at once.
        n_tiles = S // tS
        n_chunks = 1
        for d in range(1, min(n_tiles, 8) + 1):      # largest divisor <= 8
            if n_tiles % d == 0:
                n_chunks = d
        tC = S // n_chunks
        for c in range(n_chunks):                    # static unroll (<= 8)
            lo = c * tC
            xc = _layernorm(h_ref[0, lo:lo + tC, :].astype(f32),
                            ln1_g[...], ln1_b[...]).astype(bf16)           # (tC, E)
            kvc = (jnp.dot(xc, w_kv[...], preferred_element_type=f32)
                   + b_kv[...]).astype(bf16)                               # (tC, 2E)
            # Head split via static lane slices (no (H, S, E) broadcast).
            k_cache[:, lo:lo + tC, :] = jnp.stack(
                [kvc[:, h * dh:(h + 1) * dh] for h in range(H)], axis=0)
            v_cache[:, lo:lo + tC, :] = jnp.stack(
                [kvc[:, E + h * dh:E + (h + 1) * dh] for h in range(H)], axis=0)

    # ---- gated multi-head self-attention on this seq tile -------------------
    # TODO(synk): OptimizedGatedMultiHeadAttention source not provided;
    # implemented as standard MHA with per-head multiplicative gates (init 1.0,
    # folded into the rows of w_o by prepare_params).
    start = s_idx * tS
    if tS % 8 == 0:
        start = pl.multiple_of(start, 8)
    x = h_ref[0, pl.ds(start, tS), :].astype(f32)                          # (tS, E)

    xn = _layernorm(x, ln1_g[...], ln1_b[...]).astype(bf16)
    # Fused lane-dense Q projection (1/sqrt(dh) folded into w_q / b_q).
    q2 = (jnp.dot(xn, w_q[...], preferred_element_type=f32)
          + b_q[...]).astype(bf16)                                         # (tS, E)
    q = jnp.stack([q2[:, h * dh:(h + 1) * dh] for h in range(H)], axis=0)  # (H, tS, dh)

    # TODO(synk): for very long S, stream K/V in chunks with an online softmax
    # so the live scores block is (H, tS, tK); likewise evaluate the (H, dh, S)
    # transposed K-cache layout once the fill-time transpose is verified.
    scores = jnp.einsum('hqd,hkd->hqk', q, k_cache[...],
                        preferred_element_type=f32)                        # (H, tS, S)
    scores = scores - jnp.max(scores, axis=-1, keepdims=True)
    p = jnp.exp(scores)
    denom = jnp.sum(p, axis=-1, keepdims=True)
    if EXACT_SOFTMAX_DIV:
        p = p / denom
    else:
        p = p * pl.reciprocal(denom, approx=True)                          # EUP slot
    ctx = jnp.einsum('hqk,hkd->hqd', p.astype(bf16), v_cache[...],
                     preferred_element_type=f32).astype(bf16)              # (H, tS, dh)

    # Heads contracted inside one lane-dense (tS, E) @ (E, E) output projection
    # (per-head gates already folded into w_o rows) -- no (H, tS, E) partials.
    ctx_flat = jnp.concatenate([ctx[h] for h in range(H)], axis=-1)        # (tS, E)
    attn = jnp.dot(ctx_flat, w_o[...], preferred_element_type=f32) + b_o[...]

    hidden = x + attn

    # ---- baseline integration (sigmoid(gate) folded into w_b / b_b) ---------
    ab = _layernorm(base_ref[0].astype(f32), lnb_g[...], lnb_b[...]).astype(bf16)
    ab = jnp.dot(ab, w_b[...], preferred_element_type=f32) + b_b[...]
    hidden = hidden * omg_ref[0] + ab          # omg = 1 - sigmoid(baseline_gate)
    # use_skip_connection=False / encoder_states=None -> skip_fuse branch unused.

    # ---- pre-LN feed-forward -------------------------------------------------
    res = hidden
    hn = _layernorm(hidden, ln2_g[...], ln2_b[...]).astype(bf16)
    ff = jnp.dot(hn, w1[...], preferred_element_type=f32) + b1[...]
    ff = jax.nn.gelu(ff, approximate=GELU_TANH_APPROX)
    ff = jnp.dot(ff.astype(bf16), w2[...], preferred_element_type=f32) + b2[...]

    o_ref[0] = (res + ff).astype(o_ref.dtype)


def _vmem_budget_bytes():
    """Per-generation VMEM budget with headroom (v7x: 64 MiB, v5e/v6e: 128 MiB)."""
    cap = 128 * 1024 * 1024
    try:
        cap = int(getattr(pltpu.get_tpu_info(), "vmem_capacity_bytes", cap)) or cap
    except Exception:
        pass
    return int(cap * 0.80)        # ~51 MiB on v7x, ~102 MiB on v5e/v6e


def _pick_seq_tile(S, E, H, Fd, budget_bytes):
    """Largest seq tile whose estimated VMEM footprint fits the budget."""
    dh = E // H
    fixed = (5 * E * E + 2 * E * Fd) * 2       # bf16 weights (single-buffered)
    fixed += 2 * H * S * dh * 2                # K/V VMEM caches (bf16)
    fixed += S * E * 2                         # full-seq hidden block (bf16, Buffered(1))
    candidates = [S] + [t for t in (512, 256, 128, 64, 32, 16, 8)
                        if t < S and S % t == 0]
    for t in candidates:
        live = H * t * S * (4 + 2)             # scores f32 + probs bf16
        live += 4 * t * E * 2 * 2              # baseline/out blocks (x2 buffers) + q/ctx
        live += t * Fd * (4 + 2)               # FFN hidden f32 + bf16 copy
        live += 8 * t * E * 4                  # residual-stream f32 temporaries / slack
        if fixed + live <= budget_bytes:
            return t
    return candidates[-1]


def prepare_params(params, num_heads):
    """One-time (init-time) weight folding: softmax scale into Wq/bq, per-head
    gates into Wo rows, sigmoid(baseline_gate) into the adapter, Wk|Wv fused,
    and all MXU operands cast to bf16.  Do NOT call this per forward pass."""
    f32, bf16 = jnp.float32, jnp.bfloat16
    E = params["wq"].shape[0]
    H = int(num_heads)
    dh = E // H
    scale = 1.0 / (dh ** 0.5)
    gv = jax.nn.sigmoid(params["bgate"].astype(f32)).reshape(())
    gate_rows = jnp.repeat(params["head_gate"].astype(f32).reshape(H), dh)[:, None]
    return {
        "num_heads": H,
        "one_minus_gate": (1.0 - gv).reshape(1).astype(f32),
        "ln1_g": params["ln1_g"].astype(f32), "ln1_b": params["ln1_b"].astype(f32),
        "w_q": (params["wq"] * scale).astype(bf16),
        "b_q": (params["bq"] * scale).astype(f32),
        "w_kv": jnp.concatenate([params["wk"], params["wv"]], axis=1).astype(bf16),
        "b_kv": jnp.concatenate([params["bk"], params["bv"]], axis=1).astype(f32),
        "w_o": (params["wo"] * gate_rows).astype(bf16),
        "b_o": params["bo"].astype(f32),
        "lnb_g": params["lnb_g"].astype(f32), "lnb_b": params["lnb_b"].astype(f32),
        "w_b": (params["wb"] * gv).astype(bf16),
        "b_b": (params["bb"] * gv).astype(f32),
        "ln2_g": params["ln2_g"].astype(f32), "ln2_b": params["ln2_b"].astype(f32),
        "w1": params["w1"].astype(bf16), "b1": params["b1"].astype(f32),
        "w2": params["w2"].astype(bf16), "b2": params["b2"].astype(f32),
    }


def baseline_integrated_block(hidden, baseline, prep, *, seq_tile=None):
    """Forward pass of BaselineIntegratedBlock.  Returns bf16 activations."""
    B, S, E = hidden.shape
    H = prep["num_heads"]
    dh = E // H
    Fd = prep["w1"].shape[1]
    bf16 = jnp.bfloat16

    budget = _vmem_budget_bytes()
    if seq_tile is not None and S % seq_tile == 0 and (seq_tile == S or seq_tile % 8 == 0):
        tS = seq_tile
    else:
        tS = _pick_seq_tile(S, E, H, Fd, budget)
    nS = S // tS

    # bf16 at the HBM boundary halves activation traffic / VMEM (review); in a
    # real pipeline the surrounding layers would already produce bf16.
    hidden_bf = hidden.astype(bf16)
    baseline_bf = baseline.astype(bf16)

    args = (prep["one_minus_gate"], hidden_bf, baseline_bf,
            prep["ln1_g"], prep["ln1_b"],
            prep["w_q"], prep["b_q"], prep["w_kv"], prep["b_kv"],
            prep["w_o"], prep["b_o"],
            prep["lnb_g"], prep["lnb_b"], prep["w_b"], prep["b_b"],
            prep["ln2_g"], prep["ln2_b"],
            prep["w1"], prep["b1"], prep["w2"], prep["b2"])

    def call(single_buffer_consts):
        kw = {"pipeline_mode": pl.Buffered(1)} if single_buffer_consts else {}

        def const_spec(shape):
            return pl.BlockSpec(shape, lambda *_: (0,) * len(shape), **kw)

        in_specs = [
            # 1 - sigmoid(baseline_gate): scalar in SMEM.
            pl.BlockSpec((1,), lambda b, s: (0,),
                         memory_space=pltpu.MemorySpace.SMEM),
            # hidden: full sequence per batch element (needed for the K/V fill);
            # single-buffered since the block only changes once per batch.
            pl.BlockSpec((1, S, E), lambda b, s: (b, 0, 0), **kw),
            # baseline: one seq tile.
            pl.BlockSpec((1, tS, E), lambda b, s: (b, s, 0)),
            const_spec((1, E)), const_spec((1, E)),            # ln1 gamma/beta
            const_spec((E, E)), const_spec((1, E)),            # Wq (scaled), bq
            const_spec((E, 2 * E)), const_spec((1, 2 * E)),    # Wk|Wv, bk|bv
            const_spec((E, E)), const_spec((1, E)),            # Wo (gated rows), bo
            const_spec((1, E)), const_spec((1, E)),            # ln_baseline gamma/beta
            const_spec((E, E)), const_spec((1, E)),            # baseline adapter (x gv)
            const_spec((1, E)), const_spec((1, E)),            # ln2 gamma/beta
            const_spec((E, Fd)), const_spec((1, Fd)),          # ffn W1, b1
            const_spec((Fd, E)), const_spec((1, E)),           # ffn W2, b2
        ]

        return pl.pallas_call(
            _block_kernel,
            out_shape=jax.ShapeDtypeStruct((B, S, E), bf16),
            grid=(B, nS),
            in_specs=in_specs,
            out_specs=pl.BlockSpec((1, tS, E), lambda b, s: (b, s, 0)),
            scratch_shapes=[pltpu.VMEM((H, S, dh), bf16),      # K cache
                            pltpu.VMEM((H, S, dh), bf16)],     # V cache
            compiler_params=pltpu.CompilerParams(
                # Seq axis must stay "arbitrary": the K/V caches are filled at
                # s_idx == 0 and reused by later seq tiles of the same batch.
                # TODO(synk): split the K/V fill into a separate leading
                # pallas_call so seq tiles can shard across v7x's 2 TensorCores.
                dimension_semantics=("parallel", "arbitrary"),
                vmem_limit_bytes=budget),
        )(*args)

    try:
        return call(True)
    except Exception:
        # TODO(synk): drop this fallback once pl.Buffered(1) (single-buffered
        # constant operands) is confirmed on all deployed jax versions.
        return call(False)


def _reference(hidden, baseline, params, num_heads):
    """Pure-JAX f32 reference of the same forward pass (correctness check)."""
    B, S, E = hidden.shape
    dh = E // num_heads
    outs = []
    for b in range(B):
        x = hidden[b]
        base = baseline[b]
        xn = _layernorm(x, params["ln1_g"], params["ln1_b"])
        q = xn @ params["wq"] + params["bq"]
        k = xn @ params["wk"] + params["bk"]
        v = xn @ params["wv"] + params["bv"]
        heads = []
        for h in range(num_heads):
            qh, kh, vh = (t[:, h * dh:(h + 1) * dh] for t in (q, k, v))
            s = (qh @ kh.T) / (dh ** 0.5)
            p = jax.nn.softmax(s, axis=-1)
            heads.append((p @ vh) * params["head_gate"][:, h:h + 1])
        attn = jnp.concatenate(heads, axis=-1) @ params["wo"] + params["bo"]
        hid = x + attn
        ab = _layernorm(base, params["lnb_g"], params["lnb_b"])
        ab = ab @ params["wb"] + params["bb"]
        gv = jax.nn.sigmoid(params["bgate"])
        hid = hid * (1 - gv) + ab * gv
        res = hid
        hn = _layernorm(hid, params["ln2_g"], params["ln2_b"])
        f = jax.nn.gelu(hn @ params["w1"] + params["b1"], approximate=False)
        f = f @ params["w2"] + params["b2"]
        outs.append(res + f)
    return jnp.stack(outs)


def make_params(key, embed_dim, num_heads, ffn_dim, baseline_fusion_factor=0.3):
    ks = jax.random.split(key, 8)
    init = lambda k, shape: (0.02 * jax.random.normal(k, shape)).astype(jnp.float32)
    zeros = lambda shape: jnp.zeros(shape, jnp.float32)
    ones = lambda shape: jnp.ones(shape, jnp.float32)
    return {
        "ln1_g": ones((1, embed_dim)), "ln1_b": zeros((1, embed_dim)),
        "wq": init(ks[0], (embed_dim, embed_dim)), "bq": zeros((1, embed_dim)),
        "wk": init(ks[1], (embed_dim, embed_dim)), "bk": zeros((1, embed_dim)),
        "wv": init(ks[2], (embed_dim, embed_dim)), "bv": zeros((1, embed_dim)),
        "wo": init(ks[3], (embed_dim, embed_dim)), "bo": zeros((1, embed_dim)),
        "head_gate": ones((1, num_heads)),
        "lnb_g": ones((1, embed_dim)), "lnb_b": zeros((1, embed_dim)),
        "wb": init(ks[4], (embed_dim, embed_dim)), "bb": zeros((1, embed_dim)),
        "bgate": jnp.full((1, 1), baseline_fusion_factor, jnp.float32),
        "ln2_g": ones((1, embed_dim)), "ln2_b": zeros((1, embed_dim)),
        "w1": init(ks[5], (embed_dim, ffn_dim)), "b1": zeros((1, ffn_dim)),
        "w2": init(ks[6], (ffn_dim, embed_dim)), "b2": zeros((1, embed_dim)),
    }


if __name__ == "__main__":
    B, S, E, H = 2, 16, 32, 4
    FFN = 4 * E

    key = jax.random.PRNGKey(0)
    k_h, k_b, k_p = jax.random.split(key, 3)
    hidden = jax.random.normal(k_h, (B, S, E), dtype=jnp.float32)
    baseline = jax.random.normal(k_b, (B, S, E), dtype=jnp.float32)
    params = make_params(k_p, E, H, FFN)

    prep = prepare_params(params, H)                  # one-time weight folding
    # seq_tile=8 -> two seq tiles per batch element, exercising the K/V-cache
    # reuse path (s_idx > 0 reads the cache filled at s_idx == 0).
    out = baseline_integrated_block(hidden, baseline, prep, seq_tile=8)
    out = jax.block_until_ready(out)

    ref = _reference(hidden, baseline, params, H)
    assert out.shape == (B, S, E)
    # bf16 activations + bf16 MXU operands + tanh GELU vs f32 / erf reference.
    assert jnp.allclose(out.astype(jnp.float32), ref, atol=2e-2, rtol=2e-2), \
        "mismatch vs reference"

    print("KERNEL_OK")
</pallas_src>

<mosaic_0001>
module attributes {stable_mosaic.version = 11 : i64} {
  func.func @_block_kernel(%arg0: i32, %arg1: i32, %arg2: memref<1xf32, #tpu.memory_space<smem>>, %arg3: memref<1x16x32xbf16, #tpu.memory_space<vmem>>, %arg4: memref<1x8x32xbf16, #tpu.memory_space<vmem>>, %arg5: memref<1x32xf32, #tpu.memory_space<vmem>>, %arg6: memref<1x32xf32, #tpu.memory_space<vmem>>, %arg7: memref<32x32xbf16, #tpu.memory_space<vmem>>, %arg8: memref<1x32xf32, #tpu.memory_space<vmem>>, %arg9: memref<32x64xbf16, #tpu.memory_space<vmem>>, %arg10: memref<1x64xf32, #tpu.memory_space<vmem>>, %arg11: memref<32x32xbf16, #tpu.memory_space<vmem>>, %arg12: memref<1x32xf32, #tpu.memory_space<vmem>>, %arg13: memref<1x32xf32, #tpu.memory_space<vmem>>, %arg14: memref<1x32xf32, #tpu.memory_space<vmem>>, %arg15: memref<32x32xbf16, #tpu.memory_space<vmem>>, %arg16: memref<1x32xf32, #tpu.memory_space<vmem>>, %arg17: memref<1x32xf32, #tpu.memory_space<vmem>>, %arg18: memref<1x32xf32, #tpu.memory_space<vmem>>, %arg19: memref<32x128xbf16, #tpu.memory_space<vmem>>, %arg20: memref<1x128xf32, #tpu.memory_space<vmem>>, %arg21: memref<128x32xbf16, #tpu.memory_space<vmem>>, %arg22: memref<1x32xf32, #tpu.memory_space<vmem>>, %arg23: memref<1x8x32xbf16, #tpu.memory_space<vmem>>, %arg24: memref<4x16x8xbf16, #tpu.memory_space<vmem>>, %arg25: memref<4x16x8xbf16, #tpu.memory_space<vmem>>) attributes {dimension_semantics = [#tpu.dimension_semantics<parallel>, #tpu.dimension_semantics<arbitrary>], iteration_bounds = array<i64: 2, 2>, scalar_prefetch = 0 : i64, scratch_operands = 2 : i64, tpu.core_type = #tpu.core_type<tc>, window_params = [{transform_indices = @transform_0, window_bounds = array<i64: 1>}, {pipeline_mode = #tpu.pipeline_mode<synchronous>, transform_indices = @transform_1, window_bounds = array<i64: 1, 16, 32>}, {transform_indices = @transform_2, window_bounds = array<i64: 1, 8, 32>}, {pipeline_mode = #tpu.pipeline_mode<synchronous>, transform_indices = @transform_3, window_bounds = array<i64: 1, 32>}, {pipeline_mode = #tpu.pipeline_mode<synchronous>, transform_indices = @transform_4, window_bounds = array<i64: 1, 32>}, {pipeline_mode = #tpu.pipeline_mode<synchronous>, transform_indices = @transform_5, window_bounds = array<i64: 32, 32>}, {pipeline_mode = #tpu.pipeline_mode<synchronous>, transform_indices = @transform_6, window_bounds = array<i64: 1, 32>}, {pipeline_mode = #tpu.pipeline_mode<synchronous>, transform_indices = @transform_7, window_bounds = array<i64: 32, 64>}, {pipeline_mode = #tpu.pipeline_mode<synchronous>, transform_indices = @transform_8, window_bounds = array<i64: 1, 64>}, {pipeline_mode = #tpu.pipeline_mode<synchronous>, transform_indices = @transform_9, window_bounds = array<i64: 32, 32>}, {pipeline_mode = #tpu.pipeline_mode<synchronous>, transform_indices = @transform_10, window_bounds = array<i64: 1, 32>}, {pipeline_mode = #tpu.pipeline_mode<synchronous>, transform_indices = @transform_11, window_bounds = array<i64: 1, 32>}, {pipeline_mode = #tpu.pipeline_mode<synchronous>, transform_indices = @transform_12, window_bounds = array<i64: 1, 32>}, {pipeline_mode = #tpu.pipeline_mode<synchronous>, transform_indices = @transform_13, window_bounds = array<i64: 32, 32>}, {pipeline_mode = #tpu.pipeline_mode<synchronous>, transform_indices = @transform_14, window_bounds = array<i64: 1, 32>}, {pipeline_mode = #tpu.pipeline_mode<synchronous>, transform_indices = @transform_15, window_bounds = array<i64: 1, 32>}, {pipeline_mode = #tpu.pipeline_mode<synchronous>, transform_indices = @transform_16, window_bounds = array<i64: 1, 32>}, {pipeline_mode = #tpu.pipeline_mode<synchronous>, transform_indices = @transform_17, window_bounds = array<i64: 32, 128>}, {pipeline_mode = #tpu.pipeline_mode<synchronous>, transform_indices = @transform_18, window_bounds = array<i64: 1, 128>}, {pipeline_mode = #tpu.pipeline_mode<synchronous>, transform_indices = @transform_19, window_bounds = array<i64: 128, 32>}, {pipeline_mode = #tpu.pipeline_mode<synchronous>, transform_indices = @transform_20, window_bounds = array<i64: 1, 32>}, {transform_indices = @transform_21, window_bounds = array<i64: 1, 8, 32>}]} {
    %c0_i32 = arith.constant 0 : i32
    %0 = arith.cmpi eq, %arg1, %c0_i32 : i32
    %1 = arith.extui %0 : i1 to i32
    %c0_i32_0 = arith.constant 0 : i32
    %2 = arith.cmpi ne, %1, %c0_i32_0 : i32
    scf.if %2 {
      %c0_74 = arith.constant 0 : index
      %c0_75 = arith.constant 0 : index
      %c0_76 = arith.constant 0 : index
      %171 = vector.load %arg3[%c0_74, %c0_75, %c0_76] : memref<1x16x32xbf16, #tpu.memory_space<vmem>>, vector<1x8x32xbf16>
      %172 = vector.shape_cast %171 : vector<1x8x32xbf16> to vector<8x32xbf16>
      %173 = arith.extf %172 : vector<8x32xbf16> to vector<8x32xf32>
      %c0_77 = arith.constant 0 : index
      %c0_78 = arith.constant 0 : index
      %174 = vector.load %arg5[%c0_77, %c0_78] : memref<1x32xf32, #tpu.memory_space<vmem>>, vector<1x32xf32>
      %c0_79 = arith.constant 0 : index
      %c0_80 = arith.constant 0 : index
      %175 = vector.load %arg6[%c0_79, %c0_80] : memref<1x32xf32, #tpu.memory_space<vmem>>, vector<1x32xf32>
      %cst_81 = arith.constant dense<0.000000e+00> : vector<8xf32>
      %176 = vector.multi_reduction <add>, %173, %cst_81 [1] : vector<8x32xf32> to vector<8xf32>
      %177 = vector.shape_cast %176 : vector<8xf32> to vector<8x1xf32>
      %cst_82 = arith.constant 3.200000e+01 : f32
      %178 = vector.broadcast %cst_82 : f32 to vector<8x1xf32>
      %179 = arith.divf %177, %178 : vector<8x1xf32>
      %180 = vector.broadcast %179 : vector<8x1xf32> to vector<8x32xf32>
      %181 = arith.subf %173, %180 : vector<8x32xf32>
      %182 = arith.mulf %181, %181 : vector<8x32xf32>
      %cst_83 = arith.constant dense<0.000000e+00> : vector<8xf32>
      %183 = vector.multi_reduction <add>, %182, %cst_83 [1] : vector<8x32xf32> to vector<8xf32>
      %184 = vector.shape_cast %183 : vector<8xf32> to vector<8x1xf32>
      %cst_84 = arith.constant 3.200000e+01 : f32
      %185 = vector.broadcast %cst_84 : f32 to vector<8x1xf32>
      %186 = arith.divf %184, %185 : vector<8x1xf32>
      %187 = vector.broadcast %179 : vector<8x1xf32> to vector<8x32xf32>
      %188 = arith.subf %173, %187 : vector<8x32xf32>
      %cst_85 = arith.constant 9.99999996E-13 : f32
      %189 = vector.broadcast %cst_85 : f32 to vector<8x1xf32>
      %190 = arith.addf %186, %189 : vector<8x1xf32>
      %191 = math.rsqrt %190 : vector<8x1xf32>
      %192 = vector.broadcast %191 : vector<8x1xf32> to vector<8x32xf32>
      %193 = arith.mulf %188, %192 : vector<8x32xf32>
      %194 = vector.broadcast %174 : vector<1x32xf32> to vector<8x32xf32>
      %195 = arith.mulf %193, %194 : vector<8x32xf32>
      %196 = vector.broadcast %175 : vector<1x32xf32> to vector<8x32xf32>
      %197 = arith.addf %195, %196 : vector<8x32xf32>
      %198 = arith.truncf %197 : vector<8x32xf32> to vector<8x32xbf16>
      %c0_86 = arith.constant 0 : index
      %c0_87 = arith.constant 0 : index
      %199 = vector.load %arg9[%c0_86, %c0_87] : memref<32x64xbf16, #tpu.memory_space<vmem>>, vector<32x64xbf16>
      %cst_88 = arith.constant dense<0.000000e+00> : vector<8x64xf32>
      %200 = tpu.matmul %198, %199, %cst_88 {dimension_numbers = #tpu.dot_dimension_numbers<[1], [0], [0], [1], [0, 0, 1, 1], [], []>} : vector<8x32xbf16>, vector<32x64xbf16>, vector<8x64xf32> -> vector<8x64xf32>
      %c0_89 = arith.constant 0 : index
      %c0_90 = arith.constant 0 : index
      %201 = vector.load %arg10[%c0_89, %c0_90] : memref<1x64xf32, #tpu.memory_space<vmem>>, vector<1x64xf32>
      %202 = vector.broadcast %201 : vector<1x64xf32> to vector<8x64xf32>
      %203 = arith.addf %200, %202 : vector<8x64xf32>
      %204 = arith.truncf %203 : vector<8x64xf32> to vector<8x64xbf16>
      %205 = vector.extract_strided_slice %204 {offsets = [0, 0], sizes = [8, 8], strides = [1, 1]} : vector<8x64xbf16> to vector<8x8xbf16>
      %206 = vector.extract_strided_slice %204 {offsets = [0, 8], sizes = [8, 8], strides = [1, 1]} : vector<8x64xbf16> to vector<8x8xbf16>
      %207 = vector.extract_strided_slice %204 {offsets = [0, 16], sizes = [8, 8], strides = [1, 1]} : vector<8x64xbf16> to vector<8x8xbf16>
      %208 = vector.extract_strided_slice %204 {offsets = [0, 24], sizes = [8, 8], strides = [1, 1]} : vector<8x64xbf16> to vector<8x8xbf16>
      %209 = vector.shape_cast %205 : vector<8x8xbf16> to vector<1x8x8xbf16>
      %210 = vector.shape_cast %206 : vector<8x8xbf16> to vector<1x8x8xbf16>
      %211 = vector.shape_cast %207 : vector<8x8xbf16> to vector<1x8x8xbf16>
      %212 = vector.shape_cast %208 : vector<8x8xbf16> to vector<1x8x8xbf16>
      %213 = tpu.concatenate %209, %210, %211, %212 in 0 : vector<1x8x8xbf16>, vector<1x8x8xbf16>, vector<1x8x8xbf16>, vector<1x8x8xbf16> -> vector<4x8x8xbf16>
      %c0_91 = arith.constant 0 : index
      %c0_92 = arith.constant 0 : index
      %c0_93 = arith.constant 0 : index
      %214 = vector.load %arg24[%c0_91, %c0_92, %c0_93] : memref<4x16x8xbf16, #tpu.memory_space<vmem>>, vector<4x8x8xbf16>
      tpu.vector_store %arg24[%c0_91, %c0_92, %c0_93], %213 {strides = array<i32>} : memref<4x16x8xbf16, #tpu.memory_space<vmem>>, vector<4x8x8xbf16>,
      %215 = vector.extract_strided_slice %204 {offsets = [0, 32], sizes = [8, 8], strides = [1, 1]} : vector<8x64xbf16> to vector<8x8xbf16>
      %216 = vector.extract_strided_slice %204 {offsets = [0, 40], sizes = [8, 8], strides = [1, 1]} : vector<8x64xbf16> to vector<8x8xbf16>
      %217 = vector.extract_strided_slice %204 {offsets = [0, 48], sizes = [8, 8], strides = [1, 1]} : vector<8x64xbf16> to vector<8x8xbf16>
      %218 = vector.extract_strided_slice %204 {offsets = [0, 56], sizes = [8, 8], strides = [1, 1]} : vector<8x64xbf16> to vector<8x8xbf16>
      %219 = vector.shape_cast %215 : vector<8x8xbf16> to vector<1x8x8xbf16>
      %220 = vector.shape_cast %216 : vector<8x8xbf16> to vector<1x8x8xbf16>
      %221 = vector.shape_cast %217 : vector<8x8xbf16> to vector<1x8x8xbf16>
      %222 = vector.shape_cast %218 : vector<8x8xbf16> to vector<1x8x8xbf16>
      %223 = tpu.concatenate %219, %220, %221, %222 in 0 : vector<1x8x8xbf16>, vector<1x8x8xbf16>, vector<1x8x8xbf16>, vector<1x8x8xbf16> -> vector<4x8x8xbf16>
      %c0_94 = arith.constant 0 : index
      %c0_95 = arith.constant 0 : index
      %c0_96 = arith.constant 0 : index
      %224 = vector.load %arg25[%c0_94, %c0_95, %c0_96] : memref<4x16x8xbf16, #tpu.memory_space<vmem>>, vector<4x8x8xbf16>
      tpu.vector_store %arg25[%c0_94, %c0_95, %c0_96], %223 {strides = array<i32>} : memref<4x16x8xbf16, #tpu.memory_space<vmem>>, vector<4x8x8xbf16>,
      %c0_97 = arith.constant 0 : index
      %c8 = arith.constant 8 : index
      %c0_98 = arith.constant 0 : index
      %225 = vector.load %arg3[%c0_97, %c8, %c0_98] : memref<1x16x32xbf16, #tpu.memory_space<vmem>>, vector<1x8x32xbf16>
      %226 = vector.shape_cast %225 : vector<1x8x32xbf16> to vector<8x32xbf16>
      %227 = arith.extf %226 : vector<8x32xbf16> to vector<8x32xf32>
      %c0_99 = arith.constant 0 : index
      %c0_100 = arith.constant 0 : index
      %228 = vector.load %arg5[%c0_99, %c0_100] : memref<1x32xf32, #tpu.memory_space<vmem>>, vector<1x32xf32>
      %c0_101 = arith.constant 0 : index
      %c0_102 = arith.constant 0 : index
      %229 = vector.load %arg6[%c0_101, %c0_102] : memref<1x32xf32, #tpu.memory_space<vmem>>, vector<1x32xf32>
      %cst_103 = arith.constant dense<0.000000e+00> : vector<8xf32>
      %230 = vector.multi_reduction <add>, %227, %cst_103 [1] : vector<8x32xf32> to vector<8xf32>
      %231 = vector.shape_cast %230 : vector<8xf32> to vector<8x1xf32>
      %cst_104 = arith.constant 3.200000e+01 : f32
      %232 = vector.broadcast %cst_104 : f32 to vector<8x1xf32>
      %233 = arith.divf %231, %232 : vector<8x1xf32>
      %234 = vector.broadcast %233 : vector<8x1xf32> to vector<8x32xf32>
      %235 = arith.subf %227, %234 : vector<8x32xf32>
      %236 = arith.mulf %235, %235 : vector<8x32xf32>
      %cst_105 = arith.constant dense<0.000000e+00> : vector<8xf32>
      %237 = vector.multi_reduction <add>, %236, %cst_105 [1] : vector<8x32xf32> to vector<8xf32>
      %238 = vector.shape_cast %237 : vector<8xf32> to vector<8x1xf32>
      %cst_106 = arith.constant 3.200000e+01 : f32
      %239 = vector.broadcast %cst_106 : f32 to vector<8x1xf32>
      %240 = arith.divf %238, %239 : vector<8x1xf32>
      %241 = vector.broadcast %233 : vector<8x1xf32> to vector<8x32xf32>
      %242 = arith.subf %227, %241 : vector<8x32xf32>
      %cst_107 = arith.constant 9.99999996E-13 : f32
      %243 = vector.broadcast %cst_107 : f32 to vector<8x1xf32>
      %244 = arith.addf %240, %243 : vector<8x1xf32>
      %245 = math.rsqrt %244 : vector<8x1xf32>
      %246 = vector.broadcast %245 : vector<8x1xf32> to vector<8x32xf32>
      %247 = arith.mulf %242, %246 : vector<8x32xf32>
      %248 = vector.broadcast %228 : vector<1x32xf32> to vector<8x32xf32>
      %249 = arith.mulf %247, %248 : vector<8x32xf32>
      %250 = vector.broadcast %229 : vector<1x32xf32> to vector<8x32xf32>
      %251 = arith.addf %249, %250 : vector<8x32xf32>
      %252 = arith.truncf %251 : vector<8x32xf32> to vector<8x32xbf16>
      %c0_108 = arith.constant 0 : index
      %c0_109 = arith.constant 0 : index
      %253 = vector.load %arg9[%c0_108, %c0_109] : memref<32x64xbf16, #tpu.memory_space<vmem>>, vector<32x64xbf16>
      %cst_110 = arith.constant dense<0.000000e+00> : vector<8x64xf32>
      %254 = tpu.matmul %252, %253, %cst_110 {dimension_numbers = #tpu.dot_dimension_numbers<[1], [0], [0], [1], [0, 0, 1, 1], [], []>} : vector<8x32xbf16>, vector<32x64xbf16>, vector<8x64xf32> -> vector<8x64xf32>
      %c0_111 = arith.constant 0 : index
      %c0_112 = arith.constant 0 : index
      %255 = vector.load %arg10[%c0_111, %c0_112] : memref<1x64xf32, #tpu.memory_space<vmem>>, vector<1x64xf32>
      %256 = vector.broadcast %255 : vector<1x64xf32> to vector<8x64xf32>
      %257 = arith.addf %254, %256 : vector<8x64xf32>
      %258 = arith.truncf %257 : vector<8x64xf32> to vector<8x64xbf16>
      %259 = vector.extract_strided_slice %258 {offsets = [0, 0], sizes = [8, 8], strides = [1, 1]} : vector<8x64xbf16> to vector<8x8xbf16>
      %260 = vector.extract_strided_slice %258 {offsets = [0, 8], sizes = [8, 8], strides = [1, 1]} : vector<8x64xbf16> to vector<8x8xbf16>
      %261 = vector.extract_strided_slice %258 {offsets = [0, 16], sizes = [8, 8], strides = [1, 1]} : vector<8x64xbf16> to vector<8x8xbf16>
      %262 = vector.extract_strided_slice %258 {offsets = [0, 24], sizes = [8, 8], strides = [1, 1]} : vector<8x64xbf16> to vector<8x8xbf16>
      %263 = vector.shape_cast %259 : vector<8x8xbf16> to vector<1x8x8xbf16>
      %264 = vector.shape_cast %260 : vector<8x8xbf16> to vector<1x8x8xbf16>
      %265 = vector.shape_cast %261 : vector<8x8xbf16> to vector<1x8x8xbf16>
      %266 = vector.shape_cast %262 : vector<8x8xbf16> to vector<1x8x8xbf16>
      %267 = tpu.concatenate %263, %264, %265, %266 in 0 : vector<1x8x8xbf16>, vector<1x8x8xbf16>, vector<1x8x8xbf16>, vector<1x8x8xbf16> -> vector<4x8x8xbf16>
      %c0_113 = arith.constant 0 : index
      %c8_114 = arith.constant 8 : index
      %c0_115 = arith.constant 0 : index
      %268 = vector.load %arg24[%c0_113, %c8_114, %c0_115] : memref<4x16x8xbf16, #tpu.memory_space<vmem>>, vector<4x8x8xbf16>
      tpu.vector_store %arg24[%c0_113, %c8_114, %c0_115], %267 {strides = array<i32>} : memref<4x16x8xbf16, #tpu.memory_space<vmem>>, vector<4x8x8xbf16>,
      %269 = vector.extract_strided_slice %258 {offsets = [0, 32], sizes = [8, 8], strides = [1, 1]} : vector<8x64xbf16> to vector<8x8xbf16>
      %270 = vector.extract_strided_slice %258 {offsets = [0, 40], sizes = [8, 8], strides = [1, 1]} : vector<8x64xbf16> to vector<8x8xbf16>
      %271 = vector.extract_strided_slice %258 {offsets = [0, 48], sizes = [8, 8], strides = [1, 1]} : vector<8x64xbf16> to vector<8x8xbf16>
      %272 = vector.extract_strided_slice %258 {offsets = [0, 56], sizes = [8, 8], strides = [1, 1]} : vector<8x64xbf16> to vector<8x8xbf16>
      %273 = vector.shape_cast %269 : vector<8x8xbf16> to vector<1x8x8xbf16>
      %274 = vector.shape_cast %270 : vector<8x8xbf16> to vector<1x8x8xbf16>
      %275 = vector.shape_cast %271 : vector<8x8xbf16> to vector<1x8x8xbf16>
      %276 = vector.shape_cast %272 : vector<8x8xbf16> to vector<1x8x8xbf16>
      %277 = tpu.concatenate %273, %274, %275, %276 in 0 : vector<1x8x8xbf16>, vector<1x8x8xbf16>, vector<1x8x8xbf16>, vector<1x8x8xbf16> -> vector<4x8x8xbf16>
      %c0_116 = arith.constant 0 : index
      %c8_117 = arith.constant 8 : index
      %c0_118 = arith.constant 0 : index
      %278 = vector.load %arg25[%c0_116, %c8_117, %c0_118] : memref<4x16x8xbf16, #tpu.memory_space<vmem>>, vector<4x8x8xbf16>
      tpu.vector_store %arg25[%c0_116, %c8_117, %c0_118], %277 {strides = array<i32>} : memref<4x16x8xbf16, #tpu.memory_space<vmem>>, vector<4x8x8xbf16>,
    } else {
    }
    %c8_i32 = arith.constant 8 : i32
    %3 = arith.muli %arg1, %c8_i32 : i32
    %4 = tpu.assume_multiple %3, 8 : i32
    %c0 = arith.constant 0 : index
    %5 = arith.index_cast %4 : i32 to index
    %c0_1 = arith.constant 0 : index
    %6 = vector.load %arg3[%c0, %5, %c0_1] : memref<1x16x32xbf16, #tpu.memory_space<vmem>>, vector<1x8x32xbf16>
    %7 = vector.shape_cast %6 : vector<1x8x32xbf16> to vector<8x32xbf16>
    %8 = arith.extf %7 : vector<8x32xbf16> to vector<8x32xf32>
    %c0_2 = arith.constant 0 : index
    %c0_3 = arith.constant 0 : index
    %9 = vector.load %arg5[%c0_2, %c0_3] : memref<1x32xf32, #tpu.memory_space<vmem>>, vector<1x32xf32>
    %c0_4 = arith.constant 0 : index
    %c0_5 = arith.constant 0 : index
    %10 = vector.load %arg6[%c0_4, %c0_5] : memref<1x32xf32, #tpu.memory_space<vmem>>, vector<1x32xf32>
    %cst = arith.constant dense<0.000000e+00> : vector<8xf32>
    %11 = vector.multi_reduction <add>, %8, %cst [1] : vector<8x32xf32> to vector<8xf32>
    %12 = vector.shape_cast %11 : vector<8xf32> to vector<8x1xf32>
    %cst_6 = arith.constant 3.200000e+01 : f32
    %13 = vector.broadcast %cst_6 : f32 to vector<8x1xf32>
    %14 = arith.divf %12, %13 : vector<8x1xf32>
    %15 = vector.broadcast %14 : vector<8x1xf32> to vector<8x32xf32>
    %16 = arith.subf %8, %15 : vector<8x32xf32>
    %17 = arith.mulf %16, %16 : vector<8x32xf32>
    %cst_7 = arith.constant dense<0.000000e+00> : vector<8xf32>
    %18 = vector.multi_reduction <add>, %17, %cst_7 [1] : vector<8x32xf32> to vector<8xf32>
    %19 = vector.shape_cast %18 : vector<8xf32> to vector<8x1xf32>
    %cst_8 = arith.constant 3.200000e+01 : f32
    %20 = vector.broadcast %cst_8 : f32 to vector<8x1xf32>
    %21 = arith.divf %19, %20 : vector<8x1xf32>
    %22 = vector.broadcast %14 : vector<8x1xf32> to vector<8x32xf32>
    %23 = arith.subf %8, %22 : vector<8x32xf32>
    %cst_9 = arith.constant 9.99999996E-13 : f32
    %24 = vector.broadcast %cst_9 : f32 to vector<8x1xf32>
    %25 = arith.addf %21, %24 : vector<8x1xf32>
    %26 = math.rsqrt %25 : vector<8x1xf32>
    %27 = vector.broadcast %26 : vector<8x1xf32> to vector<8x32xf32>
    %28 = arith.mulf %23, %27 : vector<8x32xf32>
    %29 = vector.broadcast %9 : vector<1x32xf32> to vector<8x32xf32>
    %30 = arith.mulf %28, %29 : vector<8x32xf32>
    %31 = vector.broadcast %10 : vector<1x32xf32> to vector<8x32xf32>
    %32 = arith.addf %30, %31 : vector<8x32xf32>
    %33 = arith.truncf %32 : vector<8x32xf32> to vector<8x32xbf16>
    %c0_10 = arith.constant 0 : index
    %c0_11 = arith.constant 0 : index
    %34 = vector.load %arg7[%c0_10, %c0_11] : memref<32x32xbf16, #tpu.memory_space<vmem>>, vector<32x32xbf16>
    %cst_12 = arith.constant dense<0.000000e+00> : vector<8x32xf32>
    %35 = tpu.matmul %33, %34, %cst_12 {dimension_numbers = #tpu.dot_dimension_numbers<[1], [0], [0], [1], [0, 0, 1, 1], [], []>} : vector<8x32xbf16>, vector<32x32xbf16>, vector<8x32xf32> -> vector<8x32xf32>
    %c0_13 = arith.constant 0 : index
    %c0_14 = arith.constant 0 : index
    %36 = vector.load %arg8[%c0_13, %c0_14] : memref<1x32xf32, #tpu.memory_space<vmem>>, vector<1x32xf32>
    %37 = vector.broadcast %36 : vector<1x32xf32> to vector<8x32xf32>
    %38 = arith.addf %35, %37 : vector<8x32xf32>
    %39 = arith.truncf %38 : vector<8x32xf32> to vector<8x32xbf16>
    %40 = vector.extract_strided_slice %39 {offsets = [0, 0], sizes = [8, 8], strides = [1, 1]} : vector<8x32xbf16> to vector<8x8xbf16>
    %41 = vector.extract_strided_slice %39 {offsets = [0, 8], sizes = [8, 8], strides = [1, 1]} : vector<8x32xbf16> to vector<8x8xbf16>
    %42 = vector.extract_strided_slice %39 {offsets = [0, 16], sizes = [8, 8], strides = [1, 1]} : vector<8x32xbf16> to vector<8x8xbf16>
    %43 = vector.extract_strided_slice %39 {offsets = [0, 24], sizes = [8, 8], strides = [1, 1]} : vector<8x32xbf16> to vector<8x8xbf16>
    %44 = vector.shape_cast %40 : vector<8x8xbf16> to vector<1x8x8xbf16>
    %45 = vector.shape_cast %41 : vector<8x8xbf16> to vector<1x8x8xbf16>
    %46 = vector.shape_cast %42 : vector<8x8xbf16> to vector<1x8x8xbf16>
    %47 = vector.shape_cast %43 : vector<8x8xbf16> to vector<1x8x8xbf16>
    %48 = tpu.concatenate %44, %45, %46, %47 in 0 : vector<1x8x8xbf16>, vector<1x8x8xbf16>, vector<1x8x8xbf16>, vector<1x8x8xbf16> -> vector<4x8x8xbf16>
    %c0_15 = arith.constant 0 : index
    %c0_16 = arith.constant 0 : index
    %c0_17 = arith.constant 0 : index
    %49 = vector.load %arg24[%c0_15, %c0_16, %c0_17] : memref<4x16x8xbf16, #tpu.memory_space<vmem>>, vector<4x16x8xbf16>
    "tpu.trace_start"() <{level = 10 : i32, message = "hqd,hkd->hqk"}> : () -> ()
    %cst_18 = arith.constant dense<0.000000e+00> : vector<4x8x16xf32>
    %50 = tpu.matmul %48, %49, %cst_18 {dimension_numbers = #tpu.dot_dimension_numbers<[2], [2], [1], [1], [0, 0, 0, 1, 1, 1], [0], [0]>} : vector<4x8x8xbf16>, vector<4x16x8xbf16>, vector<4x8x16xf32> -> vector<4x8x16xf32>
    "tpu.trace_stop"() : () -> ()
    %cst_19 = arith.constant dense<0xFF800000> : vector<4x8xf32>
    %51 = vector.multi_reduction <maximumf>, %50, %cst_19 [2] : vector<4x8x16xf32> to vector<4x8xf32>
    %52 = vector.shape_cast %51 : vector<4x8xf32> to vector<4x8x1xf32>
    %53 = vector.broadcast %52 : vector<4x8x1xf32> to vector<4x8x16xf32>
    %54 = arith.subf %50, %53 : vector<4x8x16xf32>
    %55 = math.exp %54 : vector<4x8x16xf32>
    %cst_20 = arith.constant dense<0.000000e+00> : vector<4x8xf32>
    %56 = vector.multi_reduction <add>, %55, %cst_20 [2] : vector<4x8x16xf32> to vector<4x8xf32>
    %57 = vector.shape_cast %56 : vector<4x8xf32> to vector<4x8x1xf32>
    %58 = tpu.reciprocal %57 {approx = true} : vector<4x8x1xf32> -> vector<4x8x1xf32>
    %59 = vector.broadcast %58 : vector<4x8x1xf32> to vector<4x8x16xf32>
    %60 = arith.mulf %55, %59 : vector<4x8x16xf32>
    %61 = arith.truncf %60 : vector<4x8x16xf32> to vector<4x8x16xbf16>
    %c0_21 = arith.constant 0 : index
    %c0_22 = arith.constant 0 : index
    %c0_23 = arith.constant 0 : index
    %62 = vector.load %arg25[%c0_21, %c0_22, %c0_23] : memref<4x16x8xbf16, #tpu.memory_space<vmem>>, vector<4x16x8xbf16>
    "tpu.trace_start"() <{level = 10 : i32, message = "hqk,hkd->hqd"}> : () -> ()
    %cst_24 = arith.constant dense<0.000000e+00> : vector<4x8x8xf32>
    %63 = tpu.matmul %61, %62, %cst_24 {dimension_numbers = #tpu.dot_dimension_numbers<[2], [1], [1], [2], [0, 0, 0, 1, 1, 2], [0], [0]>} : vector<4x8x16xbf16>, vector<4x16x8xbf16>, vector<4x8x8xf32> -> vector<4x8x8xf32>
    "tpu.trace_stop"() : () -> ()
    %64 = arith.truncf %63 : vector<4x8x8xf32> to vector<4x8x8xbf16>
    %65 = vector.extract_strided_slice %64 {offsets = [0, 0, 0], sizes = [1, 8, 8], strides = [1, 1, 1]} : vector<4x8x8xbf16> to vector<1x8x8xbf16>
    %66 = vector.shape_cast %65 : vector<1x8x8xbf16> to vector<8x8xbf16>
    %67 = vector.extract_strided_slice %64 {offsets = [1, 0, 0], sizes = [1, 8, 8], strides = [1, 1, 1]} : vector<4x8x8xbf16> to vector<1x8x8xbf16>
    %68 = vector.shape_cast %67 : vector<1x8x8xbf16> to vector<8x8xbf16>
    %69 = vector.extract_strided_slice %64 {offsets = [2, 0, 0], sizes = [1, 8, 8], strides = [1, 1, 1]} : vector<4x8x8xbf16> to vector<1x8x8xbf16>
    %70 = vector.shape_cast %69 : vector<1x8x8xbf16> to vector<8x8xbf16>
    %71 = vector.extract_strided_slice %64 {offsets = [3, 0, 0], sizes = [1, 8, 8], strides = [1, 1, 1]} : vector<4x8x8xbf16> to vector<1x8x8xbf16>
    %72 = vector.shape_cast %71 : vector<1x8x8xbf16> to vector<8x8xbf16>
    %73 = tpu.concatenate %66, %68, %70, %72 in 1 : vector<8x8xbf16>, vector<8x8xbf16>, vector<8x8xbf16>, vector<8x8xbf16> -> vector<8x32xbf16>
    %c0_25 = arith.constant 0 : index
    %c0_26 = arith.constant 0 : index
    %74 = vector.load %arg11[%c0_25, %c0_26] : memref<32x32xbf16, #tpu.memory_space<vmem>>, vector<32x32xbf16>
    %cst_27 = arith.constant dense<0.000000e+00> : vector<8x32xf32>
    %75 = tpu.matmul %73, %74, %cst_27 {dimension_numbers = #tpu.dot_dimension_numbers<[1], [0], [0], [1], [0, 0, 1, 1], [], []>} : vector<8x32xbf16>, vector<32x32xbf16>, vector<8x32xf32> -> vector<8x32xf32>
    %c0_28 = arith.constant 0 : index
    %c0_29 = arith.constant 0 : index
    %76 = vector.load %arg12[%c0_28, %c0_29] : memref<1x32xf32, #tpu.memory_space<vmem>>, vector<1x32xf32>
    %77 = vector.broadcast %76 : vector<1x32xf32> to vector<8x32xf32>
    %78 = arith.addf %75, %77 : vector<8x32xf32>
    %79 = arith.addf %8, %78 : vector<8x32xf32>
    %c0_30 = arith.constant 0 : index
    %c0_31 = arith.constant 0 : index
    %c0_32 = arith.constant 0 : index
    %80 = vector.load %arg4[%c0_30, %c0_31, %c0_32] : memref<1x8x32xbf16, #tpu.memory_space<vmem>>, vector<1x8x32xbf16>
    %81 = vector.shape_cast %80 : vector<1x8x32xbf16> to vector<8x32xbf16>
    %82 = arith.extf %81 : vector<8x32xbf16> to vector<8x32xf32>
    %c0_33 = arith.constant 0 : index
    %c0_34 = arith.constant 0 : index
    %83 = vector.load %arg13[%c0_33, %c0_34] : memref<1x32xf32, #tpu.memory_space<vmem>>, vector<1x32xf32>
    %c0_35 = arith.constant 0 : index
    %c0_36 = arith.constant 0 : index
    %84 = vector.load %arg14[%c0_35, %c0_36] : memref<1x32xf32, #tpu.memory_space<vmem>>, vector<1x32xf32>
    %cst_37 = arith.constant dense<0.000000e+00> : vector<8xf32>
    %85 = vector.multi_reduction <add>, %82, %cst_37 [1] : vector<8x32xf32> to vector<8xf32>
    %86 = vector.shape_cast %85 : vector<8xf32> to vector<8x1xf32>
    %cst_38 = arith.constant 3.200000e+01 : f32
    %87 = vector.broadcast %cst_38 : f32 to vector<8x1xf32>
    %88 = arith.divf %86, %87 : vector<8x1xf32>
    %89 = vector.broadcast %88 : vector<8x1xf32> to vector<8x32xf32>
    %90 = arith.subf %82, %89 : vector<8x32xf32>
    %91 = arith.mulf %90, %90 : vector<8x32xf32>
    %cst_39 = arith.constant dense<0.000000e+00> : vector<8xf32>
    %92 = vector.multi_reduction <add>, %91, %cst_39 [1] : vector<8x32xf32> to vector<8xf32>
    %93 = vector.shape_cast %92 : vector<8xf32> to vector<8x1xf32>
    %cst_40 = arith.constant 3.200000e+01 : f32
    %94 = vector.broadcast %cst_40 : f32 to vector<8x1xf32>
    %95 = arith.divf %93, %94 : vector<8x1xf32>
    %96 = vector.broadcast %88 : vector<8x1xf32> to vector<8x32xf32>
    %97 = arith.subf %82, %96 : vector<8x32xf32>
    %cst_41 = arith.constant 9.99999996E-13 : f32
    %98 = vector.broadcast %cst_41 : f32 to vector<8x1xf32>
    %99 = arith.addf %95, %98 : vector<8x1xf32>
    %100 = math.rsqrt %99 : vector<8x1xf32>
    %101 = vector.broadcast %100 : vector<8x1xf32> to vector<8x32xf32>
    %102 = arith.mulf %97, %101 : vector<8x32xf32>
    %103 = vector.broadcast %83 : vector<1x32xf32> to vector<8x32xf32>
    %104 = arith.mulf %102, %103 : vector<8x32xf32>
    %105 = vector.broadcast %84 : vector<1x32xf32> to vector<8x32xf32>
    %106 = arith.addf %104, %105 : vector<8x32xf32>
    %107 = arith.truncf %106 : vector<8x32xf32> to vector<8x32xbf16>
    %c0_42 = arith.constant 0 : index
    %c0_43 = arith.constant 0 : index
    %108 = vector.load %arg15[%c0_42, %c0_43] : memref<32x32xbf16, #tpu.memory_space<vmem>>, vector<32x32xbf16>
    %cst_44 = arith.constant dense<0.000000e+00> : vector<8x32xf32>
    %109 = tpu.matmul %107, %108, %cst_44 {dimension_numbers = #tpu.dot_dimension_numbers<[1], [0], [0], [1], [0, 0, 1, 1], [], []>} : vector<8x32xbf16>, vector<32x32xbf16>, vector<8x32xf32> -> vector<8x32xf32>
    %c0_45 = arith.constant 0 : index
    %c0_46 = arith.constant 0 : index
    %110 = vector.load %arg16[%c0_45, %c0_46] : memref<1x32xf32, #tpu.memory_space<vmem>>, vector<1x32xf32>
    %111 = vector.broadcast %110 : vector<1x32xf32> to vector<8x32xf32>
    %112 = arith.addf %109, %111 : vector<8x32xf32>
    %c0_47 = arith.constant 0 : index
    %113 = memref.load %arg2[%c0_47] : memref<1xf32, #tpu.memory_space<smem>>
    %114 = vector.broadcast %113 : f32 to vector<8x32xf32>
    %115 = arith.mulf %79, %114 : vector<8x32xf32>
    %116 = arith.addf %115, %112 : vector<8x32xf32>
    %c0_48 = arith.constant 0 : index
    %c0_49 = arith.constant 0 : index
    %117 = vector.load %arg17[%c0_48, %c0_49] : memref<1x32xf32, #tpu.memory_space<vmem>>, vector<1x32xf32>
    %c0_50 = arith.constant 0 : index
    %c0_51 = arith.constant 0 : index
    %118 = vector.load %arg18[%c0_50, %c0_51] : memref<1x32xf32, #tpu.memory_space<vmem>>, vector<1x32xf32>
    %cst_52 = arith.constant dense<0.000000e+00> : vector<8xf32>
    %119 = vector.multi_reduction <add>, %116, %cst_52 [1] : vector<8x32xf32> to vector<8xf32>
    %120 = vector.shape_cast %119 : vector<8xf32> to vector<8x1xf32>
    %cst_53 = arith.constant 3.200000e+01 : f32
    %121 = vector.broadcast %cst_53 : f32 to vector<8x1xf32>
    %122 = arith.divf %120, %121 : vector<8x1xf32>
    %123 = vector.broadcast %122 : vector<8x1xf32> to vector<8x32xf32>
    %124 = arith.subf %116, %123 : vector<8x32xf32>
    %125 = arith.mulf %124, %124 : vector<8x32xf32>
    %cst_54 = arith.constant dense<0.000000e+00> : vector<8xf32>
    %126 = vector.multi_reduction <add>, %125, %cst_54 [1] : vector<8x32xf32> to vector<8xf32>
    %127 = vector.shape_cast %126 : vector<8xf32> to vector<8x1xf32>
    %cst_55 = arith.constant 3.200000e+01 : f32
    %128 = vector.broadcast %cst_55 : f32 to vector<8x1xf32>
    %129 = arith.divf %127, %128 : vector<8x1xf32>
    %130 = vector.broadcast %122 : vector<8x1xf32> to vector<8x32xf32>
    %131 = arith.subf %116, %130 : vector<8x32xf32>
    %cst_56 = arith.constant 9.99999996E-13 : f32
    %132 = vector.broadcast %cst_56 : f32 to vector<8x1xf32>
    %133 = arith.addf %129, %132 : vector<8x1xf32>
    %134 = math.rsqrt %133 : vector<8x1xf32>
    %135 = vector.broadcast %134 : vector<8x1xf32> to vector<8x32xf32>
    %136 = arith.mulf %131, %135 : vector<8x32xf32>
    %137 = vector.broadcast %117 : vector<1x32xf32> to vector<8x32xf32>
    %138 = arith.mulf %136, %137 : vector<8x32xf32>
    %139 = vector.broadcast %118 : vector<1x32xf32> to vector<8x32xf32>
    %140 = arith.addf %138, %139 : vector<8x32xf32>
    %141 = arith.truncf %140 : vector<8x32xf32> to vector<8x32xbf16>
    %c0_57 = arith.constant 0 : index
    %c0_58 = arith.constant 0 : index
    %142 = vector.load %arg19[%c0_57, %c0_58] : memref<32x128xbf16, #tpu.memory_space<vmem>>, vector<32x128xbf16>
    %cst_59 = arith.constant dense<0.000000e+00> : vector<8x128xf32>
    %143 = tpu.matmul %141, %142, %cst_59 {dimension_numbers = #tpu.dot_dimension_numbers<[1], [0], [0], [1], [0, 0, 1, 1], [], []>} : vector<8x32xbf16>, vector<32x128xbf16>, vector<8x128xf32> -> vector<8x128xf32>
    %c0_60 = arith.constant 0 : index
    %c0_61 = arith.constant 0 : index
    %144 = vector.load %arg20[%c0_60, %c0_61] : memref<1x128xf32, #tpu.memory_space<vmem>>, vector<1x128xf32>
    %145 = vector.broadcast %144 : vector<1x128xf32> to vector<8x128xf32>
    %146 = arith.addf %143, %145 : vector<8x128xf32>
    %147 = arith.mulf %146, %146 : vector<8x128xf32>
    %148 = arith.mulf %146, %147 : vector<8x128xf32>
    %cst_62 = arith.constant 4.471500e-02 : f32
    %149 = vector.broadcast %cst_62 : f32 to vector<8x128xf32>
    %150 = arith.mulf %149, %148 : vector<8x128xf32>
    %151 = arith.addf %146, %150 : vector<8x128xf32>
    %cst_63 = arith.constant 0.797884583 : f32
    %152 = vector.broadcast %cst_63 : f32 to vector<8x128xf32>
    %153 = arith.mulf %152, %151 : vector<8x128xf32>
    %154 = math.tanh %153 : vector<8x128xf32>
    %cst_64 = arith.constant 1.000000e+00 : f32
    %155 = vector.broadcast %cst_64 : f32 to vector<8x128xf32>
    %156 = arith.addf %155, %154 : vector<8x128xf32>
    %cst_65 = arith.constant 5.000000e-01 : f32
    %157 = vector.broadcast %cst_65 : f32 to vector<8x128xf32>
    %158 = arith.mulf %157, %156 : vector<8x128xf32>
    %159 = arith.mulf %146, %158 : vector<8x128xf32>
    %160 = arith.truncf %159 : vector<8x128xf32> to vector<8x128xbf16>
    %c0_66 = arith.constant 0 : index
    %c0_67 = arith.constant 0 : index
    %161 = vector.load %arg21[%c0_66, %c0_67] : memref<128x32xbf16, #tpu.memory_space<vmem>>, vector<128x32xbf16>
    %cst_68 = arith.constant dense<0.000000e+00> : vector<8x32xf32>
    %162 = tpu.matmul %160, %161, %cst_68 {dimension_numbers = #tpu.dot_dimension_numbers<[1], [0], [0], [1], [0, 0, 1, 1], [], []>} : vector<8x128xbf16>, vector<128x32xbf16>, vector<8x32xf32> -> vector<8x32xf32>
    %c0_69 = arith.constant 0 : index
    %c0_70 = arith.constant 0 : index
    %163 = vector.load %arg22[%c0_69, %c0_70] : memref<1x32xf32, #tpu.memory_space<vmem>>, vector<1x32xf32>
    %164 = vector.broadcast %163 : vector<1x32xf32> to vector<8x32xf32>
    %165 = arith.addf %162, %164 : vector<8x32xf32>
    %166 = arith.addf %116, %165 : vector<8x32xf32>
    %167 = arith.truncf %166 : vector<8x32xf32> to vector<8x32xbf16>
    %c0_71 = arith.constant 0 : index
    %c0_72 = arith.constant 0 : index
    %c0_73 = arith.constant 0 : index
    %168 = vector.load %arg23[%c0_71, %c0_72, %c0_73] : memref<1x8x32xbf16, #tpu.memory_space<vmem>>, vector<1x8x32xbf16>
    %169 = vector.shape_cast %168 : vector<1x8x32xbf16> to vector<8x32xbf16>
    %170 = vector.shape_cast %167 : vector<8x32xbf16> to vector<1x8x32xbf16>
    tpu.vector_store %arg23[%c0_71, %c0_72, %c0_73], %170 {strides = array<i32>} : memref<1x8x32xbf16, #tpu.memory_space<vmem>>, vector<1x8x32xbf16>,
    return
  }
  func.func @transform_0(%arg0: i32, %arg1: i32) -> i32 {
    %c0_i32 = arith.constant 0 : i32
    %c0_i32_0 = arith.constant 0 : i32
    return %c0_i32 : i32
  }
  func.func @transform_1(%arg0: i32, %arg1: i32) -> (i32, i32, i32) {
    %c0_i32 = arith.constant 0 : i32
    %c0_i32_0 = arith.constant 0 : i32
    %c0_i32_1 = arith.constant 0 : i32
    return %arg0, %c0_i32, %c0_i32_0 : i32, i32, i32
  }
  func.func @transform_2(%arg0: i32, %arg1: i32) -> (i32, i32, i32) {
    %c0_i32 = arith.constant 0 : i32
    %c0_i32_0 = arith.constant 0 : i32
    return %arg0, %arg1, %c0_i32 : i32, i32, i32
  }
  func.func @transform_3(%arg0: i32, %arg1: i32) -> (i32, i32) {
    %c0_i32 = arith.constant 0 : i32
    %c0_i32_0 = arith.constant 0 : i32
    %c0_i32_1 = arith.constant 0 : i32
    return %c0_i32, %c0_i32_0 : i32, i32
  }
  func.func @transform_4(%arg0: i32, %arg1: i32) -> (i32, i32) {
    %c0_i32 = arith.constant 0 : i32
    %c0_i32_0 = arith.constant 0 : i32
    %c0_i32_1 = arith.constant 0 : i32
    return %c0_i32, %c0_i32_0 : i32, i32
  }
  func.func @transform_5(%arg0: i32, %arg1: i32) -> (i32, i32) {
    %c0_i32 = arith.constant 0 : i32
    %c0_i32_0 = arith.constant 0 : i32
    %c0_i32_1 = arith.constant 0 : i32
    return %c0_i32, %c0_i32_0 : i32, i32
  }
  func.func @transform_6(%arg0: i32, %arg1: i32) -> (i32, i32) {
    %c0_i32 = arith.constant 0 : i32
    %c0_i32_0 = arith.constant 0 : i32
    %c0_i32_1 = arith.constant 0 : i32
    return %c0_i32, %c0_i32_0 : i32, i32
  }
  func.func @transform_7(%arg0: i32, %arg1: i32) -> (i32, i32) {
    %c0_i32 = arith.constant 0 : i32
    %c0_i32_0 = arith.constant 0 : i32
    %c0_i32_1 = arith.constant 0 : i32
    return %c0_i32, %c0_i32_0 : i32, i32
  }
  func.func @transform_8(%arg0: i32, %arg1: i32) -> (i32, i32) {
    %c0_i32 = arith.constant 0 : i32
    %c0_i32_0 = arith.constant 0 : i32
    %c0_i32_1 = arith.constant 0 : i32
    return %c0_i32, %c0_i32_0 : i32, i32
  }
  func.func @transform_9(%arg0: i32, %arg1: i32) -> (i32, i32) {
    %c0_i32 = arith.constant 0 : i32
    %c0_i32_0 = arith.constant 0 : i32
    %c0_i32_1 = arith.constant 0 : i32
    return %c0_i32, %c0_i32_0 : i32, i32
  }
  func.func @transform_10(%arg0: i32, %arg1: i32) -> (i32, i32) {
    %c0_i32 = arith.constant 0 : i32
    %c0_i32_0 = arith.constant 0 : i32
    %c0_i32_1 = arith.constant 0 : i32
    return %c0_i32, %c0_i32_0 : i32, i32
  }
  func.func @transform_11(%arg0: i32, %arg1: i32) -> (i32, i32) {
    %c0_i32 = arith.constant 0 : i32
    %c0_i32_0 = arith.constant 0 : i32
    %c0_i32_1 = arith.constant 0 : i32
    return %c0_i32, %c0_i32_0 : i32, i32
  }
  func.func @transform_12(%arg0: i32, %arg1: i32) -> (i32, i32) {
    %c0_i32 = arith.constant 0 : i32
    %c0_i32_0 = arith.constant 0 : i32
    %c0_i32_1 = arith.constant 0 : i32
    return %c0_i32, %c0_i32_0 : i32, i32
  }
  func.func @transform_13(%arg0: i32, %arg1: i32) -> (i32, i32) {
    %c0_i32 = arith.constant 0 : i32
    %c0_i32_0 = arith.constant 0 : i32
    %c0_i32_1 = arith.constant 0 : i32
    return %c0_i32, %c0_i32_0 : i32, i32
  }
  func.func @transform_14(%arg0: i32, %arg1: i32) -> (i32, i32) {
    %c0_i32 = arith.constant 0 : i32
    %c0_i32_0 = arith.constant 0 : i32
    %c0_i32_1 = arith.constant 0 : i32
    return %c0_i32, %c0_i32_0 : i32, i32
  }
  func.func @transform_15(%arg0: i32, %arg1: i32) -> (i32, i32) {
    %c0_i32 = arith.constant 0 : i32
    %c0_i32_0 = arith.constant 0 : i32
    %c0_i32_1 = arith.constant 0 : i32
    return %c0_i32, %c0_i32_0 : i32, i32
  }
  func.func @transform_16(%arg0: i32, %arg1: i32) -> (i32, i32) {
    %c0_i32 = arith.constant 0 : i32
    %c0_i32_0 = arith.constant 0 : i32
    %c0_i32_1 = arith.constant 0 : i32
    return %c0_i32, %c0_i32_0 : i32, i32
  }
  func.func @transform_17(%arg0: i32, %arg1: i32) -> (i32, i32) {
    %c0_i32 = arith.constant 0 : i32
    %c0_i32_0 = arith.constant 0 : i32
    %c0_i32_1 = arith.constant 0 : i32
    return %c0_i32, %c0_i32_0 : i32, i32
  }
  func.func @transform_18(%arg0: i32, %arg1: i32) -> (i32, i32) {
    %c0_i32 = arith.constant 0 : i32
    %c0_i32_0 = arith.constant 0 : i32
    %c0_i32_1 = arith.constant 0 : i32
    return %c0_i32, %c0_i32_0 : i32, i32
  }
  func.func @transform_19(%arg0: i32, %arg1: i32) -> (i32, i32) {
    %c0_i32 = arith.constant 0 : i32
    %c0_i32_0 = arith.constant 0 : i32
    %c0_i32_1 = arith.constant 0 : i32
    return %c0_i32, %c0_i32_0 : i32, i32
  }
  func.func @transform_20(%arg0: i32, %arg1: i32) -> (i32, i32) {
    %c0_i32 = arith.constant 0 : i32
    %c0_i32_0 = arith.constant 0 : i32
    %c0_i32_1 = arith.constant 0 : i32
    return %c0_i32, %c0_i32_0 : i32, i32
  }
  func.func @transform_21(%arg0: i32, %arg1: i32) -> (i32, i32, i32) {
    %c0_i32 = arith.constant 0 : i32
    %c0_i32_0 = arith.constant 0 : i32
    return %arg0, %arg1, %c0_i32 : i32, i32, i32
  }
}

module attributes {stable_mosaic.version = 11 : i64} {
  func.func @_block_kernel(%arg0: i32, %arg1: i32, %arg2: memref<1xf32, #tpu.memory_space<smem>>, %arg3: memref<1x16x32xbf16, #tpu.memory_space<vmem>>, %arg4: memref<1x8x32xbf16, #tpu.memory_space<vmem>>, %arg5: memref<1x32xf32, #tpu.memory_space<vmem>>, %arg6: memref<1x32xf32, #tpu.memory_space<vmem>>, %arg7: memref<32x32xbf16, #tpu.memory_space<vmem>>, %arg8: memref<1x32xf32, #tpu.memory_space<vmem>>, %arg9: memref<32x64xbf16, #tpu.memory_space<vmem>>, %arg10: memref<1x64xf32, #tpu.memory_space<vmem>>, %arg11: memref<32x32xbf16, #tpu.memory_space<vmem>>, %arg12: memref<1x32xf32, #tpu.memory_space<vmem>>, %arg13: memref<1x32xf32, #tpu.memory_space<vmem>>, %arg14: memref<1x32xf32, #tpu.memory_space<vmem>>, %arg15: memref<32x32xbf16, #tpu.memory_space<vmem>>, %arg16: memref<1x32xf32, #tpu.memory_space<vmem>>, %arg17: memref<1x32xf32, #tpu.memory_space<vmem>>, %arg18: memref<1x32xf32, #tpu.memory_space<vmem>>, %arg19: memref<32x128xbf16, #tpu.memory_space<vmem>>, %arg20: memref<1x128xf32, #tpu.memory_space<vmem>>, %arg21: memref<128x32xbf16, #tpu.memory_space<vmem>>, %arg22: memref<1x32xf32, #tpu.memory_space<vmem>>, %arg23: memref<1x8x32xbf16, #tpu.memory_space<vmem>>, %arg24: memref<4x16x8xbf16, #tpu.memory_space<vmem>>, %arg25: memref<4x16x8xbf16, #tpu.memory_space<vmem>>) attributes {dimension_semantics = [#tpu.dimension_semantics<parallel>, #tpu.dimension_semantics<arbitrary>], iteration_bounds = array<i64: 2, 2>, scalar_prefetch = 0 : i64, scratch_operands = 2 : i64, tpu.core_type = #tpu.core_type<tc>, window_params = [{transform_indices = @transform_0, window_bounds = array<i64: 1>}, {transform_indices = @transform_1, window_bounds = array<i64: 1, 16, 32>}, {transform_indices = @transform_2, window_bounds = array<i64: 1, 8, 32>}, {pipeline_mode = #tpu.pipeline_mode<synchronous>, transform_indices = @transform_3, window_bounds = array<i64: 1, 32>}, {pipeline_mode = #tpu.pipeline_mode<synchronous>, transform_indices = @transform_4, window_bounds = array<i64: 1, 32>}, {pipeline_mode = #tpu.pipeline_mode<synchronous>, transform_indices = @transform_5, window_bounds = array<i64: 32, 32>}, {pipeline_mode = #tpu.pipeline_mode<synchronous>, transform_indices = @transform_6, window_bounds = array<i64: 1, 32>}, {pipeline_mode = #tpu.pipeline_mode<synchronous>, transform_indices = @transform_7, window_bounds = array<i64: 32, 64>}, {pipeline_mode = #tpu.pipeline_mode<synchronous>, transform_indices = @transform_8, window_bounds = array<i64: 1, 64>}, {pipeline_mode = #tpu.pipeline_mode<synchronous>, transform_indices = @transform_9, window_bounds = array<i64: 32, 32>}, {pipeline_mode = #tpu.pipeline_mode<synchronous>, transform_indices = @transform_10, window_bounds = array<i64: 1, 32>}, {pipeline_mode = #tpu.pipeline_mode<synchronous>, transform_indices = @transform_11, window_bounds = array<i64: 1, 32>}, {pipeline_mode = #tpu.pipeline_mode<synchronous>, transform_indices = @transform_12, window_bounds = array<i64: 1, 32>}, {pipeline_mode = #tpu.pipeline_mode<synchronous>, transform_indices = @transform_13, window_bounds = array<i64: 32, 32>}, {pipeline_mode = #tpu.pipeline_mode<synchronous>, transform_indices = @transform_14, window_bounds = array<i64: 1, 32>}, {pipeline_mode = #tpu.pipeline_mode<synchronous>, transform_indices = @transform_15, window_bounds = array<i64: 1, 32>}, {pipeline_mode = #tpu.pipeline_mode<synchronous>, transform_indices = @transform_16, window_bounds = array<i64: 1, 32>}, {pipeline_mode = #tpu.pipeline_mode<synchronous>, transform_indices = @transform_17, window_bounds = array<i64: 32, 128>}, {pipeline_mode = #tpu.pipeline_mode<synchronous>, transform_indices = @transform_18, window_bounds = array<i64: 1, 128>}, {pipeline_mode = #tpu.pipeline_mode<synchronous>, transform_indices = @transform_19, window_bounds = array<i64: 128, 32>}, {pipeline_mode = #tpu.pipeline_mode<synchronous>, transform_indices = @transform_20, window_bounds = array<i64: 1, 32>}, {transform_indices = @transform_21, window_bounds = array<i64: 1, 8, 32>}]} {
    %c0_i32 = arith.constant 0 : i32
    %0 = arith.cmpi eq, %arg1, %c0_i32 : i32
    %1 = arith.extui %0 : i1 to i32
    %c0_i32_0 = arith.constant 0 : i32
    %2 = arith.cmpi ne, %1, %c0_i32_0 : i32
    scf.if %2 {
      %c0_74 = arith.constant 0 : index
      %c0_75 = arith.constant 0 : index
      %c0_76 = arith.constant 0 : index
      %171 = vector.load %arg3[%c0_74, %c0_75, %c0_76] : memref<1x16x32xbf16, #tpu.memory_space<vmem>>, vector<1x8x32xbf16>
      %172 = vector.shape_cast %171 : vector<1x8x32xbf16> to vector<8x32xbf16>
      %173 = arith.extf %172 : vector<8x32xbf16> to vector<8x32xf32>
      %c0_77 = arith.constant 0 : index
      %c0_78 = arith.constant 0 : index
      %174 = vector.load %arg5[%c0_77, %c0_78] : memref<1x32xf32, #tpu.memory_space<vmem>>, vector<1x32xf32>
      %c0_79 = arith.constant 0 : index
      %c0_80 = arith.constant 0 : index
      %175 = vector.load %arg6[%c0_79, %c0_80] : memref<1x32xf32, #tpu.memory_space<vmem>>, vector<1x32xf32>
      %cst_81 = arith.constant dense<0.000000e+00> : vector<8xf32>
      %176 = vector.multi_reduction <add>, %173, %cst_81 [1] : vector<8x32xf32> to vector<8xf32>
      %177 = vector.shape_cast %176 : vector<8xf32> to vector<8x1xf32>
      %cst_82 = arith.constant 3.200000e+01 : f32
      %178 = vector.broadcast %cst_82 : f32 to vector<8x1xf32>
      %179 = arith.divf %177, %178 : vector<8x1xf32>
      %180 = vector.broadcast %179 : vector<8x1xf32> to vector<8x32xf32>
      %181 = arith.subf %173, %180 : vector<8x32xf32>
      %182 = arith.mulf %181, %181 : vector<8x32xf32>
      %cst_83 = arith.constant dense<0.000000e+00> : vector<8xf32>
      %183 = vector.multi_reduction <add>, %182, %cst_83 [1] : vector<8x32xf32> to vector<8xf32>
      %184 = vector.shape_cast %183 : vector<8xf32> to vector<8x1xf32>
      %cst_84 = arith.constant 3.200000e+01 : f32
      %185 = vector.broadcast %cst_84 : f32 to vector<8x1xf32>
      %186 = arith.divf %184, %185 : vector<8x1xf32>
      %187 = vector.broadcast %179 : vector<8x1xf32> to vector<8x32xf32>
      %188 = arith.subf %173, %187 : vector<8x32xf32>
      %cst_85 = arith.constant 9.99999996E-13 : f32
      %189 = vector.broadcast %cst_85 : f32 to vector<8x1xf32>
      %190 = arith.addf %186, %189 : vector<8x1xf32>
      %191 = math.rsqrt %190 : vector<8x1xf32>
      %192 = vector.broadcast %191 : vector<8x1xf32> to vector<8x32xf32>
      %193 = arith.mulf %188, %192 : vector<8x32xf32>
      %194 = vector.broadcast %174 : vector<1x32xf32> to vector<8x32xf32>
      %195 = arith.mulf %193, %194 : vector<8x32xf32>
      %196 = vector.broadcast %175 : vector<1x32xf32> to vector<8x32xf32>
      %197 = arith.addf %195, %196 : vector<8x32xf32>
      %198 = arith.truncf %197 : vector<8x32xf32> to vector<8x32xbf16>
      %c0_86 = arith.constant 0 : index
      %c0_87 = arith.constant 0 : index
      %199 = vector.load %arg9[%c0_86, %c0_87] : memref<32x64xbf16, #tpu.memory_space<vmem>>, vector<32x64xbf16>
      %cst_88 = arith.constant dense<0.000000e+00> : vector<8x64xf32>
      %200 = tpu.matmul %198, %199, %cst_88 {dimension_numbers = #tpu.dot_dimension_numbers<[1], [0], [0], [1], [0, 0, 1, 1], [], []>} : vector<8x32xbf16>, vector<32x64xbf16>, vector<8x64xf32> -> vector<8x64xf32>
      %c0_89 = arith.constant 0 : index
      %c0_90 = arith.constant 0 : index
      %201 = vector.load %arg10[%c0_89, %c0_90] : memref<1x64xf32, #tpu.memory_space<vmem>>, vector<1x64xf32>
      %202 = vector.broadcast %201 : vector<1x64xf32> to vector<8x64xf32>
      %203 = arith.addf %200, %202 : vector<8x64xf32>
      %204 = arith.truncf %203 : vector<8x64xf32> to vector<8x64xbf16>
      %205 = vector.extract_strided_slice %204 {offsets = [0, 0], sizes = [8, 8], strides = [1, 1]} : vector<8x64xbf16> to vector<8x8xbf16>
      %206 = vector.extract_strided_slice %204 {offsets = [0, 8], sizes = [8, 8], strides = [1, 1]} : vector<8x64xbf16> to vector<8x8xbf16>
      %207 = vector.extract_strided_slice %204 {offsets = [0, 16], sizes = [8, 8], strides = [1, 1]} : vector<8x64xbf16> to vector<8x8xbf16>
      %208 = vector.extract_strided_slice %204 {offsets = [0, 24], sizes = [8, 8], strides = [1, 1]} : vector<8x64xbf16> to vector<8x8xbf16>
      %209 = vector.shape_cast %205 : vector<8x8xbf16> to vector<1x8x8xbf16>
      %210 = vector.shape_cast %206 : vector<8x8xbf16> to vector<1x8x8xbf16>
      %211 = vector.shape_cast %207 : vector<8x8xbf16> to vector<1x8x8xbf16>
      %212 = vector.shape_cast %208 : vector<8x8xbf16> to vector<1x8x8xbf16>
      %213 = tpu.concatenate %209, %210, %211, %212 in 0 : vector<1x8x8xbf16>, vector<1x8x8xbf16>, vector<1x8x8xbf16>, vector<1x8x8xbf16> -> vector<4x8x8xbf16>
      %c0_91 = arith.constant 0 : index
      %c0_92 = arith.constant 0 : index
      %c0_93 = arith.constant 0 : index
      %214 = vector.load %arg24[%c0_91, %c0_92, %c0_93] : memref<4x16x8xbf16, #tpu.memory_space<vmem>>, vector<4x8x8xbf16>
      tpu.vector_store %arg24[%c0_91, %c0_92, %c0_93], %213 {strides = array<i32>} : memref<4x16x8xbf16, #tpu.memory_space<vmem>>, vector<4x8x8xbf16>,
      %215 = vector.extract_strided_slice %204 {offsets = [0, 32], sizes = [8, 8], strides = [1, 1]} : vector<8x64xbf16> to vector<8x8xbf16>
      %216 = vector.extract_strided_slice %204 {offsets = [0, 40], sizes = [8, 8], strides = [1, 1]} : vector<8x64xbf16> to vector<8x8xbf16>
      %217 = vector.extract_strided_slice %204 {offsets = [0, 48], sizes = [8, 8], strides = [1, 1]} : vector<8x64xbf16> to vector<8x8xbf16>
      %218 = vector.extract_strided_slice %204 {offsets = [0, 56], sizes = [8, 8], strides = [1, 1]} : vector<8x64xbf16> to vector<8x8xbf16>
      %219 = vector.shape_cast %215 : vector<8x8xbf16> to vector<1x8x8xbf16>
      %220 = vector.shape_cast %216 : vector<8x8xbf16> to vector<1x8x8xbf16>
      %221 = vector.shape_cast %217 : vector<8x8xbf16> to vector<1x8x8xbf16>
      %222 = vector.shape_cast %218 : vector<8x8xbf16> to vector<1x8x8xbf16>
      %223 = tpu.concatenate %219, %220, %221, %222 in 0 : vector<1x8x8xbf16>, vector<1x8x8xbf16>, vector<1x8x8xbf16>, vector<1x8x8xbf16> -> vector<4x8x8xbf16>
      %c0_94 = arith.constant 0 : index
      %c0_95 = arith.constant 0 : index
      %c0_96 = arith.constant 0 : index
      %224 = vector.load %arg25[%c0_94, %c0_95, %c0_96] : memref<4x16x8xbf16, #tpu.memory_space<vmem>>, vector<4x8x8xbf16>
      tpu.vector_store %arg25[%c0_94, %c0_95, %c0_96], %223 {strides = array<i32>} : memref<4x16x8xbf16, #tpu.memory_space<vmem>>, vector<4x8x8xbf16>,
      %c0_97 = arith.constant 0 : index
      %c8 = arith.constant 8 : index
      %c0_98 = arith.constant 0 : index
      %225 = vector.load %arg3[%c0_97, %c8, %c0_98] : memref<1x16x32xbf16, #tpu.memory_space<vmem>>, vector<1x8x32xbf16>
      %226 = vector.shape_cast %225 : vector<1x8x32xbf16> to vector<8x32xbf16>
      %227 = arith.extf %226 : vector<8x32xbf16> to vector<8x32xf32>
      %c0_99 = arith.constant 0 : index
      %c0_100 = arith.constant 0 : index
      %228 = vector.load %arg5[%c0_99, %c0_100] : memref<1x32xf32, #tpu.memory_space<vmem>>, vector<1x32xf32>
      %c0_101 = arith.constant 0 : index
      %c0_102 = arith.constant 0 : index
      %229 = vector.load %arg6[%c0_101, %c0_102] : memref<1x32xf32, #tpu.memory_space<vmem>>, vector<1x32xf32>
      %cst_103 = arith.constant dense<0.000000e+00> : vector<8xf32>
      %230 = vector.multi_reduction <add>, %227, %cst_103 [1] : vector<8x32xf32> to vector<8xf32>
      %231 = vector.shape_cast %230 : vector<8xf32> to vector<8x1xf32>
      %cst_104 = arith.constant 3.200000e+01 : f32
      %232 = vector.broadcast %cst_104 : f32 to vector<8x1xf32>
      %233 = arith.divf %231, %232 : vector<8x1xf32>
      %234 = vector.broadcast %233 : vector<8x1xf32> to vector<8x32xf32>
      %235 = arith.subf %227, %234 : vector<8x32xf32>
      %236 = arith.mulf %235, %235 : vector<8x32xf32>
      %cst_105 = arith.constant dense<0.000000e+00> : vector<8xf32>
      %237 = vector.multi_reduction <add>, %236, %cst_105 [1] : vector<8x32xf32> to vector<8xf32>
      %238 = vector.shape_cast %237 : vector<8xf32> to vector<8x1xf32>
      %cst_106 = arith.constant 3.200000e+01 : f32
      %239 = vector.broadcast %cst_106 : f32 to vector<8x1xf32>
      %240 = arith.divf %238, %239 : vector<8x1xf32>
      %241 = vector.broadcast %233 : vector<8x1xf32> to vector<8x32xf32>
      %242 = arith.subf %227, %241 : vector<8x32xf32>
      %cst_107 = arith.constant 9.99999996E-13 : f32
      %243 = vector.broadcast %cst_107 : f32 to vector<8x1xf32>
      %244 = arith.addf %240, %243 : vector<8x1xf32>
      %245 = math.rsqrt %244 : vector<8x1xf32>
      %246 = vector.broadcast %245 : vector<8x1xf32> to vector<8x32xf32>
      %247 = arith.mulf %242, %246 : vector<8x32xf32>
      %248 = vector.broadcast %228 : vector<1x32xf32> to vector<8x32xf32>
      %249 = arith.mulf %247, %248 : vector<8x32xf32>
      %250 = vector.broadcast %229 : vector<1x32xf32> to vector<8x32xf32>
      %251 = arith.addf %249, %250 : vector<8x32xf32>
      %252 = arith.truncf %251 : vector<8x32xf32> to vector<8x32xbf16>
      %c0_108 = arith.constant 0 : index
      %c0_109 = arith.constant 0 : index
      %253 = vector.load %arg9[%c0_108, %c0_109] : memref<32x64xbf16, #tpu.memory_space<vmem>>, vector<32x64xbf16>
      %cst_110 = arith.constant dense<0.000000e+00> : vector<8x64xf32>
      %254 = tpu.matmul %252, %253, %cst_110 {dimension_numbers = #tpu.dot_dimension_numbers<[1], [0], [0], [1], [0, 0, 1, 1], [], []>} : vector<8x32xbf16>, vector<32x64xbf16>, vector<8x64xf32> -> vector<8x64xf32>
      %c0_111 = arith.constant 0 : index
      %c0_112 = arith.constant 0 : index
      %255 = vector.load %arg10[%c0_111, %c0_112] : memref<1x64xf32, #tpu.memory_space<vmem>>, vector<1x64xf32>
      %256 = vector.broadcast %255 : vector<1x64xf32> to vector<8x64xf32>
      %257 = arith.addf %254, %256 : vector<8x64xf32>
      %258 = arith.truncf %257 : vector<8x64xf32> to vector<8x64xbf16>
      %259 = vector.extract_strided_slice %258 {offsets = [0, 0], sizes = [8, 8], strides = [1, 1]} : vector<8x64xbf16> to vector<8x8xbf16>
      %260 = vector.extract_strided_slice %258 {offsets = [0, 8], sizes = [8, 8], strides = [1, 1]} : vector<8x64xbf16> to vector<8x8xbf16>
      %261 = vector.extract_strided_slice %258 {offsets = [0, 16], sizes = [8, 8], strides = [1, 1]} : vector<8x64xbf16> to vector<8x8xbf16>
      %262 = vector.extract_strided_slice %258 {offsets = [0, 24], sizes = [8, 8], strides = [1, 1]} : vector<8x64xbf16> to vector<8x8xbf16>
      %263 = vector.shape_cast %259 : vector<8x8xbf16> to vector<1x8x8xbf16>
      %264 = vector.shape_cast %260 : vector<8x8xbf16> to vector<1x8x8xbf16>
      %265 = vector.shape_cast %261 : vector<8x8xbf16> to vector<1x8x8xbf16>
      %266 = vector.shape_cast %262 : vector<8x8xbf16> to vector<1x8x8xbf16>
      %267 = tpu.concatenate %263, %264, %265, %266 in 0 : vector<1x8x8xbf16>, vector<1x8x8xbf16>, vector<1x8x8xbf16>, vector<1x8x8xbf16> -> vector<4x8x8xbf16>
      %c0_113 = arith.constant 0 : index
      %c8_114 = arith.constant 8 : index
      %c0_115 = arith.constant 0 : index
      %268 = vector.load %arg24[%c0_113, %c8_114, %c0_115] : memref<4x16x8xbf16, #tpu.memory_space<vmem>>, vector<4x8x8xbf16>
      tpu.vector_store %arg24[%c0_113, %c8_114, %c0_115], %267 {strides = array<i32>} : memref<4x16x8xbf16, #tpu.memory_space<vmem>>, vector<4x8x8xbf16>,
      %269 = vector.extract_strided_slice %258 {offsets = [0, 32], sizes = [8, 8], strides = [1, 1]} : vector<8x64xbf16> to vector<8x8xbf16>
      %270 = vector.extract_strided_slice %258 {offsets = [0, 40], sizes = [8, 8], strides = [1, 1]} : vector<8x64xbf16> to vector<8x8xbf16>
      %271 = vector.extract_strided_slice %258 {offsets = [0, 48], sizes = [8, 8], strides = [1, 1]} : vector<8x64xbf16> to vector<8x8xbf16>
      %272 = vector.extract_strided_slice %258 {offsets = [0, 56], sizes = [8, 8], strides = [1, 1]} : vector<8x64xbf16> to vector<8x8xbf16>
      %273 = vector.shape_cast %269 : vector<8x8xbf16> to vector<1x8x8xbf16>
      %274 = vector.shape_cast %270 : vector<8x8xbf16> to vector<1x8x8xbf16>
      %275 = vector.shape_cast %271 : vector<8x8xbf16> to vector<1x8x8xbf16>
      %276 = vector.shape_cast %272 : vector<8x8xbf16> to vector<1x8x8xbf16>
      %277 = tpu.concatenate %273, %274, %275, %276 in 0 : vector<1x8x8xbf16>, vector<1x8x8xbf16>, vector<1x8x8xbf16>, vector<1x8x8xbf16> -> vector<4x8x8xbf16>
      %c0_116 = arith.constant 0 : index
      %c8_117 = arith.constant 8 : index
      %c0_118 = arith.constant 0 : index
      %278 = vector.load %arg25[%c0_116, %c8_117, %c0_118] : memref<4x16x8xbf16, #tpu.memory_space<vmem>>, vector<4x8x8xbf16>
      tpu.vector_store %arg25[%c0_116, %c8_117, %c0_118], %277 {strides = array<i32>} : memref<4x16x8xbf16, #tpu.memory_space<vmem>>, vector<4x8x8xbf16>,
    } else {
    }
    %c8_i32 = arith.constant 8 : i32
    %3 = arith.muli %arg1, %c8_i32 : i32
    %4 = tpu.assume_multiple %3, 8 : i32
    %c0 = arith.constant 0 : index
    %5 = arith.index_cast %4 : i32 to index
    %c0_1 = arith.constant 0 : index
    %6 = vector.load %arg3[%c0, %5, %c0_1] : memref<1x16x32xbf16, #tpu.memory_space<vmem>>, vector<1x8x32xbf16>
    %7 = vector.shape_cast %6 : vector<1x8x32xbf16> to vector<8x32xbf16>
    %8 = arith.extf %7 : vector<8x32xbf16> to vector<8x32xf32>
    %c0_2 = arith.constant 0 : index
    %c0_3 = arith.constant 0 : index
    %9 = vector.load %arg5[%c0_2, %c0_3] : memref<1x32xf32, #tpu.memory_space<vmem>>, vector<1x32xf32>
    %c0_4 = arith.constant 0 : index
    %c0_5 = arith.constant 0 : index
    %10 = vector.load %arg6[%c0_4, %c0_5] : memref<1x32xf32, #tpu.memory_space<vmem>>, vector<1x32xf32>
    %cst = arith.constant dense<0.000000e+00> : vector<8xf32>
    %11 = vector.multi_reduction <add>, %8, %cst [1] : vector<8x32xf32> to vector<8xf32>
    %12 = vector.shape_cast %11 : vector<8xf32> to vector<8x1xf32>
    %cst_6 = arith.constant 3.200000e+01 : f32
    %13 = vector.broadcast %cst_6 : f32 to vector<8x1xf32>
    %14 = arith.divf %12, %13 : vector<8x1xf32>
    %15 = vector.broadcast %14 : vector<8x1xf32> to vector<8x32xf32>
    %16 = arith.subf %8, %15 : vector<8x32xf32>
    %17 = arith.mulf %16, %16 : vector<8x32xf32>
    %cst_7 = arith.constant dense<0.000000e+00> : vector<8xf32>
    %18 = vector.multi_reduction <add>, %17, %cst_7 [1] : vector<8x32xf32> to vector<8xf32>
    %19 = vector.shape_cast %18 : vector<8xf32> to vector<8x1xf32>
    %cst_8 = arith.constant 3.200000e+01 : f32
    %20 = vector.broadcast %cst_8 : f32 to vector<8x1xf32>
    %21 = arith.divf %19, %20 : vector<8x1xf32>
    %22 = vector.broadcast %14 : vector<8x1xf32> to vector<8x32xf32>
    %23 = arith.subf %8, %22 : vector<8x32xf32>
    %cst_9 = arith.constant 9.99999996E-13 : f32
    %24 = vector.broadcast %cst_9 : f32 to vector<8x1xf32>
    %25 = arith.addf %21, %24 : vector<8x1xf32>
    %26 = math.rsqrt %25 : vector<8x1xf32>
    %27 = vector.broadcast %26 : vector<8x1xf32> to vector<8x32xf32>
    %28 = arith.mulf %23, %27 : vector<8x32xf32>
    %29 = vector.broadcast %9 : vector<1x32xf32> to vector<8x32xf32>
    %30 = arith.mulf %28, %29 : vector<8x32xf32>
    %31 = vector.broadcast %10 : vector<1x32xf32> to vector<8x32xf32>
    %32 = arith.addf %30, %31 : vector<8x32xf32>
    %33 = arith.truncf %32 : vector<8x32xf32> to vector<8x32xbf16>
    %c0_10 = arith.constant 0 : index
    %c0_11 = arith.constant 0 : index
    %34 = vector.load %arg7[%c0_10, %c0_11] : memref<32x32xbf16, #tpu.memory_space<vmem>>, vector<32x32xbf16>
    %cst_12 = arith.constant dense<0.000000e+00> : vector<8x32xf32>
    %35 = tpu.matmul %33, %34, %cst_12 {dimension_numbers = #tpu.dot_dimension_numbers<[1], [0], [0], [1], [0, 0, 1, 1], [], []>} : vector<8x32xbf16>, vector<32x32xbf16>, vector<8x32xf32> -> vector<8x32xf32>
    %c0_13 = arith.constant 0 : index
    %c0_14 = arith.constant 0 : index
    %36 = vector.load %arg8[%c0_13, %c0_14] : memref<1x32xf32, #tpu.memory_space<vmem>>, vector<1x32xf32>
    %37 = vector.broadcast %36 : vector<1x32xf32> to vector<8x32xf32>
    %38 = arith.addf %35, %37 : vector<8x32xf32>
    %39 = arith.truncf %38 : vector<8x32xf32> to vector<8x32xbf16>
    %40 = vector.extract_strided_slice %39 {offsets = [0, 0], sizes = [8, 8], strides = [1, 1]} : vector<8x32xbf16> to vector<8x8xbf16>
    %41 = vector.extract_strided_slice %39 {offsets = [0, 8], sizes = [8, 8], strides = [1, 1]} : vector<8x32xbf16> to vector<8x8xbf16>
    %42 = vector.extract_strided_slice %39 {offsets = [0, 16], sizes = [8, 8], strides = [1, 1]} : vector<8x32xbf16> to vector<8x8xbf16>
    %43 = vector.extract_strided_slice %39 {offsets = [0, 24], sizes = [8, 8], strides = [1, 1]} : vector<8x32xbf16> to vector<8x8xbf16>
    %44 = vector.shape_cast %40 : vector<8x8xbf16> to vector<1x8x8xbf16>
    %45 = vector.shape_cast %41 : vector<8x8xbf16> to vector<1x8x8xbf16>
    %46 = vector.shape_cast %42 : vector<8x8xbf16> to vector<1x8x8xbf16>
    %47 = vector.shape_cast %43 : vector<8x8xbf16> to vector<1x8x8xbf16>
    %48 = tpu.concatenate %44, %45, %46, %47 in 0 : vector<1x8x8xbf16>, vector<1x8x8xbf16>, vector<1x8x8xbf16>, vector<1x8x8xbf16> -> vector<4x8x8xbf16>
    %c0_15 = arith.constant 0 : index
    %c0_16 = arith.constant 0 : index
    %c0_17 = arith.constant 0 : index
    %49 = vector.load %arg24[%c0_15, %c0_16, %c0_17] : memref<4x16x8xbf16, #tpu.memory_space<vmem>>, vector<4x16x8xbf16>
    "tpu.trace_start"() <{level = 10 : i32, message = "hqd,hkd->hqk"}> : () -> ()
    %cst_18 = arith.constant dense<0.000000e+00> : vector<4x8x16xf32>
    %50 = tpu.matmul %48, %49, %cst_18 {dimension_numbers = #tpu.dot_dimension_numbers<[2], [2], [1], [1], [0, 0, 0, 1, 1, 1], [0], [0]>} : vector<4x8x8xbf16>, vector<4x16x8xbf16>, vector<4x8x16xf32> -> vector<4x8x16xf32>
    "tpu.trace_stop"() : () -> ()
    %cst_19 = arith.constant dense<0xFF800000> : vector<4x8xf32>
    %51 = vector.multi_reduction <maximumf>, %50, %cst_19 [2] : vector<4x8x16xf32> to vector<4x8xf32>
    %52 = vector.shape_cast %51 : vector<4x8xf32> to vector<4x8x1xf32>
    %53 = vector.broadcast %52 : vector<4x8x1xf32> to vector<4x8x16xf32>
    %54 = arith.subf %50, %53 : vector<4x8x16xf32>
    %55 = math.exp %54 : vector<4x8x16xf32>
    %cst_20 = arith.constant dense<0.000000e+00> : vector<4x8xf32>
    %56 = vector.multi_reduction <add>, %55, %cst_20 [2] : vector<4x8x16xf32> to vector<4x8xf32>
    %57 = vector.shape_cast %56 : vector<4x8xf32> to vector<4x8x1xf32>
    %58 = tpu.reciprocal %57 {approx = true} : vector<4x8x1xf32> -> vector<4x8x1xf32>
    %59 = vector.broadcast %58 : vector<4x8x1xf32> to vector<4x8x16xf32>
    %60 = arith.mulf %55, %59 : vector<4x8x16xf32>
    %61 = arith.truncf %60 : vector<4x8x16xf32> to vector<4x8x16xbf16>
    %c0_21 = arith.constant 0 : index
    %c0_22 = arith.constant 0 : index
    %c0_23 = arith.constant 0 : index
    %62 = vector.load %arg25[%c0_21, %c0_22, %c0_23] : memref<4x16x8xbf16, #tpu.memory_space<vmem>>, vector<4x16x8xbf16>
    "tpu.trace_start"() <{level = 10 : i32, message = "hqk,hkd->hqd"}> : () -> ()
    %cst_24 = arith.constant dense<0.000000e+00> : vector<4x8x8xf32>
    %63 = tpu.matmul %61, %62, %cst_24 {dimension_numbers = #tpu.dot_dimension_numbers<[2], [1], [1], [2], [0, 0, 0, 1, 1, 2], [0], [0]>} : vector<4x8x16xbf16>, vector<4x16x8xbf16>, vector<4x8x8xf32> -> vector<4x8x8xf32>
    "tpu.trace_stop"() : () -> ()
    %64 = arith.truncf %63 : vector<4x8x8xf32> to vector<4x8x8xbf16>
    %65 = vector.extract_strided_slice %64 {offsets = [0, 0, 0], sizes = [1, 8, 8], strides = [1, 1, 1]} : vector<4x8x8xbf16> to vector<1x8x8xbf16>
    %66 = vector.shape_cast %65 : vector<1x8x8xbf16> to vector<8x8xbf16>
    %67 = vector.extract_strided_slice %64 {offsets = [1, 0, 0], sizes = [1, 8, 8], strides = [1, 1, 1]} : vector<4x8x8xbf16> to vector<1x8x8xbf16>
    %68 = vector.shape_cast %67 : vector<1x8x8xbf16> to vector<8x8xbf16>
    %69 = vector.extract_strided_slice %64 {offsets = [2, 0, 0], sizes = [1, 8, 8], strides = [1, 1, 1]} : vector<4x8x8xbf16> to vector<1x8x8xbf16>
    %70 = vector.shape_cast %69 : vector<1x8x8xbf16> to vector<8x8xbf16>
    %71 = vector.extract_strided_slice %64 {offsets = [3, 0, 0], sizes = [1, 8, 8], strides = [1, 1, 1]} : vector<4x8x8xbf16> to vector<1x8x8xbf16>
    %72 = vector.shape_cast %71 : vector<1x8x8xbf16> to vector<8x8xbf16>
    %73 = tpu.concatenate %66, %68, %70, %72 in 1 : vector<8x8xbf16>, vector<8x8xbf16>, vector<8x8xbf16>, vector<8x8xbf16> -> vector<8x32xbf16>
    %c0_25 = arith.constant 0 : index
    %c0_26 = arith.constant 0 : index
    %74 = vector.load %arg11[%c0_25, %c0_26] : memref<32x32xbf16, #tpu.memory_space<vmem>>, vector<32x32xbf16>
    %cst_27 = arith.constant dense<0.000000e+00> : vector<8x32xf32>
    %75 = tpu.matmul %73, %74, %cst_27 {dimension_numbers = #tpu.dot_dimension_numbers<[1], [0], [0], [1], [0, 0, 1, 1], [], []>} : vector<8x32xbf16>, vector<32x32xbf16>, vector<8x32xf32> -> vector<8x32xf32>
    %c0_28 = arith.constant 0 : index
    %c0_29 = arith.constant 0 : index
    %76 = vector.load %arg12[%c0_28, %c0_29] : memref<1x32xf32, #tpu.memory_space<vmem>>, vector<1x32xf32>
    %77 = vector.broadcast %76 : vector<1x32xf32> to vector<8x32xf32>
    %78 = arith.addf %75, %77 : vector<8x32xf32>
    %79 = arith.addf %8, %78 : vector<8x32xf32>
    %c0_30 = arith.constant 0 : index
    %c0_31 = arith.constant 0 : index
    %c0_32 = arith.constant 0 : index
    %80 = vector.load %arg4[%c0_30, %c0_31, %c0_32] : memref<1x8x32xbf16, #tpu.memory_space<vmem>>, vector<1x8x32xbf16>
    %81 = vector.shape_cast %80 : vector<1x8x32xbf16> to vector<8x32xbf16>
    %82 = arith.extf %81 : vector<8x32xbf16> to vector<8x32xf32>
    %c0_33 = arith.constant 0 : index
    %c0_34 = arith.constant 0 : index
    %83 = vector.load %arg13[%c0_33, %c0_34] : memref<1x32xf32, #tpu.memory_space<vmem>>, vector<1x32xf32>
    %c0_35 = arith.constant 0 : index
    %c0_36 = arith.constant 0 : index
    %84 = vector.load %arg14[%c0_35, %c0_36] : memref<1x32xf32, #tpu.memory_space<vmem>>, vector<1x32xf32>
    %cst_37 = arith.constant dense<0.000000e+00> : vector<8xf32>
    %85 = vector.multi_reduction <add>, %82, %cst_37 [1] : vector<8x32xf32> to vector<8xf32>
    %86 = vector.shape_cast %85 : vector<8xf32> to vector<8x1xf32>
    %cst_38 = arith.constant 3.200000e+01 : f32
    %87 = vector.broadcast %cst_38 : f32 to vector<8x1xf32>
    %88 = arith.divf %86, %87 : vector<8x1xf32>
    %89 = vector.broadcast %88 : vector<8x1xf32> to vector<8x32xf32>
    %90 = arith.subf %82, %89 : vector<8x32xf32>
    %91 = arith.mulf %90, %90 : vector<8x32xf32>
    %cst_39 = arith.constant dense<0.000000e+00> : vector<8xf32>
    %92 = vector.multi_reduction <add>, %91, %cst_39 [1] : vector<8x32xf32> to vector<8xf32>
    %93 = vector.shape_cast %92 : vector<8xf32> to vector<8x1xf32>
    %cst_40 = arith.constant 3.200000e+01 : f32
    %94 = vector.broadcast %cst_40 : f32 to vector<8x1xf32>
    %95 = arith.divf %93, %94 : vector<8x1xf32>
    %96 = vector.broadcast %88 : vector<8x1xf32> to vector<8x32xf32>
    %97 = arith.subf %82, %96 : vector<8x32xf32>
    %cst_41 = arith.constant 9.99999996E-13 : f32
    %98 = vector.broadcast %cst_41 : f32 to vector<8x1xf32>
    %99 = arith.addf %95, %98 : vector<8x1xf32>
    %100 = math.rsqrt %99 : vector<8x1xf32>
    %101 = vector.broadcast %100 : vector<8x1xf32> to vector<8x32xf32>
    %102 = arith.mulf %97, %101 : vector<8x32xf32>
    %103 = vector.broadcast %83 : vector<1x32xf32> to vector<8x32xf32>
    %104 = arith.mulf %102, %103 : vector<8x32xf32>
    %105 = vector.broadcast %84 : vector<1x32xf32> to vector<8x32xf32>
    %106 = arith.addf %104, %105 : vector<8x32xf32>
    %107 = arith.truncf %106 : vector<8x32xf32> to vector<8x32xbf16>
    %c0_42 = arith.constant 0 : index
    %c0_43 = arith.constant 0 : index
    %108 = vector.load %arg15[%c0_42, %c0_43] : memref<32x32xbf16, #tpu.memory_space<vmem>>, vector<32x32xbf16>
    %cst_44 = arith.constant dense<0.000000e+00> : vector<8x32xf32>
    %109 = tpu.matmul %107, %108, %cst_44 {dimension_numbers = #tpu.dot_dimension_numbers<[1], [0], [0], [1], [0, 0, 1, 1], [], []>} : vector<8x32xbf16>, vector<32x32xbf16>, vector<8x32xf32> -> vector<8x32xf32>
    %c0_45 = arith.constant 0 : index
    %c0_46 = arith.constant 0 : index
    %110 = vector.load %arg16[%c0_45, %c0_46] : memref<1x32xf32, #tpu.memory_space<vmem>>, vector<1x32xf32>
    %111 = vector.broadcast %110 : vector<1x32xf32> to vector<8x32xf32>
    %112 = arith.addf %109, %111 : vector<8x32xf32>
    %c0_47 = arith.constant 0 : index
    %113 = memref.load %arg2[%c0_47] : memref<1xf32, #tpu.memory_space<smem>>
    %114 = vector.broadcast %113 : f32 to vector<8x32xf32>
    %115 = arith.mulf %79, %114 : vector<8x32xf32>
    %116 = arith.addf %115, %112 : vector<8x32xf32>
    %c0_48 = arith.constant 0 : index
    %c0_49 = arith.constant 0 : index
    %117 = vector.load %arg17[%c0_48, %c0_49] : memref<1x32xf32, #tpu.memory_space<vmem>>, vector<1x32xf32>
    %c0_50 = arith.constant 0 : index
    %c0_51 = arith.constant 0 : index
    %118 = vector.load %arg18[%c0_50, %c0_51] : memref<1x32xf32, #tpu.memory_space<vmem>>, vector<1x32xf32>
    %cst_52 = arith.constant dense<0.000000e+00> : vector<8xf32>
    %119 = vector.multi_reduction <add>, %116, %cst_52 [1] : vector<8x32xf32> to vector<8xf32>
    %120 = vector.shape_cast %119 : vector<8xf32> to vector<8x1xf32>
    %cst_53 = arith.constant 3.200000e+01 : f32
    %121 = vector.broadcast %cst_53 : f32 to vector<8x1xf32>
    %122 = arith.divf %120, %121 : vector<8x1xf32>
    %123 = vector.broadcast %122 : vector<8x1xf32> to vector<8x32xf32>
    %124 = arith.subf %116, %123 : vector<8x32xf32>
    %125 = arith.mulf %124, %124 : vector<8x32xf32>
    %cst_54 = arith.constant dense<0.000000e+00> : vector<8xf32>
    %126 = vector.multi_reduction <add>, %125, %cst_54 [1] : vector<8x32xf32> to vector<8xf32>
    %127 = vector.shape_cast %126 : vector<8xf32> to vector<8x1xf32>
    %cst_55 = arith.constant 3.200000e+01 : f32
    %128 = vector.broadcast %cst_55 : f32 to vector<8x1xf32>
    %129 = arith.divf %127, %128 : vector<8x1xf32>
    %130 = vector.broadcast %122 : vector<8x1xf32> to vector<8x32xf32>
    %131 = arith.subf %116, %130 : vector<8x32xf32>
    %cst_56 = arith.constant 9.99999996E-13 : f32
    %132 = vector.broadcast %cst_56 : f32 to vector<8x1xf32>
    %133 = arith.addf %129, %132 : vector<8x1xf32>
    %134 = math.rsqrt %133 : vector<8x1xf32>
    %135 = vector.broadcast %134 : vector<8x1xf32> to vector<8x32xf32>
    %136 = arith.mulf %131, %135 : vector<8x32xf32>
    %137 = vector.broadcast %117 : vector<1x32xf32> to vector<8x32xf32>
    %138 = arith.mulf %136, %137 : vector<8x32xf32>
    %139 = vector.broadcast %118 : vector<1x32xf32> to vector<8x32xf32>
    %140 = arith.addf %138, %139 : vector<8x32xf32>
    %141 = arith.truncf %140 : vector<8x32xf32> to vector<8x32xbf16>
    %c0_57 = arith.constant 0 : index
    %c0_58 = arith.constant 0 : index
    %142 = vector.load %arg19[%c0_57, %c0_58] : memref<32x128xbf16, #tpu.memory_space<vmem>>, vector<32x128xbf16>
    %cst_59 = arith.constant dense<0.000000e+00> : vector<8x128xf32>
    %143 = tpu.matmul %141, %142, %cst_59 {dimension_numbers = #tpu.dot_dimension_numbers<[1], [0], [0], [1], [0, 0, 1, 1], [], []>} : vector<8x32xbf16>, vector<32x128xbf16>, vector<8x128xf32> -> vector<8x128xf32>
    %c0_60 = arith.constant 0 : index
    %c0_61 = arith.constant 0 : index
    %144 = vector.load %arg20[%c0_60, %c0_61] : memref<1x128xf32, #tpu.memory_space<vmem>>, vector<1x128xf32>
    %145 = vector.broadcast %144 : vector<1x128xf32> to vector<8x128xf32>
    %146 = arith.addf %143, %145 : vector<8x128xf32>
    %147 = arith.mulf %146, %146 : vector<8x128xf32>
    %148 = arith.mulf %146, %147 : vector<8x128xf32>
    %cst_62 = arith.constant 4.471500e-02 : f32
    %149 = vector.broadcast %cst_62 : f32 to vector<8x128xf32>
    %150 = arith.mulf %149, %148 : vector<8x128xf32>
    %151 = arith.addf %146, %150 : vector<8x128xf32>
    %cst_63 = arith.constant 0.797884583 : f32
    %152 = vector.broadcast %cst_63 : f32 to vector<8x128xf32>
    %153 = arith.mulf %152, %151 : vector<8x128xf32>
    %154 = math.tanh %153 : vector<8x128xf32>
    %cst_64 = arith.constant 1.000000e+00 : f32
    %155 = vector.broadcast %cst_64 : f32 to vector<8x128xf32>
    %156 = arith.addf %155, %154 : vector<8x128xf32>
    %cst_65 = arith.constant 5.000000e-01 : f32
    %157 = vector.broadcast %cst_65 : f32 to vector<8x128xf32>
    %158 = arith.mulf %157, %156 : vector<8x128xf32>
    %159 = arith.mulf %146, %158 : vector<8x128xf32>
    %160 = arith.truncf %159 : vector<8x128xf32> to vector<8x128xbf16>
    %c0_66 = arith.constant 0 : index
    %c0_67 = arith.constant 0 : index
    %161 = vector.load %arg21[%c0_66, %c0_67] : memref<128x32xbf16, #tpu.memory_space<vmem>>, vector<128x32xbf16>
    %cst_68 = arith.constant dense<0.000000e+00> : vector<8x32xf32>
    %162 = tpu.matmul %160, %161, %cst_68 {dimension_numbers = #tpu.dot_dimension_numbers<[1], [0], [0], [1], [0, 0, 1, 1], [], []>} : vector<8x128xbf16>, vector<128x32xbf16>, vector<8x32xf32> -> vector<8x32xf32>
    %c0_69 = arith.constant 0 : index
    %c0_70 = arith.constant 0 : index
    %163 = vector.load %arg22[%c0_69, %c0_70] : memref<1x32xf32, #tpu.memory_space<vmem>>, vector<1x32xf32>
    %164 = vector.broadcast %163 : vector<1x32xf32> to vector<8x32xf32>
    %165 = arith.addf %162, %164 : vector<8x32xf32>
    %166 = arith.addf %116, %165 : vector<8x32xf32>
    %167 = arith.truncf %166 : vector<8x32xf32> to vector<8x32xbf16>
    %c0_71 = arith.constant 0 : index
    %c0_72 = arith.constant 0 : index
    %c0_73 = arith.constant 0 : index
    %168 = vector.load %arg23[%c0_71, %c0_72, %c0_73] : memref<1x8x32xbf16, #tpu.memory_space<vmem>>, vector<1x8x32xbf16>
    %169 = vector.shape_cast %168 : vector<1x8x32xbf16> to vector<8x32xbf16>
    %170 = vector.shape_cast %167 : vector<8x32xbf16> to vector<1x8x32xbf16>
    tpu.vector_store %arg23[%c0_71, %c0_72, %c0_73], %170 {strides = array<i32>} : memref<1x8x32xbf16, #tpu.memory_space<vmem>>, vector<1x8x32xbf16>,
    return
  }
  func.func @transform_0(%arg0: i32, %arg1: i32) -> i32 {
    %c0_i32 = arith.constant 0 : i32
    %c0_i32_0 = arith.constant 0 : i32
    return %c0_i32 : i32
  }
  func.func @transform_1(%arg0: i32, %arg1: i32) -> (i32, i32, i32) {
    %c0_i32 = arith.constant 0 : i32
    %c0_i32_0 = arith.constant 0 : i32
    %c0_i32_1 = arith.constant 0 : i32
    return %arg0, %c0_i32, %c0_i32_0 : i32, i32, i32
  }
  func.func @transform_2(%arg0: i32, %arg1: i32) -> (i32, i32, i32) {
    %c0_i32 = arith.constant 0 : i32
    %c0_i32_0 = arith.constant 0 : i32
    return %arg0, %arg1, %c0_i32 : i32, i32, i32
  }
  func.func @transform_3(%arg0: i32, %arg1: i32) -> (i32, i32) {
    %c0_i32 = arith.constant 0 : i32
    %c0_i32_0 = arith.constant 0 : i32
    %c0_i32_1 = arith.constant 0 : i32
    return %c0_i32, %c0_i32_0 : i32, i32
  }
  func.func @transform_4(%arg0: i32, %arg1: i32) -> (i32, i32) {
    %c0_i32 = arith.constant 0 : i32
    %c0_i32_0 = arith.constant 0 : i32
    %c0_i32_1 = arith.constant 0 : i32
    return %c0_i32, %c0_i32_0 : i32, i32
  }
  func.func @transform_5(%arg0: i32, %arg1: i32) -> (i32, i32) {
    %c0_i32 = arith.constant 0 : i32
    %c0_i32_0 = arith.constant 0 : i32
    %c0_i32_1 = arith.constant 0 : i32
    return %c0_i32, %c0_i32_0 : i32, i32
  }
  func.func @transform_6(%arg0: i32, %arg1: i32) -> (i32, i32) {
    %c0_i32 = arith.constant 0 : i32
    %c0_i32_0 = arith.constant 0 : i32
    %c0_i32_1 = arith.constant 0 : i32
    return %c0_i32, %c0_i32_0 : i32, i32
  }
  func.func @transform_7(%arg0: i32, %arg1: i32) -> (i32, i32) {
    %c0_i32 = arith.constant 0 : i32
    %c0_i32_0 = arith.constant 0 : i32
    %c0_i32_1 = arith.constant 0 : i32
    return %c0_i32, %c0_i32_0 : i32, i32
  }
  func.func @transform_8(%arg0: i32, %arg1: i32) -> (i32, i32) {
    %c0_i32 = arith.constant 0 : i32
    %c0_i32_0 = arith.constant 0 : i32
    %c0_i32_1 = arith.constant 0 : i32
    return %c0_i32, %c0_i32_0 : i32, i32
  }
  func.func @transform_9(%arg0: i32, %arg1: i32) -> (i32, i32) {
    %c0_i32 = arith.constant 0 : i32
    %c0_i32_0 = arith.constant 0 : i32
    %c0_i32_1 = arith.constant 0 : i32
    return %c0_i32, %c0_i32_0 : i32, i32
  }
  func.func @transform_10(%arg0: i32, %arg1: i32) -> (i32, i32) {
    %c0_i32 = arith.constant 0 : i32
    %c0_i32_0 = arith.constant 0 : i32
    %c0_i32_1 = arith.constant 0 : i32
    return %c0_i32, %c0_i32_0 : i32, i32
  }
  func.func @transform_11(%arg0: i32, %arg1: i32) -> (i32, i32) {
    %c0_i32 = arith.constant 0 : i32
    %c0_i32_0 = arith.constant 0 : i32
    %c0_i32_1 = arith.constant 0 : i32
    return %c0_i32, %c0_i32_0 : i32, i32
  }
  func.func @transform_12(%arg0: i32, %arg1: i32) -> (i32, i32) {
    %c0_i32 = arith.constant 0 : i32
    %c0_i32_0 = arith.constant 0 : i32
    %c0_i32_1 = arith.constant 0 : i32
    return %c0_i32, %c0_i32_0 : i32, i32
  }
  func.func @transform_13(%arg0: i32, %arg1: i32) -> (i32, i32) {
    %c0_i32 = arith.constant 0 : i32
    %c0_i32_0 = arith.constant 0 : i32
    %c0_i32_1 = arith.constant 0 : i32
    return %c0_i32, %c0_i32_0 : i32, i32
  }
  func.func @transform_14(%arg0: i32, %arg1: i32) -> (i32, i32) {
    %c0_i32 = arith.constant 0 : i32
    %c0_i32_0 = arith.constant 0 : i32
    %c0_i32_1 = arith.constant 0 : i32
    return %c0_i32, %c0_i32_0 : i32, i32
  }
  func.func @transform_15(%arg0: i32, %arg1: i32) -> (i32, i32) {
    %c0_i32 = arith.constant 0 : i32
    %c0_i32_0 = arith.constant 0 : i32
    %c0_i32_1 = arith.constant 0 : i32
    return %c0_i32, %c0_i32_0 : i32, i32
  }
  func.func @transform_16(%arg0: i32, %arg1: i32) -> (i32, i32) {
    %c0_i32 = arith.constant 0 : i32
    %c0_i32_0 = arith.constant 0 : i32
    %c0_i32_1 = arith.constant 0 : i32
    return %c0_i32, %c0_i32_0 : i32, i32
  }
  func.func @transform_17(%arg0: i32, %arg1: i32) -> (i32, i32) {
    %c0_i32 = arith.constant 0 : i32
    %c0_i32_0 = arith.constant 0 : i32
    %c0_i32_1 = arith.constant 0 : i32
    return %c0_i32, %c0_i32_0 : i32, i32
  }
  func.func @transform_18(%arg0: i32, %arg1: i32) -> (i32, i32) {
    %c0_i32 = arith.constant 0 : i32
    %c0_i32_0 = arith.constant 0 : i32
    %c0_i32_1 = arith.constant 0 : i32
    return %c0_i32, %c0_i32_0 : i32, i32
  }
  func.func @transform_19(%arg0: i32, %arg1: i32) -> (i32, i32) {
    %c0_i32 = arith.constant 0 : i32
    %c0_i32_0 = arith.constant 0 : i32
    %c0_i32_1 = arith.constant 0 : i32
    return %c0_i32, %c0_i32_0 : i32, i32
  }
  func.func @transform_20(%arg0: i32, %arg1: i32) -> (i32, i32) {
    %c0_i32 = arith.constant 0 : i32
    %c0_i32_0 = arith.constant 0 : i32
    %c0_i32_1 = arith.constant 0 : i32
    return %c0_i32, %c0_i32_0 : i32, i32
  }
  func.func @transform_21(%arg0: i32, %arg1: i32) -> (i32, i32, i32) {
    %c0_i32 = arith.constant 0 : i32
    %c0_i32_0 = arith.constant 0 : i32
    return %arg0, %arg1, %c0_i32 : i32, i32, i32
  }
}

</mosaic_0001>

<bundles_post_ra>
// kernel: tpu_custom_call.1
= control target key start
LH: loop header
LB: loop body
LE: loop exit
PB: predicated region body
PF: predicated region fallthrough
CT: control target
= control target key end

     0   :  { %s3245_s0 = inlined_call_operand.<no memory space> [shape: f32[1], index: 0, kind: input, shape index: {}]   ;;  %s3246_s1 = inlined_call_operand.vmem [shape: bf16[2,16,32], index: 1, kind: input, shape index: {}]   ;;  %s3247_s2 = inlined_call_operand.vmem [shape: bf16[2,16,32], index: 2, kind: input, shape index: {}]   ;;  %s3248_s3 = inlined_call_operand.vmem [shape: f32[1,32], index: 3, kind: input, shape index: {}]   ;;  %s3249_s4 = inlined_call_operand.vmem [shape: f32[1,32], index: 4, kind: input, shape index: {}]   ;;  %s3250_s5 = inlined_call_operand.vmem [shape: bf16[32,32], index: 5, kind: input, shape index: {}]   ;;  %s3251_s6 = inlined_call_operand.vmem [shape: f32[1,32], index: 6, kind: input, shape index: {}]   ;;  %s3252_s7 = inlined_call_operand.vmem [shape: bf16[32,64], index: 7, kind: input, shape index: {}]   ;;  %s3253_s8 = inlined_call_operand.vmem [shape: f32[1,64], index: 8, kind: input, shape index: {}]   ;;  %s3254_s9 = inlined_call_operand.vmem [shape: bf16[32,32], index: 9, kind: input, shape index: {}]   ;;  %s3255_s10 = inlined_call_operand.vmem [shape: f32[1,32], index: 10, kind: input, shape index: {}]   ;;  %s3256_s11 = inlined_call_operand.vmem [shape: f32[1,32], index: 11, kind: input, shape index: {}]   ;;  %s3257_s12 = inlined_call_operand.vmem [shape: f32[1,32], index: 12, kind: input, shape index: {}]   ;;  %s3258_s13 = inlined_call_operand.hbm [shape: bf16[32,32], index: 13, kind: input, shape index: {}]   ;;  %s3259_s14 = inlined_call_operand.vmem [shape: f32[1,32], index: 14, kind: input, shape index: {}]   ;;  %s3260_s15 = inlined_call_operand.vmem [shape: f32[1,32], index: 15, kind: input, shape index: {}]   ;;  %s3261_s16 = inlined_call_operand.vmem [shape: f32[1,32], index: 16, kind: input, shape index: {}]   ;;  %s3262_s17 = inlined_call_operand.hbm [shape: bf16[32,128], index: 17, kind: input, shape index: {}]   ;;  %s3263_s18 = inlined_call_operand.vmem [shape: f32[1,128], index: 18, kind: input, shape index: {}]   ;;  %s3264_s19 = inlined_call_operand.vmem [shape: bf16[128,32], index: 19, kind: input, shape index: {}]   ;;  %s3265_s20 = inlined_call_operand.vmem [shape: f32[1,32], index: 20, kind: input, shape index: {}]   ;;  %s3266_s21 = inlined_call_operand.hbm [shape: bf16[2,16,32], index: 21, kind: output, shape index: {}]  }
   0x1   :  { %3279 = sst [smem:[#allocation23_spill]] %s3245_s0 }
   0x2   :  { %3280 = sst [smem:[#allocation24_spill]] %s3246_s1 }
   0x3   :  { %3281 = sst [smem:[#allocation25_spill]] %s3247_s2 }
   0x4   :  { %3282 = sst [smem:[#allocation26_spill]] %s3248_s3 }
   0x5   :  { %3283 = sst [smem:[#allocation27_spill]] %s3249_s4 }
   0x6   :  { %3284 = sst [smem:[#allocation28_spill]] %s3250_s5 }
   0x7   :  { %3285 = sst [smem:[#allocation29_spill]] %s3258_s13 }
   0x8   :  { %3286 = sst [smem:[#allocation30_spill]] %s3262_s17 }
   0x9   :  { %3287 = sst [smem:[#allocation31_spill]] %s3263_s18 }
   0xa   :  { %3288 = sst [smem:[#allocation32_spill]] %s3265_s20 }
   0xb   :  { %3289 = sst [smem:[#allocation33_spill]] %s3266_s21 }
   0xc   :  { %s3290_s26 = sld [smem:[#allocation23_spill]] }
  0x12   :  { %26 = sst [smem:[#allocation4]] %s3290_s26 }
  0x13   :  { %27 = vsyncpa [#allocation6], 0 }
  0x14   :  { %28 = vsyncpa [#allocation9], 0 }
  0x15   :  { %29 = vsyncpa [#allocation7], 0 }
  0x16   :  { %31 = vsyncpa [#allocation7 + $0x1], 0  ;;  %s2836_s27 = smov 0   ;;  %s2838_s3 = smov 0  }
  0x17   :  { %s2840_s28 = smov 0   ;;  %s2842_s29 = smov 0  }
  0x18   :  { %s2844_s0 = smov 0   ;;  %s2846_s4 = smov 0  }
  0x19   :  { %s2848_s30 = smov 0   ;;  %s2850_s5 = smov 0  }
  0x1a LB: > { %3291 = sst [smem:[#allocation14_spill]] %s2674_s27  ;;  %s2135_s22 = sadd.s32 4294967295, %s2702_s5   ;;  %s2702_s5 = sphi %s2850_s5, %s37_s5   ;;  %s2698_s30 = sphi %s2848_s30, %s3327_s30   ;;  %s2694_s4 = sphi %s2846_s4, %s3326_s4   ;;  %s2690_s0 = sphi %s2844_s0, %s3325_s0   ;;  %s2686_s29 = sphi %s2842_s29, %s3324_s29   ;;  %s2682_s28 = sphi %s2840_s28, %s3323_s28   ;;  %s2678_s3 = sphi %s2838_s3, %s3329_s3   ;;  %s2674_s27 = sphi %s2836_s27, %s3328_s27  }
  0x1b   : > { %3292 = sst [smem:[#allocation15_spill]] %s2682_s28  ;;  %s2136_s23 = sadd.s32 4294967294, %s2702_s5  }
  0x1c   : > { %3293 = sst [smem:[#allocation16_spill]] %s2694_s4  ;;  %s46_s1 = sadd.s32 1, %s2694_s4 }
  0x1d   : > { %3294 = sst [smem:[#allocation17_spill]] %s2698_s30  ;;  %s49_s24 = sadd.s32 1, %s2698_s30 }
  0x1e   : > { %3295 = sst [smem:[#allocation18_spill]] %s2702_s5  ;;  %p47_p0 = scmp.ge.s32.totalorder %s46_s1, 2 }
  0x1f   : > { %s511_s2 = sadd.s32 1, %s2682_s28  ;;  %p521_p1 = scmp.ne.s32.totalorder %s2682_s28, %s2678_s3 }
  0x20   : > { %p522_p2 = scmp.eq.s32.totalorder %s2135_s22, 3  ;;  %s3331_s1 = smov (%p47_p0, %s46_s1), 0 }
  0x21   : > { %3296 = sst [smem:[#allocation19_spill]] %s3331_s1  ;;  %s3333_s24 = smov (!%p47_p0, %s49_s24), %s2698_s30 }
  0x22   : > { %s507_s25 = ssub.s32 %s2694_s4, %s3331_s1  ;;  %p2888_p3 = por %p522_p2, %p521_p1 }
  0x23   : > { %p51_p4 = scmp.ge.s32.totalorder %s3333_s24, 2  ;;  %p527_p5 = scmp.ne.s32.totalorder %s2678_s3, %s2674_s27 }
  0x24   : > { %p528_p6 = scmp.eq.s32.totalorder %s2136_s23, 3  ;;  %p2137_p7 = scmp.ge.s32.totalorder %s2702_s5, 1 }
  0x25   : > { %s3335_s24 = smov (%p51_p4, %s3333_s24), 0  ;;  %p535_p9 = scmp.lt.s32.totalorder %s2702_s5, 5 }
  0x26   : > { %3298 = sst [smem:[#allocation20_spill]] %s3335_s24  ;;  %p2897_p8 = por %p528_p6, %p527_p5 }
  0x27   : > { %s506_s20 = ssub.s32 %s2698_s30, %s3335_s24  ;;  %p2904_p10 = pnand %p2137_p7, %p535_p9 }
  0x28   : > { %s3299_s21 = scalar_select %p2897_p8, 1, 0 }
  0x29   : > { %s508_s18 = sor.u32 %s507_s25, %s506_s20  ;;  %p2908_p12 = scmp.eq.s32.totalorder %s2135_s22, 0 }
  0x2a   : > { %3300 = sst [smem:[#allocation21_spill]] %s3299_s21  ;;  %p509_p11 = scmp.eq.s32.totalorder %s508_s18, 0 }
  0x2b   : > { %p2396_p13 = pneg %p2904_p10  ;;  %s2704_s27 = smov [#allocation5]  }
  0x2c   : > { %s2915_s23 = scalar_select %p509_p11, %s2682_s28, %s511_s2  }
  0x2d   : > { %s588_s21 = sshll.u32 %s2704_s27, 4  ;;  %p2919_p0 = pnand %p2908_p12, %p2396_p13  ;;  %s589_s21 = int_to_ptr.vmem [resolvable:$true] %s588_s21 }
  0x2e   : > { %3303 = sst [smem:[#allocation22_spill]] %s2915_s23  ;;  %s2561_s18 = scalar_lea.vmem %s589_s21, 256 }
  0x2f   : > { %p2552_p1 = pneg %p2919_p0  ;;  %p2562_p2 = scmp.ne.s32.totalorder %s589_s21, %s2561_s18 }
  0x30   : > { %p2569_p6 = scmp.lt.s32.totalorder %s589_s21, %s589_s21  ;;  %p2570_p7 = scmp.lt.s32.totalorder %s2561_s18, %s2561_s18 }
  0x31   : > { %p2564_p4 = pnand %p2562_p2, %p2552_p1 }
  0x32   : > { %p2571_p9 = por %p2570_p7, %p2569_p6 }
  0x33   : > { %p2565_p5 = pneg %p2564_p4 }
  0x35   : > { %p2572_p11 = pnand %p2571_p9, %p2565_p5 }
  0x37   : > { %2575 = shalt.err (!%p2572_p11)
}
  0x38   : > { %s2705_s27 = smov 64   ;;  %s2706_s22 = smov 4  }
  0x39   : > { %s3305_s13 = sld [smem:[#allocation29_spill]]  ;;  %s2707_s24 = smov [#allocation8]  }
  0x3a   : > { %s610_s30 = sshll.u32 %s2707_s24, 4  ;;  %s611_s30 = int_to_ptr.vmem [resolvable:$true] %s610_s30 }
  0x3b   : > { %s2587_s23 = scalar_lea.vmem %s611_s30, 256  ;;  %p2595_p5 = scmp.lt.s32.totalorder %s611_s30, %s611_s30 }
  0x3c   : > { %p2588_p13 = scmp.ne.s32.totalorder %s611_s30, %s2587_s23  ;;  %p2596_p6 = scmp.lt.s32.totalorder %s2587_s23, %s2587_s23 }
  0x3e   : > { %p2590_p2 = pnand %p2588_p13, %p2552_p1  ;;  %p2597_p7 = por %p2596_p6, %p2595_p5 }
  0x3f   : > { %2399 = dma.hbm_to_vmem [thread:$0]  (!%p2919_p0), %s3305_s13, 256, %s589_s21, [#allocation6], %s2705_s27, %s2705_s27, %s2706_s22  }
  0x40   : > { %p2591_p4 = pneg %p2590_p2 }
  0x42   : > { %p2598_p9 = pnand %p2597_p7, %p2591_p4 }
  0x44   : > { %2601 = shalt.err (!%p2598_p9)
}
  0x45   : > { %s3306_s17 = sld [smem:[#allocation30_spill]] }
  0x47   : > { %646 = sbr.rel (%p2904_p10) target bundleno = 3257 (0xcb9), region = 104 }
  0x4b   : > { %2402 = dma.hbm_to_vmem [thread:$0]  (!%p2919_p0), %s3306_s17, 256, %s611_s30, [#allocation9], %s2705_s27, %s2705_s27, %s2706_s22  }
  0x4c   : > { %2661 = dma.done.wait (%p2908_p12), [#allocation6], 256  }
  0x4d   : > { %2663 = vsyncadd (%p2908_p12), [#allocation6], 4294967040 }
  0x4e   : > { %2665 = dma.done.wait (%p2908_p12), [#allocation9], 256  }
  0x4f   : > { %2667 = vsyncadd (%p2908_p12), [#allocation9], 4294967040  ;;  %s3278_s21 = sand.u32 1, %s2678_s3   ;;  %p718_p10 = scmp.lt.s32.totalorder %s2690_s0, 1 }
  0x50   : > { %s2955_s28 = sshll.u32 %s3278_s21, 2  ;;  %p725_p0 = scmp.lt.s32.totalorder %s2686_s29, 1 }
  0x51   : > { %s719_s30 = scalar_select %p718_p10, %s2690_s0, 1 }
  0x52   : > { %s726_s1 = scalar_select %p725_p0, %s2686_s29, 1 }
  0x53   : > { %s2224_s24 = sshll.u32 %s719_s30, 3  ;;  %s2147_s23 = sshll.u32 %s719_s30, 1 }
  0x54   : > { %s3307_s27 = sld [smem:[#allocation24_spill]]  ;;  %s728_s2 = sadd.s32 %s2147_s23, %s726_s1 }
  0x55   : > { %s2148_s25 = sshll.u32 %s728_s2, 2  ;;  %s3308_s17 = sld [smem:[#allocation25_spill]] }
  0x56   : > { %s717_s21 = scalar_lea.vmem [#allocation10], %s2955_s28  ;;  %p2149_p12 = scmp.ne.s32.totalorder %s2686_s29, 0 }
  0x57   : > { %s2711_s23 = smov (!%p2149_p12), 112   ;;  %s2712_s20 = smov (!%p2149_p12), 104  }
  0x58   : > { %735 = sbr.rel (%p2149_p12) target bundleno = 848 (0x350), region = 116  ;;  %s2713_s4 = smov (!%p2149_p12), 96  }
  0x5a   : > { %s2963_s22 = scalar_lea.vmem %s3307_s27, %s2224_s24  ;;  %s2710_s24 = smov (!%p2149_p12), 120  }
  0x5b   : > { %s2968_s5 = scalar_lea.vmem %s3308_s17, %s2148_s25  ;;  %s3309_s25 = sld [smem:[#allocation26_spill]] (!%p2149_p12) }
  0x5c   : > { %s3310_s17 = sld [smem:[#allocation27_spill]] (!%p2149_p12) }
  0x5d   : > { %v736_v0 = vld [vmem:[%s2963_s22] sm:$0xff]   ;;  %vm740_vm0 = vcmask 261120   ;;  %v2494_v15 = vld [vmem:[%s3252_s7 + $0x8] sm:$0xff]   ;;  %v2708_v17 = vmov 0.0   ;;  %vm2709_vm1 = vmmov 0   ;;  %vm847_vm2 = vcmask 60416  }
  0x5e   : > { %v737_v1 = vunpack.c.l.bf16 %v736_v0  ;;  %v877_v2 = vunpack.c.h.bf16 %v736_v0  ;;  %v2496_v16 = vld [vmem:[%s3252_s7 + $0x8] sm:$0xff]   ;;  %2270 = vmatprep.subr.bf16.mxu0 %v2708_v17  ;;  %2278 = vmatprep.subr.bf16.mxu1 %v2708_v17  ;;  %v2495_v18 = vld [vmem:[%s3252_s7] sm:$0xff]  }
  0x5f   : > { %2271 = vmatpush3.bf16.msra.mxu0 %v2494_v15  ;;  %2279 = vmatpush3.bf16.msra.mxu1 %v2496_v16  ;;  %v2497_v19 = vld [vmem:[%s3252_s7] sm:$0xff]  }
  0x60   : > { %v741_v3 = vsel %vm740_vm0, %v737_v1, 0.0  ;;  %v880_v4 = vsel %vm740_vm0, %v877_v2, 0.0  ;;  %2272 = vmatprep.subr.bf16.mxu0 %v2708_v17  ;;  %2274 = vmatprep.mubr.msk.bf16.mxu0 %vm2709_vm1, %v2708_v17  ;;  %v2152_v38 = vld [vmem:[%s3253_s8] ss:$0 sm:$0xff] }
  0x61   : > { %742 = vadd.xlane.f32.xlu0 %v741_v3  ;;  %2280 = vmatprep.subr.bf16.mxu1 %v2708_v17  ;;  %v2150_v27 = vld [vmem:[%s3309_s25] ss:$0 sm:$0xff] }
  0x62   : > { %2282 = vmatprep.mubr.msk.bf16.mxu1 %vm2709_vm1, %v2708_v17  ;;  %v2151_v29 = vld [vmem:[%s3310_s17] ss:$0 sm:$0xff] }
  0x63   : > { %2273 = vmatpush3.bf16.msra.mxu0 %v2495_v18  ;;  %2281 = vmatpush3.bf16.msra.mxu1 %v2497_v19 }
  0x65   : > { %881 = vadd.xlane.f32.xlu0 %v880_v4 }
  0xea   : > { %v743_v5 = vpop.xlane.xlu0 %742 }
  0xeb   : > { %v745_v6 = vmul.f32 0.03125, %v743_v5 }
  0xed   : > { %v746_v7 = vsub.f32 %v737_v1, %v745_v6 }
  0xee   : > { %v882_v8 = vpop.xlane.xlu0 %881 }
  0xef   : > { %v883_v9 = vmul.f32 0.03125, %v882_v8  ;;  %v747_v10 = vmul.f32 %v746_v7, %v746_v7 }
  0xf1   : > { %v884_v11 = vsub.f32 %v877_v2, %v883_v9  ;;  %v748_v12 = vsel %vm740_vm0, %v747_v10, 0.0 }
  0xf2   : > { %749 = vadd.xlane.f32.xlu1 %v748_v12 }
  0xf3   : > { %v885_v13 = vmul.f32 %v884_v11, %v884_v11 }
  0xf5   : > { %v886_v14 = vsel %vm740_vm0, %v885_v13, 0.0 }
  0xf6   : > { %887 = vadd.xlane.f32.xlu1 %v886_v14 }
 0x17b   : > { %v750_v20 = vpop.xlane.xlu1 %749 }
 0x17c   : > { %v751_v21 = vmul.f32 0.03125, %v750_v20 }
 0x17e   : > { %v752_v22 = vadd.f32 1e-12, %v751_v21 }
 0x17f   : > { %v888_v23 = vpop.xlane.xlu1 %887 }
 0x180   : > { %2498 = vrsqrt.f32 %v752_v22  ;;  %v889_v24 = vmul.f32 0.03125, %v888_v23 }
 0x182   : > { %v890_v25 = vadd.f32 1e-12, %v889_v24 }
 0x184   : > { %2500 = vrsqrt.f32 %v890_v25 }
 0x18d   : > { %v2499_v26 = vpop.eup %2498 }
 0x18e   : > { %v754_v28 = vmul.f32 %v2499_v26, %v746_v7 }
 0x190   : > { %v761_v30 = vmul.f32 %v2150_v27, %v754_v28 }
 0x191   : > { %v2501_v31 = vpop.eup %2500 }
 0x192   : > { %v768_v32 = vadd.f32 %v2151_v29, %v761_v30  ;;  %v892_v33 = vmul.f32 %v2501_v31, %v884_v11 }
 0x194   : > { %v769_v34 = vpack.c.bf16 %v768_v32, %v768_v32  ;;  %v899_v35 = vmul.f32 %v2150_v27, %v892_v33 }
 0x196   : > { %2275 = vmatmul.mubr.msk.bf16.vlgmr.msra.gmra.mxu0 %vm740_vm0, %v769_v34  ;;  %v906_v36 = vadd.f32 %v2151_v29, %v899_v35 }
 0x198   : > { %v907_v37 = vpack.c.bf16 %v906_v36, %v906_v36 }
 0x19a   : > { %2283 = vmatmul.mubr.msk.bf16.vlgmr.msra.gmra.mxu1 %vm740_vm0, %v907_v37 }
 0x256   : > { %v830_v39 = vpop.f32.mrf.mxu0 }
 0x257   : > { %v831_v40 = vadd.f32 %v2152_v38, %v830_v39 }
 0x258   : > { %v2276_v41 = vpop.f32.mrf.mxu0 }
 0x259   : > { %v836_v42 = vpack.c.bf16 %v831_v40, %v831_v40 }
 0x25a   : > { %v833_v43 = vpop.f32.mrf.mxu0  ;;  %v968_v44 = vpop.f32.mrf.mxu1 }
 0x25b   : > { %848 = vst.msk [vmem:[#allocation2] sm:$0xf] %vm847_vm2, %v836_v42  ;;  %v969_v45 = vadd.f32 %v2152_v38, %v968_v44  ;;  %838 = vrot.lane.b32.xlu0 %v836_v42, %s2710_s24  ;;  %841 = vrot.lane.b32.xlu1 %v836_v42, %s2711_s23 }
 0x25c   : > { %v2277_v46 = vpop.f32.mrf.mxu0  ;;  %v2284_v47 = vpop.f32.mrf.mxu1 }
 0x25d   : > { %v974_v48 = vpack.c.bf16 %v969_v45, %v969_v45 }
 0x25e   : > { %v971_v49 = vpop.f32.mrf.mxu1 }
 0x25f   : > { %985 = vst.msk [vmem:[#allocation2 + $0x4] sm:$0xf] %vm847_vm2, %v974_v48  ;;  %844 = vrot.lane.b32.xlu1 %v836_v42, %s2712_s20  ;;  %979 = vrot.lane.b32.xlu0 %v974_v48, %s2711_s23 }
 0x260   : > { %v2285_v50 = vpop.f32.mrf.mxu1 }
 0x263   : > { %860 = vrot.lane.b32.xlu0 %v836_v42, %s2713_s4  ;;  %976 = vrot.lane.b32.xlu1 %v974_v48, %s2710_s24 }
 0x267   : > { %997 = vrot.lane.b32.xlu0 %v974_v48, %s2713_s4  ;;  %982 = vrot.lane.b32.xlu1 %v974_v48, %s2712_s20 }
 0x2cd   : > { %v842_v51 = vpop.permute.xlu1 %841  ;;  %v839_v52 = vpop.permute.xlu0 %838 }
 0x2ce   : > { %850 = vst.msk [vmem:[#allocation2 + $0x10] sm:$0xf] %vm847_vm2, %v842_v51  ;;  %v2158_v53 = vcombine.low %v842_v51, %v842_v51  ;;  %849 = vst.msk [vmem:[#allocation2 + $0x8] sm:$0xf] %vm847_vm2, %v839_v52  ;;  %v2157_v54 = vcombine.low %v839_v52, %v839_v52 }
 0x2d0   : > { %864 = vrot.lane.b32.xlu0 %v2158_v53, %s2713_s4  ;;  %862 = vrot.lane.b32.xlu1 %v2157_v54, %s2713_s4 }
 0x2d1   : > { %v845_v55 = vpop.permute.xlu1 %844  ;;  %v980_v56 = vpop.permute.xlu0 %979 }
 0x2d2   : > { %851 = vst.msk [vmem:[#allocation2 + $0x18] sm:$0xf] %vm847_vm2, %v845_v55  ;;  %v2159_v57 = vcombine.low %v845_v55, %v845_v55  ;;  %987 = vst.msk [vmem:[#allocation2 + $0x14] sm:$0xf] %vm847_vm2, %v980_v56  ;;  %v2168_v58 = vcombine.low %v980_v56, %v980_v56 }
 0x2d4   : > { %866 = vrot.lane.b32.xlu1 %v2159_v57, %s2713_s4  ;;  %1001 = vrot.lane.b32.xlu0 %v2168_v58, %s2713_s4 }
 0x2d5   : > { %v977_v59 = vpop.permute.xlu1 %976  ;;  %v861_v60 = vpop.permute.xlu0 %860 }
 0x2d6   : > { %986 = vst.msk [vmem:[#allocation2 + $0xc] sm:$0xf] %vm847_vm2, %v977_v59  ;;  %v2167_v61 = vcombine.low %v977_v59, %v977_v59  ;;  %872 = vst.msk [vmem:[#allocation3] sm:$0xf] %vm847_vm2, %v861_v60 }
 0x2d8   : > { %999 = vrot.lane.b32.xlu1 %v2167_v61, %s2713_s4 }
 0x2d9   : > { %v983_v62 = vpop.permute.xlu1 %982  ;;  %v998_v63 = vpop.permute.xlu0 %997 }
 0x2da   : > { %988 = vst.msk [vmem:[#allocation2 + $0x1c] sm:$0xf] %vm847_vm2, %v983_v62  ;;  %v2169_v0 = vcombine.low %v983_v62, %v983_v62  ;;  %1009 = vst.msk [vmem:[#allocation3 + $0x4] sm:$0xf] %vm847_vm2, %v998_v63 }
 0x2dc   : > { %1003 = vrot.lane.b32.xlu1 %v2169_v0, %s2713_s4 }
 0x342   : > { %v863_v1 = vpop.permute.xlu1 %862  ;;  %v865_v2 = vpop.permute.xlu0 %864 }
 0x343   : > { %873 = vst.msk [vmem:[#allocation3 + $0x8] sm:$0xf] %vm847_vm2, %v863_v1  ;;  %874 = vst.msk [vmem:[#allocation3 + $0x10] sm:$0xf] %vm847_vm2, %v865_v2 }
 0x346   : > { %v867_v3 = vpop.permute.xlu1 %866  ;;  %v1002_v4 = vpop.permute.xlu0 %1001 }
 0x347   : > { %875 = vst.msk [vmem:[#allocation3 + $0x18] sm:$0xf] %vm847_vm2, %v867_v3  ;;  %1011 = vst.msk [vmem:[#allocation3 + $0x14] sm:$0xf] %vm847_vm2, %v1002_v4 }
 0x34a   : > { %v1000_v5 = vpop.permute.xlu1 %999 }
 0x34b   : > { %1010 = vst.msk [vmem:[#allocation3 + $0xc] sm:$0xf] %vm847_vm2, %v1000_v5 }
 0x34e   : > { %v1004_v6 = vpop.permute.xlu1 %1003 }
 0x34f   : > { %1012 = vst.msk [vmem:[#allocation3 + $0x1c] sm:$0xf] %vm847_vm2, %v1004_v6 }
 0x350 PF: > { %s2170_s27 = sshll.u32 %s2686_s29, 3  ;;  %vm1022_vm3 = vcmask 261120   ;;  %s3311_s30 = sld [smem:[#allocation28_spill]]  ;;  %v2714_v16 = vmov 0.0   ;;  %vm2715_vm4 = vmmov 0   ;;  %v2504_v26 = vld [vmem:[#allocation2] sm:$0xff]  }
 0x351   : > { %s1014_s2 = sshra.s32 %s2170_s27, 3  ;;  %2286 = vmatprep.subr.bf16.mxu1 %v2714_v16  ;;  %2290 = vmatprep.mubr.msk.bf16.mxu1 %vm2715_vm4, %v2714_v16  ;;  %s3313_s4 = sld [smem:[#allocation26_spill]]  ;;  %vm1139_vm5 = vcmask 64512   ;;  %v2506_v30 = vld [vmem:[#allocation2 + $0x18] sm:$0xff]   ;;  %v2174_v32 = vld [vmem:[%s3251_s6] ss:$0 sm:$0xff] }
 0x352   : > { %s2171_s25 = sshll.u32 %s1014_s2, 2  ;;  %2312 = vmatprep.subr.bf16.mxu0 %v2714_v16  ;;  %2314 = vmatprep.mubr.msk.bf16.mxu0 %vm2715_vm4, %v2714_v16  ;;  %v1144_v29 = vsel %vm1139_vm5, %v2504_v26, 0  ;;  %v1297_v31 = vsel %vm1139_vm5, %v2506_v30, 0  ;;  %v2505_v34 = vld [vmem:[#allocation2 + $0x8] sm:$0xff]   ;;  %s2716_s17 = smov 104   ;;  %v2507_v41 = vld [vmem:[#allocation2 + $0x10] sm:$0xff]  }
 0x353   : > { %s1017_s18 = scalar_lea.vmem %s2963_s22, %s2171_s25  ;;  %s3314_s25 = sld [smem:[#allocation27_spill]]  ;;  %2313 = vmatpush3.bf16.xpose.msra.mxu0 %v1297_v31  ;;  %v1195_v39 = vsel %vm1139_vm5, %v2505_v34, 0  ;;  %v1246_v42 = vsel %vm1139_vm5, %v2507_v41, 0  ;;  %vm1339_vm6 = vcmask 130048   ;;  %vm1610_vm7 = vcmask 195584  }
 0x354   : > { %v1018_v7 = vld [vmem:[%s1017_s18] sm:$0xf]  ;;  %2324 = vmatprep.subr.bf16.mxu0 %v2714_v16  ;;  %s2718_s22 = smov 112   ;;  %s2719_s18 = smov 8   ;;  %vm2000_vm8 = vcmask 257024  }
 0x355   : > { %v3026_v8 = vunpack.c.l.bf16 %v1018_v7  ;;  %v2508_v7 = vld [vmem:[#allocation3] sm:$0xff]   ;;  %s2720_s13 = smov 16   ;;  %s3316_s20 = sld [smem:[#allocation32_spill]] }
 0x356   : > { %s3312_s1 = smov %s3311_s30  ;;  %v2502_v15 = vld [vmem:[%s3311_s30 + $0x8] sm:$0xff]   ;;  %s2717_s30 = smov 120  }
 0x357   : > { %v1023_v9 = vsel %vm1022_vm3, %v3026_v8, 0.0  ;;  %2287 = vmatpush3.bf16.msra.mxu1 %v2502_v15  ;;  %v2503_v17 = vld [vmem:[%s3312_s1] sm:$0xff]   ;;  %s2018_s2 = sshll.u32 %s717_s21, 4  ;;  %s2019_s2 = int_to_ptr.vmem [resolvable:$true] %s2018_s2 }
 0x358   : > { %1024 = vadd.xlane.f32.xlu0 %v1023_v9  ;;  %2288 = vmatprep.subr.bf16.mxu1 %v2714_v16  ;;  %v2172_v22 = vld [vmem:[%s3313_s4] ss:$0 sm:$0xff] }
 0x359   : > { %v2173_v24 = vld [vmem:[%s3314_s25] ss:$0 sm:$0xff] }
 0x35b   : > { %2289 = vmatpush3.bf16.msra.mxu1 %v2503_v17 }
 0x35c   : > { %2294 = vmatprep.subr.bf16.mxu1 %v2714_v16 }
 0x3e1   : > { %v1025_v10 = vpop.xlane.xlu0 %1024 }
 0x3e2   : > { %v1027_v11 = vmul.f32 0.03125, %v1025_v10 }
 0x3e4   : > { %v1028_v12 = vsub.f32 %v3026_v8, %v1027_v11 }
 0x3e6   : > { %v1029_v13 = vmul.f32 %v1028_v12, %v1028_v12 }
 0x3e8   : > { %v1030_v14 = vsel %vm1022_vm3, %v1029_v13, 0.0 }
 0x3e9   : > { %1031 = vadd.xlane.f32.xlu0 %v1030_v14 }
 0x472   : > { %v1032_v18 = vpop.xlane.xlu0 %1031 }
 0x473   : > { %v1033_v19 = vmul.f32 0.03125, %v1032_v18 }
 0x475   : > { %v1034_v20 = vadd.f32 1e-12, %v1033_v19 }
 0x477   : > { %2526 = vrsqrt.f32 %v1034_v20 }
 0x484   : > { %v2527_v21 = vpop.eup %2526 }
 0x485   : > { %v1036_v23 = vmul.f32 %v2527_v21, %v1028_v12  ;;  %v1679_v21 = vld [vmem:[%s2968_s5] sm:$0xf]  ;;  %s2220_s5 = sshll.u32 %s2690_s0, 1 }
 0x486   : > { %s2014_s4 = sadd.s32 %s2686_s29, %s2220_s5  ;;  %s3318_s29 = sand.u32 1, %s2678_s3  }
 0x487   : > { %v1043_v25 = vmul.f32 %v2172_v22, %v1036_v23  ;;  %v1680_v22 = vunpack.c.l.bf16 %v1679_v21  ;;  %s2221_s27 = sshll.u32 %s2014_s4, 6 }
 0x489   : > { %v1050_v27 = vadd.f32 %v2173_v24, %v1043_v25  ;;  %v1683_v25 = vsel %vm1022_vm3, %v1680_v22, 0.0 }
 0x48b   : > { %v1051_v28 = vpack.c.bf16 %v1050_v27, %v1050_v27 }
 0x48d   : > { %2291 = vmatmul.mubr.msk.bf16.vlgmr.msra.gmra.mxu1 %vm1022_vm3, %v1051_v28 }
 0x48e   : > { %2295 = vmatpush3.bf16.xpose.msra.mxu1 %v1144_v29  ;;  %2296 = vmatprep.mubr.msk.bf16.mxu1 %vm2715_vm4, %v2714_v16  ;;  %v2509_v29 = vld [vmem:[#allocation3 + $0x8] sm:$0xff]  }
 0x48f   : > { %2300 = vmatprep.subr.bf16.mxu1 %v2714_v16 }
 0x54d   : > { %v1112_v33 = vpop.f32.mrf.mxu1 }
 0x54e   : > { %v1113_v35 = vadd.f32 %v2174_v32, %v1112_v33  ;;  %v2510_v32 = vld [vmem:[#allocation3 + $0x10] sm:$0xff]  }
 0x54f   : > { %v2292_v36 = vpop.f32.mrf.mxu1 }
 0x550   : > { %v1118_v37 = vpack.c.bf16 %v1113_v35, %v1113_v35 }
 0x551   : > { %v1115_v38 = vpop.f32.mrf.mxu1 }
 0x552   : > { %1124 = vrot.lane.b32.xlu0 %v1118_v37, %s2716_s17  ;;  %1120 = vrot.lane.b32.xlu1 %v1118_v37, %s2717_s30  ;;  %s2721_s17 = smov 24   ;;  %s1777_s30 = sld [smem:[#allocation4]] }
 0x553   : > { %2297 = vmatmul.mubr.msk.bf16.vlgmr.msra.gmra.mxu1 %vm1139_vm5, %v1118_v37  ;;  %v2293_v40 = vpop.f32.mrf.mxu1 }
 0x554   : > { %2301 = vmatpush3.bf16.xpose.msra.mxu1 %v1195_v39  ;;  %2302 = vmatprep.mubr.msk.bf16.mxu1 %vm2715_vm4, %v2714_v16 }
 0x555   : > { %2306 = vmatprep.subr.bf16.mxu1 %v2714_v16 }
 0x556   : > { %1122 = vrot.lane.b32.xlu1 %v1118_v37, %s2718_s22  ;;  %s3315_s22 = sld [smem:[#allocation31_spill]] }
 0x5c4   : > { %v1125_v43 = vpop.permute.xlu0 %1124  ;;  %v1121_v44 = vpop.permute.xlu1 %1120 }
 0x5c5   : > { %2303 = vmatmul.mubr.msk.bf16.vlgmr.msra.gmra.mxu1 %vm1139_vm5, %v1121_v44  ;;  %2315 = vmatmul.mubr.msk.bf16.vlgmr.msra.gmra.mxu0 %vm1139_vm5, %v1125_v43 }
 0x5c6   : > { %2307 = vmatpush3.bf16.xpose.msra.mxu1 %v1246_v42  ;;  %2308 = vmatprep.mubr.msk.bf16.mxu1 %vm2715_vm4, %v2714_v16  ;;  %v2511_v42 = vld [vmem:[#allocation3 + $0x18] sm:$0xff]  }
 0x5c7   : > { %2318 = vmatprep.subr.bf16.mxu1 %v2714_v16  ;;  %2326 = vmatprep.mubr.msk.bf16.mxu0 %vm2715_vm4, %v2714_v16 }
 0x5c8   : > { %v1123_v45 = vpop.permute.xlu1 %1122  ;;  %2325 = vmatpush3.bf16.msra.mxu0 %v2509_v29 }
 0x5c9   : > { %2336 = vmatprep.subr.bf16.mxu0 %v2714_v16 }
 0x5cd   : > { %2309 = vmatmul.mubr.msk.bf16.vlgmr.msra.gmra.mxu1 %vm1139_vm5, %v1123_v45 }
 0x5ce   : > { %2320 = vmatprep.mubr.msk.bf16.mxu1 %vm2715_vm4, %v2714_v16  ;;  %2319 = vmatpush3.bf16.msra.mxu1 %v2508_v7 }
 0x5cf   : > { %2330 = vmatprep.subr.bf16.mxu1 %v2714_v16 }
 0x613   : > { %v1180_v46 = vpop.f32.mrf.mxu1 }
 0x614   : > { %v1340_v47 = vsel %vm1339_vm6, %v1180_v46, -inf }
 0x615   : > { %1341 = vmax.xlane.f32.xlu1 %v1340_v47  ;;  %v2298_v48 = vpop.f32.mrf.mxu1 }
 0x617   : > { %v1183_v49 = vpop.f32.mrf.mxu1 }
 0x619   : > { %v2299_v50 = vpop.f32.mrf.mxu1 }
 0x685   : > { %v1231_v51 = vpop.f32.mrf.mxu1  ;;  %v1333_v52 = vpop.f32.mrf.mxu0 }
 0x686   : > { %v1343_v53 = vsel %vm1339_vm6, %v1231_v51, -inf  ;;  %v1349_v0 = vsel %vm1339_vm6, %v1333_v52, -inf }
 0x687   : > { %v2316_v54 = vpop.f32.mrf.mxu0  ;;  %1344 = vmax.xlane.f32.xlu0 %v1343_v53  ;;  %v2304_v55 = vpop.f32.mrf.mxu1  ;;  %v2513_v53 = vld [vmem:[#allocation5] sm:$0xff]  }
 0x689   : > { %v1234_v56 = vpop.f32.mrf.mxu1  ;;  %v1336_v57 = vpop.f32.mrf.mxu0 }
 0x68b   : > { %v2305_v58 = vpop.f32.mrf.mxu1  ;;  %v2317_v59 = vpop.f32.mrf.mxu0 }
 0x68d   : > { %v1282_v60 = vpop.f32.mrf.mxu1 }
 0x68e   : > { %v1346_v61 = vsel %vm1339_vm6, %v1282_v60, -inf }
 0x68f   : > { %1347 = vmax.xlane.f32.xlu1 %v1346_v61  ;;  %v2310_v62 = vpop.f32.mrf.mxu1 }
 0x690   : > { %v2198_v62 = vld [vmem:[%s3256_s11] ss:$0 sm:$0xff] }
 0x691   : > { %v1285_v63 = vpop.f32.mrf.mxu1 }
 0x693   : > { %1350 = vmax.xlane.f32.xlu1 %v1349_v0  ;;  %v2311_v1 = vpop.f32.mrf.mxu1  ;;  %v2199_v0 = vld [vmem:[%s3257_s12] ss:$0 sm:$0xff] }
 0x69e   : > { %v1342_v2 = vpop.xlane.xlu1 %1341 }
 0x69f   : > { %v1352_v3 = vsub.f32 %v1180_v46, %v1342_v2 }
 0x6a1   : > { %v1356_v4 = vmul.f32 1.442695, %v1352_v3 }
 0x6a3   : > { %2528 = vpow2.f32 %v1356_v4  ;;  %v2514_v4 = vld [vmem:[%s3254_s9 + $0x8] sm:$0xff]  }
 0x6b0   : > { %v2529_v5 = vpop.eup %2528 }
 0x6b1   : > { %v1364_v6 = vsel %vm1339_vm6, %v2529_v5, 0.0 }
 0x6b2   : > { %1365 = vadd.xlane.f32.xlu1 %v1364_v6 }
 0x710   : > { %v1345_v9 = vpop.xlane.xlu0 %1344 }
 0x711   : > { %v1353_v10 = vsub.f32 %v1231_v51, %v1345_v9 }
 0x713   : > { %v1358_v11 = vmul.f32 1.442695, %v1353_v10 }
 0x715   : > { %2530 = vpow2.f32 %v1358_v11 }
 0x718   : > { %v1348_v12 = vpop.xlane.xlu1 %1347 }
 0x719   : > { %v1354_v13 = vsub.f32 %v1282_v60, %v1348_v12 }
 0x71b   : > { %v1360_v14 = vmul.f32 1.442695, %v1354_v13 }
 0x71c   : > { %v1351_v15 = vpop.xlane.xlu1 %1350 }
 0x71d   : > { %2532 = vpow2.f32 %v1360_v14  ;;  %v1355_v17 = vsub.f32 %v1333_v52, %v1351_v15  ;;  %v2512_v52 = vld [vmem:[#allocation5 + $0x8] sm:$0xff]  }
 0x71f   : > { %v1362_v18 = vmul.f32 1.442695, %v1355_v17 }
 0x721   : > { %2534 = vpow2.f32 %v1362_v18 }
 0x722   : > { %v2531_v19 = vpop.eup %2530 }
 0x723   : > { %v1367_v20 = vsel %vm1339_vm6, %v2531_v19, 0.0 }
 0x724   : > { %1368 = vadd.xlane.f32.xlu1 %v1367_v20 }
 0x72a   : > { %v2533_v23 = vpop.eup %2532 }
 0x72b   : > { %v1370_v24 = vsel %vm1339_vm6, %v2533_v23, 0.0 }
 0x72c   : > { %1371 = vadd.xlane.f32.xlu1 %v1370_v24 }
 0x72e   : > { %v2535_v26 = vpop.eup %2534 }
 0x72f   : > { %v1373_v27 = vsel %vm1339_vm6, %v2535_v26, 0.0 }
 0x730   : > { %1684 = vadd.xlane.f32.xlu1 %v1683_v25  ;;  %1374 = vadd.xlane.f32.xlu0 %v1373_v27 }
 0x73b   : > { %v1366_v28 = vpop.xlane.xlu1 %1365 }
 0x73c   : > { %2536 = vrcp.f32 %v1366_v28 }
 0x749   : > { %v2537_v30 = vpop.eup %2536 }
 0x74a   : > { %v1380_v31 = vmul.f32 %v2537_v30, %v2529_v5  ;;  %v2515_v5 = vld [vmem:[%s3254_s9] sm:$0xff]  }
 0x74c   : > { %v1384_v33 = vpack.c.bf16 %v1380_v31, %v1380_v31 }
 0x74e   : > { %2321 = vmatmul.mubr.msk.bf16.vlgmr.msra.gmra.mxu1 %vm1339_vm6, %v1384_v33 }
 0x74f   : > { %2331 = vmatpush3.bf16.msra.mxu1 %v2510_v32  ;;  %2332 = vmatprep.mubr.msk.bf16.mxu1 %vm2715_vm4, %v2714_v16 }
 0x750   : > { %2342 = vmatprep.subr.bf16.mxu1 %v2714_v16 }
 0x7ad   : > { %v1369_v34 = vpop.xlane.xlu1 %1368 }
 0x7ae   : > { %2538 = vrcp.f32 %v1369_v34  ;;  %v2194_v34 = vld [vmem:[%s3255_s10] ss:$0 sm:$0xff] }
 0x7b5   : > { %v1372_v35 = vpop.xlane.xlu1 %1371 }
 0x7b6   : > { %2540 = vrcp.f32 %v1372_v35 }
 0x7b9   : > { %v1375_v36 = vpop.xlane.xlu0 %1374  ;;  %v1685_v37 = vpop.xlane.xlu1 %1684 }
 0x7ba   : > { %2542 = vrcp.f32 %v1375_v36  ;;  %v1686_v38 = vmul.f32 0.03125, %v1685_v37  ;;  %v2200_v37 = vld [vmem:[%s3259_s14] ss:$0 sm:$0xff] }
 0x7bb   : > { %v2539_v39 = vpop.eup %2538 }
 0x7bc   : > { %v1687_v40 = vsub.f32 %v1680_v22, %v1686_v38  ;;  %v1381_v41 = vmul.f32 %v2539_v39, %v2531_v19  ;;  %v1778_v38 = vstv %s1777_s30  ;;  %s2602_s30 = scalar_lea.vmem %s2019_s2, 64 }
 0x7bd   : > { %p2603_p1 = scmp.ne.s32.totalorder %s2019_s2, %s2602_s30 }
 0x7be   : > { %v1385_v43 = vpack.c.bf16 %v1381_v41, %v1381_v41  ;;  %v1688_v44 = vmul.f32 %v1687_v40, %v1687_v40 }
 0x7bf   : > { %p2604_p11 = pnand %p2603_p1, %p2888_p3 }
 0x7c0   : > { %2327 = vmatmul.mubr.msk.bf16.vlgmr.msra.gmra.mxu0 %vm1339_vm6, %v1385_v43  ;;  %v1689_v45 = vsel %vm1022_vm3, %v1688_v44, 0.0 }
 0x7c1   : > { %1690 = vadd.xlane.f32.xlu0 %v1689_v45  ;;  %2337 = vmatpush3.bf16.msra.mxu0 %v2511_v42  ;;  %p2605_p13 = pneg %p2604_p11 }
 0x7c2   : > { %2338 = vmatprep.mubr.msk.bf16.mxu0 %vm2715_vm4, %v2714_v16  ;;  %2350 = vmatprep.subr.bf16.mxu0 %v2714_v16 }
 0x7c3   : > { %v2541_v46 = vpop.eup %2540 }
 0x7c4   : > { %v1382_v47 = vmul.f32 %v2541_v46, %v2533_v23 }
 0x7c6   : > { %v1386_v48 = vpack.c.bf16 %v1382_v47, %v1382_v47 }
 0x7c7   : > { %v2543_v49 = vpop.eup %2542 }
 0x7c8   : > { %2333 = vmatmul.mubr.msk.bf16.vlgmr.msra.gmra.mxu1 %vm1339_vm6, %v1386_v48  ;;  %v1383_v50 = vmul.f32 %v2543_v49, %v2535_v26 }
 0x7c9   : > { %2346 = vmatprep.mubr.msk.bf16.mxu1 %vm2715_vm4, %v2714_v16  ;;  %2343 = vmatpush3.bf16.msra.mxu1 %v2514_v4  ;;  %v2523_v4 = vld [vmem:[%s3264_s19 + $0x10] sm:$0xff]  }
 0x7ca   : > { %v1387_v51 = vpack.c.bf16 %v1383_v50, %v1383_v50  ;;  %2344 = vmatprep.subr.bf16.mxu1 %v2714_v16 }
 0x7cc   : > { %2339 = vmatmul.mubr.msk.bf16.vlgmr.msra.gmra.mxu0 %vm1339_vm6, %v1387_v51 }
 0x7cd   : > { %2354 = vmatprep.mubr.msk.bf16.mxu0 %vm2715_vm4, %v2714_v16  ;;  %2351 = vmatpush3.bf16.msra.mxu0 %v2512_v52  ;;  %v2516_v52 = vld [vmem:[#allocation8 + $0x8] sm:$0xff]  }
 0x7ce   : > { %2352 = vmatprep.subr.bf16.mxu0 %v2714_v16  ;;  %2345 = vmatpush3.bf16.msra.mxu1 %v2515_v5  ;;  %v2524_v5 = vld [vmem:[%s3264_s19 + $0x8] sm:$0xff]  }
 0x7cf   : > { %2358 = vmatprep.subr.bf16.mxu1 %v2714_v16 }
 0x7d1   : > { %2353 = vmatpush3.bf16.msra.mxu0 %v2513_v53 }
 0x7d2   : > { %2366 = vmatprep.subr.bf16.mxu0 %v2714_v16 }
 0x80e   : > { %v1439_v54 = vpop.f32.mrf.mxu1 }
 0x80f   : > { %v1592_v24 = vpack.c.bf16 %v1439_v54, %v1439_v54 }
 0x810   : > { %v2322_v55 = vpop.f32.mrf.mxu1 }
 0x812   : > { %v1442_v56 = vpop.f32.mrf.mxu1 }
 0x814   : > { %v2323_v57 = vpop.f32.mrf.mxu1 }
 0x815   : > { %v2204_v57 = vld [vmem:[%s3260_s15] ss:$0 sm:$0xff] }
 0x84a   : > { %v1691_v58 = vpop.xlane.xlu0 %1690 }
 0x84b   : > { %v1692_v59 = vmul.f32 0.03125, %v1691_v58 }
 0x84d   : > { %v1693_v60 = vadd.f32 1e-12, %v1692_v59  ;;  %v2205_v59 = vld [vmem:[%s3261_s16] ss:$0 sm:$0xff] }
 0x84f   : > { %2544 = vrsqrt.f32 %v1693_v60 }
 0x85c   : > { %v2545_v61 = vpop.eup %2544 }
 0x85d   : > { %v1695_v63 = vmul.f32 %v2545_v61, %v1687_v40 }
 0x85f   : > { %v1702_v1 = vmul.f32 %v2198_v62, %v1695_v63  ;;  %v2518_v63 = vld [vmem:[%s3264_s19 + $0x38] sm:$0xff]  }
 0x861   : > { %v1709_v2 = vadd.f32 %v2199_v0, %v1702_v1  ;;  %v2519_v0 = vld [vmem:[%s3264_s19 + $0x30] sm:$0xff]   ;;  %v2520_v1 = vld [vmem:[%s3264_s19 + $0x28] sm:$0xff]  }
 0x863   : > { %v1710_v3 = vpack.c.bf16 %v1709_v2, %v1709_v2  ;;  %v2521_v2 = vld [vmem:[%s3264_s19 + $0x20] sm:$0xff]  }
 0x865   : > { %2355 = vmatmul.mubr.msk.bf16.vlgmr.msra.gmra.mxu0 %vm1022_vm3, %v1710_v3  ;;  %v2522_v3 = vld [vmem:[%s3264_s19 + $0x18] sm:$0xff]  }
 0x866   : > { %2382 = vmatprep.mubr.msk.bf16.mxu0 %vm2715_vm4, %v2714_v16  ;;  %2367 = vmatpush3.bf16.msra.mxu0 %v2518_v63 }
 0x867   : > { %2368 = vmatprep.subr.bf16.mxu0 %v2714_v16 }
 0x86a   : > { %2369 = vmatpush3.bf16.msra.mxu0 %v2519_v0 }
 0x86b   : > { %2370 = vmatprep.subr.bf16.mxu0 %v2714_v16 }
 0x86e   : > { %2371 = vmatpush3.bf16.msra.mxu0 %v2520_v1 }
 0x86f   : > { %2372 = vmatprep.subr.bf16.mxu0 %v2714_v16 }
 0x872   : > { %2373 = vmatpush3.bf16.msra.mxu0 %v2521_v2 }
 0x873   : > { %2374 = vmatprep.subr.bf16.mxu0 %v2714_v16 }
 0x876   : > { %2375 = vmatpush3.bf16.msra.mxu0 %v2522_v3 }
 0x877   : > { %2376 = vmatprep.subr.bf16.mxu0 %v2714_v16 }
 0x87a   : > { %2377 = vmatpush3.bf16.msra.mxu0 %v2523_v4 }
 0x87b   : > { %2378 = vmatprep.subr.bf16.mxu0 %v2714_v16 }
 0x87e   : > { %2379 = vmatpush3.bf16.msra.mxu0 %v2524_v5 }
 0x87f   : > { %2380 = vmatprep.subr.bf16.mxu0 %v2714_v16 }
 0x880   : > { %v1488_v6 = vpop.f32.mrf.mxu0 }
 0x881   : > { %v1593_v7 = vpack.c.bf16 %v1488_v6, %v1488_v6  ;;  %v2525_v6 = vld [vmem:[%s3264_s19] sm:$0xff]  }
 0x882   : > { %v2328_v9 = vpop.f32.mrf.mxu0  ;;  %2381 = vmatpush3.bf16.msra.mxu0 %v2525_v6 }
 0x883   : > { %1597 = vrot.lane.b32.xlu1 %v1593_v7, %s2719_s18  ;;  %v2206_v7 = vld [vmem:[%s3315_s22] ss:$0 sm:$0xff]  ;;  %s3317_s18 = sld [smem:[#allocation33_spill]]  ;;  %s2722_s22 = smov [#allocation10]  }
 0x884   : > { %v1491_v10 = vpop.f32.mrf.mxu0  ;;  %s2606_s5 = sshll.u32 %s2722_s22, 4  ;;  %s2607_s5 = int_to_ptr.vmem [resolvable:$false] %s2606_s5 }
 0x885   : > { %s2608_s24 = scalar_lea.vmem %s2607_s5, 128  ;;  %p2609_p2 = scmp.lt.s32.totalorder %s2019_s2, %s2607_s5 }
 0x886   : > { %v2329_v11 = vpop.f32.mrf.mxu0  ;;  %p2610_p4 = scmp.lt.s32.totalorder %s2608_s24, %s2602_s30 }
 0x888   : > { %v1537_v12 = vpop.f32.mrf.mxu1  ;;  %p2611_p5 = por %p2610_p4, %p2609_p2 }
 0x889   : > { %v1594_v13 = vpack.c.bf16 %v1537_v12, %v1537_v12 }
 0x88a   : > { %v2334_v14 = vpop.f32.mrf.mxu1  ;;  %p2612_p6 = pnand %p2611_p5, %p2605_p13 }
 0x88b   : > { %1600 = vrot.lane.b32.xlu0 %v1594_v13, %s2720_s13  ;;  %s3195_s13 = scalar_lea.hbm %s3317_s18, %s2221_s27 }
 0x88c   : > { %v1540_v15 = vpop.f32.mrf.mxu1  ;;  %v1586_v17 = vpop.f32.mrf.mxu0 }
 0x88d   : > { %v1595_v18 = vpack.c.bf16 %v1586_v17, %v1586_v17 }
 0x88e   : > { %v2335_v19 = vpop.f32.mrf.mxu1  ;;  %v2340_v20 = vpop.f32.mrf.mxu0 }
 0x88f   : > { %1603 = vrot.lane.b32.xlu1 %v1595_v18, %s2721_s17  ;;  %s2003_s17 = scalar_lea.sflag [#allocation7], %s3318_s29 }
 0x890   : > { %v1589_v21 = vpop.f32.mrf.mxu0 }
 0x892   : > { %v2341_v22 = vpop.f32.mrf.mxu0 }
 0x8f5   : > { %v1598_v23 = vpop.permute.xlu1 %1597 }
 0x8f6   : > { %v1607_v26 = vsel %vm1139_vm5, %v1592_v24, %v1598_v23  ;;  %v2210_v24 = vld [vmem:[%s3316_s20] ss:$0 sm:$0xff] }
 0x8fd   : > { %v1601_v25 = vpop.permute.xlu0 %1600 }
 0x8fe   : > { %v1609_v27 = vsel %vm1339_vm6, %v1607_v26, %v1601_v25 }
 0x901   : > { %v1604_v28 = vpop.permute.xlu1 %1603 }
 0x902   : > { %v1612_v29 = vsel %vm1610_vm7, %v1609_v27, %v1604_v28 }
 0x903   : > { %2347 = vmatmul.mubr.msk.bf16.vlgmr.msra.gmra.mxu1 %vm1022_vm3, %v1612_v29 }
 0x904   : > { %2362 = vmatprep.mubr.msk.bf16.mxu1 %vm2715_vm4, %v2714_v16  ;;  %2359 = vmatpush3.bf16.msra.mxu1 %v2516_v52 }
 0x905   : > { %2360 = vmatprep.subr.bf16.mxu1 %v2714_v16 }
 0x925   : > { %v1771_v30 = vpop.f32.mrf.mxu0 }
 0x926   : > { %v1772_v42 = vadd.f32 %v2200_v37, %v1771_v30 }
 0x927   : > { %v2356_v31 = vpop.f32.mrf.mxu0 }
 0x929   : > { %v1774_v32 = vpop.f32.mrf.mxu0 }
 0x92b   : > { %v2357_v33 = vpop.f32.mrf.mxu0 }
 0x9c3   : > { %v1672_v35 = vpop.f32.mrf.mxu1 }
 0x9c4   : > { %v1673_v36 = vadd.f32 %v2194_v34, %v1672_v35 }
 0x9c5   : > { %v2348_v39 = vpop.f32.mrf.mxu1 }
 0x9c6   : > { %v1678_v40 = vadd.f32 %v1673_v36, %v3026_v8  ;;  %v2517_v8 = vld [vmem:[#allocation8] sm:$0xff]  }
 0x9c7   : > { %v1675_v41 = vpop.f32.mrf.mxu1  ;;  %2361 = vmatpush3.bf16.msra.mxu1 %v2517_v8 }
 0x9c8   : > { %v1779_v43 = vmul.f32 %v1778_v38, %v1678_v40 }
 0x9c9   : > { %v2349_v44 = vpop.f32.mrf.mxu1 }
 0x9ca   : > { %v3136_v45 = vadd.f32 %v1779_v43, %v1772_v42 }
 0x9cc   : > { %v1783_v46 = vsel %vm1022_vm3, %v3136_v45, 0.0 }
 0x9cd   : > { %1784 = vadd.xlane.f32.xlu1 %v1783_v46 }
 0xa56   : > { %v1785_v47 = vpop.xlane.xlu1 %1784 }
 0xa57   : > { %v1786_v48 = vmul.f32 0.03125, %v1785_v47 }
 0xa59   : > { %v1787_v49 = vsub.f32 %v3136_v45, %v1786_v48 }
 0xa5b   : > { %v1788_v50 = vmul.f32 %v1787_v49, %v1787_v49 }
 0xa5d   : > { %v1789_v51 = vsel %vm1022_vm3, %v1788_v50, 0.0 }
 0xa5e   : > { %1790 = vadd.xlane.f32.xlu0 %v1789_v51 }
 0xae7   : > { %v1791_v53 = vpop.xlane.xlu0 %1790 }
 0xae8   : > { %v1792_v54 = vmul.f32 0.03125, %v1791_v53 }
 0xaea   : > { %v1793_v55 = vadd.f32 1e-12, %v1792_v54 }
 0xaec   : > { %2546 = vrsqrt.f32 %v1793_v55 }
 0xaf9   : > { %v2547_v56 = vpop.eup %2546 }
 0xafa   : > { %v1795_v58 = vmul.f32 %v2547_v56, %v1787_v49 }
 0xafc   : > { %v1802_v60 = vmul.f32 %v2204_v57, %v1795_v58 }
 0xafe   : > { %v1809_v61 = vadd.f32 %v2205_v59, %v1802_v60 }
 0xb00   : > { %v1810_v62 = vpack.c.bf16 %v1809_v61, %v1809_v61 }
 0xb02   : > { %2363 = vmatmul.mubr.msk.bf16.vlgmr.msra.gmra.mxu1 %vm1022_vm3, %v1810_v62 }
 0xbc2   : > { %v1871_v9 = vpop.f32.mrf.mxu1 }
 0xbc3   : > { %v1872_v10 = vadd.f32 %v2206_v7, %v1871_v9 }
 0xbc4   : > { %v2364_v11 = vpop.f32.mrf.mxu1 }
 0xbc5   : > { %v1877_v12 = vmul.f32 %v1872_v10, %v1872_v10 }
 0xbc6   : > { %v1874_v13 = vpop.f32.mrf.mxu1 }
 0xbc7   : > { %v1878_v14 = vmul.f32 %v1877_v12, %v1872_v10 }
 0xbc8   : > { %v2365_v15 = vpop.f32.mrf.mxu1 }
 0xbc9   : > { %v1879_v17 = vmul.f32 0.044715, %v1878_v14 }
 0xbcb   : > { %v1880_v18 = vadd.f32 %v1879_v17, %v1872_v10 }
 0xbcd   : > { %v1881_v19 = vmul.f32 0.7978846, %v1880_v18 }
 0xbcf   : > { %2548 = vtanh.f32 %v1881_v19 }
 0xbdc   : > { %v2549_v16 = vpop.eup %2548 }
 0xbdd   : > { %v1883_v20 = vadd.f32 1.0, %v2549_v16 }
 0xbdf   : > { %v1884_v21 = vmul.f32 0.5, %v1883_v20 }
 0xbe1   : > { %v1885_v22 = vmul.f32 %v1884_v21, %v1872_v10 }
 0xbe3   : > { %v1886_v23 = vpack.c.bf16 %v1885_v22, %v1885_v22 }
 0xbe5   : > { %2383 = vmatmul.mubr.bf16.vlgmr.msra.gmra.mxu0 %v1886_v23 }
 0xca5   : > { %v1992_v25 = vpop.f32.mrf.mxu0 }
 0xca6   : > { %v1993_v26 = vadd.f32 %v2210_v24, %v1992_v25 }
 0xca7   : > { %v2384_v27 = vpop.f32.mrf.mxu0 }
 0xca8   : > { %v1998_v28 = vadd.f32 %v1993_v26, %v3136_v45 }
 0xca9   : > { %v1995_v29 = vpop.f32.mrf.mxu0 }
 0xcaa   : > { %v1999_v30 = vpack.c.bf16 %v1998_v28, %v1998_v28 }
 0xcab   : > { %v2385_v31 = vpop.f32.mrf.mxu0 }
 0xcac   : > { %2001 = vst.msk [vmem:[%s717_s21] sm:$0xf] %vm2000_vm8, %v1999_v30 }
 0xcad   : > { %2615 = shalt.err (!%p2612_p6)
}
 0xcae   : > { %s2616_s21 = scalar_lea.hbm %s3195_s13, 64  ;;  %s2620_s20 = scalar_lea.hbm %s3317_s18, 256 }
 0xcaf   : > { %p2617_p7 = scmp.ne.s32.totalorder %s3195_s13, %s2616_s21  ;;  %p2621_p0 = scmp.lt.s32.totalorder %s3195_s13, %s3317_s18 }
 0xcb0   : > { %p2622_p12 = scmp.lt.s32.totalorder %s2620_s20, %s2616_s21 }
 0xcb1   : > { %p2618_p9 = pnand %p2617_p7, %p2888_p3 }
 0xcb2   : > { %p2623_p1 = por %p2622_p12, %p2621_p0 }
 0xcb3   : > { %p2619_p10 = pneg %p2618_p9 }
 0xcb5   : > { %p2624_p11 = pnand %p2623_p1, %p2619_p10 }
 0xcb7   : > { %2627 = shalt.err (!%p2624_p11)
}
 0xcb8   : > { %2394 = dma.vmem_to_hbm [thread:$0]  (%p2888_p3), %s2019_s2, 64, %s3195_s13, %s2003_s17  }
 0xcb9 PF: > { %s3319_s25 = sld [smem:[#allocation18_spill]] }
 0xcba   : > { %s3320_s0 = sld [smem:[#allocation14_spill]] }
 0xcbf   : > { %p2411_p13 = scmp.ge.s32.totalorder %s3319_s25, 2 }
 0xcc0   : > { %s2030_s30 = sand.u32 1, %s3320_s0  }
 0xcc1   : > { %p2404_p2 = pnand %p2411_p13, %p2897_p8  ;;  %s2031_s22 = scalar_lea.sflag [#allocation7], %s2030_s30 }
 0xcc3   : > { %p2405_p4 = pneg %p2404_p2 }
 0xcc5   : > { %2669 = dma.done.wait (%p2405_p4), %s2031_s22, 64  }
 0xcc6   : > { %2671 = vsyncadd (%p2405_p4), %s2031_s22, 4294967232  ;;  %s37_s5 = sadd.s32 1, %s3319_s25   ;;  %s3322_s24 = sld [smem:[#allocation15_spill]] }
 0xcc7   : > { %p34_p5 = scmp.ge.s32.totalorder %s37_s5, 6   ;;  %s3323_s28 = sld [smem:[#allocation22_spill]] }
 0xcc8   : > { %s3324_s29 = sld [smem:[#allocation16_spill]]  ;;  %s3328_s27 = smov %s2678_s3 }
 0xcc9   : > { %s3325_s0 = sld [smem:[#allocation17_spill]]  ;;  %36 = sbr.rel (!%p34_p5) target bundleno = 26 (0x1a), region = 156 }
 0xcca   : > { %s3326_s4 = sld [smem:[#allocation19_spill]] }
 0xccb   : > { %s3327_s30 = sld [smem:[#allocation20_spill]] }
 0xccc   : > { %s3329_s3 = smov %s3322_s24 }
 0xcce   :  { %2036 = vsyncpa [#allocation6], 1 }
 0xccf   :  { %2038 = vsyncpa [#allocation6 + $0x1], 1 }
 0xcd0   :  { %2039 = vsyncpa [#allocation9], 1 }
 0xcd1   :  { %2040 = vsyncpa [#allocation7], 1 }
 0xcd2   :  { %2042 = vsyncpa [#allocation7 + $0x1], 1 }

// kernel: tpu_custom_call.1
= control target key start
LH: loop header
LB: loop body
LE: loop exit
PB: predicated region body
PF: predicated region fallthrough
CT: control target
= control target key end

     0   :  { %s3242_s0 = inlined_call_operand.<no memory space> [shape: f32[1], index: 0, kind: input, shape index: {}]   ;;  %s3243_s1 = inlined_call_operand.vmem [shape: bf16[2,16,32], index: 1, kind: input, shape index: {}]   ;;  %s3244_s2 = inlined_call_operand.vmem [shape: bf16[2,16,32], index: 2, kind: input, shape index: {}]   ;;  %s3245_s3 = inlined_call_operand.vmem [shape: f32[1,32], index: 3, kind: input, shape index: {}]   ;;  %s3246_s4 = inlined_call_operand.vmem [shape: f32[1,32], index: 4, kind: input, shape index: {}]   ;;  %s3247_s5 = inlined_call_operand.vmem [shape: bf16[32,32], index: 5, kind: input, shape index: {}]   ;;  %s3248_s6 = inlined_call_operand.vmem [shape: f32[1,32], index: 6, kind: input, shape index: {}]   ;;  %s3249_s7 = inlined_call_operand.vmem [shape: bf16[32,64], index: 7, kind: input, shape index: {}]   ;;  %s3250_s8 = inlined_call_operand.vmem [shape: f32[1,64], index: 8, kind: input, shape index: {}]   ;;  %s3251_s9 = inlined_call_operand.vmem [shape: bf16[32,32], index: 9, kind: input, shape index: {}]   ;;  %s3252_s10 = inlined_call_operand.vmem [shape: f32[1,32], index: 10, kind: input, shape index: {}]   ;;  %s3253_s11 = inlined_call_operand.vmem [shape: f32[1,32], index: 11, kind: input, shape index: {}]   ;;  %s3254_s12 = inlined_call_operand.vmem [shape: f32[1,32], index: 12, kind: input, shape index: {}]   ;;  %s3255_s13 = inlined_call_operand.hbm [shape: bf16[32,32], index: 13, kind: input, shape index: {}]   ;;  %s3256_s14 = inlined_call_operand.vmem [shape: f32[1,32], index: 14, kind: input, shape index: {}]   ;;  %s3257_s15 = inlined_call_operand.vmem [shape: f32[1,32], index: 15, kind: input, shape index: {}]   ;;  %s3258_s16 = inlined_call_operand.vmem [shape: f32[1,32], index: 16, kind: input, shape index: {}]   ;;  %s3259_s17 = inlined_call_operand.hbm [shape: bf16[32,128], index: 17, kind: input, shape index: {}]   ;;  %s3260_s18 = inlined_call_operand.vmem [shape: f32[1,128], index: 18, kind: input, shape index: {}]   ;;  %s3261_s19 = inlined_call_operand.vmem [shape: bf16[128,32], index: 19, kind: input, shape index: {}]   ;;  %s3262_s20 = inlined_call_operand.vmem [shape: f32[1,32], index: 20, kind: input, shape index: {}]   ;;  %s3263_s21 = inlined_call_operand.hbm [shape: bf16[2,16,32], index: 21, kind: output, shape index: {}]  }
   0x1   :  { %3276 = sst [smem:[#allocation23_spill]] %s3242_s0 }
   0x2   :  { %3277 = sst [smem:[#allocation24_spill]] %s3243_s1 }
   0x3   :  { %3278 = sst [smem:[#allocation25_spill]] %s3244_s2 }
   0x4   :  { %3279 = sst [smem:[#allocation26_spill]] %s3245_s3 }
   0x5   :  { %3280 = sst [smem:[#allocation27_spill]] %s3246_s4 }
   0x6   :  { %3281 = sst [smem:[#allocation28_spill]] %s3247_s5 }
   0x7   :  { %3282 = sst [smem:[#allocation29_spill]] %s3255_s13 }
   0x8   :  { %3283 = sst [smem:[#allocation30_spill]] %s3259_s17 }
   0x9   :  { %3284 = sst [smem:[#allocation31_spill]] %s3260_s18 }
   0xa   :  { %3285 = sst [smem:[#allocation32_spill]] %s3262_s20 }
   0xb   :  { %3286 = sst [smem:[#allocation33_spill]] %s3263_s21 }
   0xc   :  { %s3287_s26 = sld [smem:[#allocation23_spill]] }
  0x12   :  { %26 = sst [smem:[#allocation4]] %s3287_s26 }
  0x13   :  { %27 = vsyncpa [#allocation6], 0 }
  0x14   :  { %28 = vsyncpa [#allocation9], 0 }
  0x15   :  { %29 = vsyncpa [#allocation7], 0 }
  0x16   :  { %31 = vsyncpa [#allocation7 + $0x1], 0  ;;  %s2833_s27 = smov 0   ;;  %s2835_s3 = smov 0  }
  0x17   :  { %s2837_s28 = smov 0   ;;  %s2839_s29 = smov 0  }
  0x18   :  { %s2841_s0 = smov 0   ;;  %s2843_s4 = smov 0  }
  0x19   :  { %s2845_s30 = smov 0   ;;  %s2847_s5 = smov 0  }
  0x1a LB: > { %3288 = sst [smem:[#allocation14_spill]] %s2671_s27  ;;  %s2132_s22 = sadd.s32 4294967295, %s2699_s5   ;;  %s2699_s5 = sphi %s2847_s5, %s37_s5   ;;  %s2695_s30 = sphi %s2845_s30, %s3324_s30   ;;  %s2691_s4 = sphi %s2843_s4, %s3323_s4   ;;  %s2687_s0 = sphi %s2841_s0, %s3322_s0   ;;  %s2683_s29 = sphi %s2839_s29, %s3321_s29   ;;  %s2679_s28 = sphi %s2837_s28, %s3320_s28   ;;  %s2675_s3 = sphi %s2835_s3, %s3326_s3   ;;  %s2671_s27 = sphi %s2833_s27, %s3325_s27  }
  0x1b   : > { %3289 = sst [smem:[#allocation15_spill]] %s2679_s28  ;;  %s2133_s23 = sadd.s32 4294967294, %s2699_s5  }
  0x1c   : > { %3290 = sst [smem:[#allocation16_spill]] %s2691_s4  ;;  %s46_s1 = sadd.s32 1, %s2691_s4 }
  0x1d   : > { %3291 = sst [smem:[#allocation17_spill]] %s2695_s30  ;;  %s49_s24 = sadd.s32 1, %s2695_s30 }
  0x1e   : > { %3292 = sst [smem:[#allocation18_spill]] %s2699_s5  ;;  %p47_p0 = scmp.ge.s32.totalorder %s46_s1, 2 }
  0x1f   : > { %s511_s2 = sadd.s32 1, %s2679_s28  ;;  %p521_p1 = scmp.ne.s32.totalorder %s2679_s28, %s2675_s3 }
  0x20   : > { %p522_p2 = scmp.eq.s32.totalorder %s2132_s22, 3  ;;  %s3328_s1 = smov (%p47_p0, %s46_s1), 0 }
  0x21   : > { %3293 = sst [smem:[#allocation19_spill]] %s3328_s1  ;;  %s3330_s24 = smov (!%p47_p0, %s49_s24), %s2695_s30 }
  0x22   : > { %s507_s25 = ssub.s32 %s2691_s4, %s3328_s1  ;;  %p2885_p3 = por %p522_p2, %p521_p1 }
  0x23   : > { %p51_p4 = scmp.ge.s32.totalorder %s3330_s24, 2  ;;  %p527_p5 = scmp.ne.s32.totalorder %s2675_s3, %s2671_s27 }
  0x24   : > { %p528_p6 = scmp.eq.s32.totalorder %s2133_s23, 3  ;;  %p2134_p7 = scmp.ge.s32.totalorder %s2699_s5, 1 }
  0x25   : > { %s3332_s24 = smov (%p51_p4, %s3330_s24), 0  ;;  %p535_p9 = scmp.lt.s32.totalorder %s2699_s5, 5 }
  0x26   : > { %3295 = sst [smem:[#allocation20_spill]] %s3332_s24  ;;  %p2894_p8 = por %p528_p6, %p527_p5 }
  0x27   : > { %s506_s20 = ssub.s32 %s2695_s30, %s3332_s24  ;;  %p2901_p10 = pnand %p2134_p7, %p535_p9 }
  0x28   : > { %s3296_s21 = scalar_select %p2894_p8, 1, 0 }
  0x29   : > { %s508_s18 = sor.u32 %s507_s25, %s506_s20  ;;  %p2905_p12 = scmp.eq.s32.totalorder %s2132_s22, 0 }
  0x2a   : > { %3297 = sst [smem:[#allocation21_spill]] %s3296_s21  ;;  %p509_p11 = scmp.eq.s32.totalorder %s508_s18, 0 }
  0x2b   : > { %p2393_p13 = pneg %p2901_p10  ;;  %s2701_s27 = smov [#allocation5]  }
  0x2c   : > { %s2912_s23 = scalar_select %p509_p11, %s2679_s28, %s511_s2  }
  0x2d   : > { %s580_s21 = sshll.u32 %s2701_s27, 4  ;;  %p2916_p0 = pnand %p2905_p12, %p2393_p13  ;;  %s581_s21 = int_to_ptr.vmem [resolvable:$true] %s580_s21 }
  0x2e   : > { %3300 = sst [smem:[#allocation22_spill]] %s2912_s23  ;;  %s2558_s18 = scalar_lea.vmem %s581_s21, 256 }
  0x2f   : > { %p2549_p1 = pneg %p2916_p0  ;;  %p2559_p2 = scmp.ne.s32.totalorder %s581_s21, %s2558_s18 }
  0x30   : > { %p2566_p6 = scmp.lt.s32.totalorder %s581_s21, %s581_s21  ;;  %p2567_p7 = scmp.lt.s32.totalorder %s2558_s18, %s2558_s18 }
  0x31   : > { %p2561_p4 = pnand %p2559_p2, %p2549_p1 }
  0x32   : > { %p2568_p9 = por %p2567_p7, %p2566_p6 }
  0x33   : > { %p2562_p5 = pneg %p2561_p4 }
  0x35   : > { %p2569_p11 = pnand %p2568_p9, %p2562_p5 }
  0x37   : > { %2572 = shalt.err (!%p2569_p11)
}
  0x38   : > { %s2702_s27 = smov 64   ;;  %s2703_s22 = smov 4  }
  0x39   : > { %s3302_s13 = sld [smem:[#allocation29_spill]]  ;;  %s2704_s24 = smov [#allocation8]  }
  0x3a   : > { %s602_s30 = sshll.u32 %s2704_s24, 4  ;;  %s603_s30 = int_to_ptr.vmem [resolvable:$true] %s602_s30 }
  0x3b   : > { %s2584_s23 = scalar_lea.vmem %s603_s30, 256  ;;  %p2592_p5 = scmp.lt.s32.totalorder %s603_s30, %s603_s30 }
  0x3c   : > { %p2585_p13 = scmp.ne.s32.totalorder %s603_s30, %s2584_s23  ;;  %p2593_p6 = scmp.lt.s32.totalorder %s2584_s23, %s2584_s23 }
  0x3e   : > { %p2587_p2 = pnand %p2585_p13, %p2549_p1  ;;  %p2594_p7 = por %p2593_p6, %p2592_p5 }
  0x3f   : > { %2396 = dma.hbm_to_vmem [thread:$0]  (!%p2916_p0), %s3302_s13, 256, %s581_s21, [#allocation6], %s2702_s27, %s2702_s27, %s2703_s22  }
  0x40   : > { %p2588_p4 = pneg %p2587_p2 }
  0x42   : > { %p2595_p9 = pnand %p2594_p7, %p2588_p4 }
  0x44   : > { %2598 = shalt.err (!%p2595_p9)
}
  0x45   : > { %s3303_s17 = sld [smem:[#allocation30_spill]] }
  0x47   : > { %646 = sbr.rel (%p2901_p10) target bundleno = 3257 (0xcb9), region = 104 }
  0x4b   : > { %2399 = dma.hbm_to_vmem [thread:$0]  (!%p2916_p0), %s3303_s17, 256, %s603_s30, [#allocation9], %s2702_s27, %s2702_s27, %s2703_s22  }
  0x4c   : > { %2658 = dma.done.wait (%p2905_p12), [#allocation6], 256  }
  0x4d   : > { %2660 = vsyncadd (%p2905_p12), [#allocation6], 4294967040 }
  0x4e   : > { %2662 = dma.done.wait (%p2905_p12), [#allocation9], 256  }
  0x4f   : > { %2664 = vsyncadd (%p2905_p12), [#allocation9], 4294967040  ;;  %s3275_s21 = sand.u32 1, %s2675_s3   ;;  %p718_p10 = scmp.lt.s32.totalorder %s2687_s0, 1 }
  0x50   : > { %s2952_s28 = sshll.u32 %s3275_s21, 2  ;;  %p725_p0 = scmp.lt.s32.totalorder %s2683_s29, 1 }
  0x51   : > { %s719_s30 = scalar_select %p718_p10, %s2687_s0, 1 }
  0x52   : > { %s726_s1 = scalar_select %p725_p0, %s2683_s29, 1 }
  0x53   : > { %s2221_s24 = sshll.u32 %s719_s30, 3  ;;  %s2144_s23 = sshll.u32 %s719_s30, 1 }
  0x54   : > { %s3304_s27 = sld [smem:[#allocation24_spill]]  ;;  %s728_s2 = sadd.s32 %s2144_s23, %s726_s1 }
  0x55   : > { %s2145_s25 = sshll.u32 %s728_s2, 2  ;;  %s3305_s17 = sld [smem:[#allocation25_spill]] }
  0x56   : > { %s717_s21 = scalar_lea.vmem [#allocation10], %s2952_s28  ;;  %p2146_p12 = scmp.ne.s32.totalorder %s2683_s29, 0 }
  0x57   : > { %s2708_s23 = smov (!%p2146_p12), 112   ;;  %s2709_s20 = smov (!%p2146_p12), 104  }
  0x58   : > { %735 = sbr.rel (%p2146_p12) target bundleno = 848 (0x350), region = 116  ;;  %s2710_s4 = smov (!%p2146_p12), 96  }
  0x5a   : > { %s2960_s22 = scalar_lea.vmem %s3304_s27, %s2221_s24  ;;  %s2707_s24 = smov (!%p2146_p12), 120  }
  0x5b   : > { %s2965_s5 = scalar_lea.vmem %s3305_s17, %s2145_s25  ;;  %s3306_s25 = sld [smem:[#allocation26_spill]] (!%p2146_p12) }
  0x5c   : > { %s3307_s17 = sld [smem:[#allocation27_spill]] (!%p2146_p12) }
  0x5d   : > { %v736_v0 = vld [vmem:[%s2960_s22] sm:$0xff]   ;;  %vm740_vm0 = vcmask 261120   ;;  %v2491_v15 = vld [vmem:[%s3249_s7 + $0x8] sm:$0xff]   ;;  %v2705_v17 = vmov 0.0   ;;  %vm2706_vm1 = vmmov 0   ;;  %vm847_vm2 = vcmask 60416  }
  0x5e   : > { %v737_v1 = vunpack.c.l.bf16 %v736_v0  ;;  %v877_v2 = vunpack.c.h.bf16 %v736_v0  ;;  %v2493_v16 = vld [vmem:[%s3249_s7 + $0x8] sm:$0xff]   ;;  %2267 = vmatprep.subr.bf16.mxu0 %v2705_v17  ;;  %2275 = vmatprep.subr.bf16.mxu1 %v2705_v17  ;;  %v2492_v18 = vld [vmem:[%s3249_s7] sm:$0xff]  }
  0x5f   : > { %2268 = vmatpush3.bf16.msra.mxu0 %v2491_v15  ;;  %2276 = vmatpush3.bf16.msra.mxu1 %v2493_v16  ;;  %v2494_v19 = vld [vmem:[%s3249_s7] sm:$0xff]  }
  0x60   : > { %v741_v3 = vsel %vm740_vm0, %v737_v1, 0.0  ;;  %v880_v4 = vsel %vm740_vm0, %v877_v2, 0.0  ;;  %2269 = vmatprep.subr.bf16.mxu0 %v2705_v17  ;;  %2271 = vmatprep.mubr.msk.bf16.mxu0 %vm2706_vm1, %v2705_v17  ;;  %v2149_v38 = vld [vmem:[%s3250_s8] ss:$0 sm:$0xff] }
  0x61   : > { %742 = vadd.xlane.f32.xlu0 %v741_v3  ;;  %2277 = vmatprep.subr.bf16.mxu1 %v2705_v17  ;;  %v2147_v27 = vld [vmem:[%s3306_s25] ss:$0 sm:$0xff] }
  0x62   : > { %2279 = vmatprep.mubr.msk.bf16.mxu1 %vm2706_vm1, %v2705_v17  ;;  %v2148_v29 = vld [vmem:[%s3307_s17] ss:$0 sm:$0xff] }
  0x63   : > { %2270 = vmatpush3.bf16.msra.mxu0 %v2492_v18  ;;  %2278 = vmatpush3.bf16.msra.mxu1 %v2494_v19 }
  0x65   : > { %881 = vadd.xlane.f32.xlu0 %v880_v4 }
  0xea   : > { %v743_v5 = vpop.xlane.xlu0 %742 }
  0xeb   : > { %v745_v6 = vmul.f32 0.03125, %v743_v5 }
  0xed   : > { %v746_v7 = vsub.f32 %v737_v1, %v745_v6 }
  0xee   : > { %v882_v8 = vpop.xlane.xlu0 %881 }
  0xef   : > { %v883_v9 = vmul.f32 0.03125, %v882_v8  ;;  %v747_v10 = vmul.f32 %v746_v7, %v746_v7 }
  0xf1   : > { %v884_v11 = vsub.f32 %v877_v2, %v883_v9  ;;  %v748_v12 = vsel %vm740_vm0, %v747_v10, 0.0 }
  0xf2   : > { %749 = vadd.xlane.f32.xlu1 %v748_v12 }
  0xf3   : > { %v885_v13 = vmul.f32 %v884_v11, %v884_v11 }
  0xf5   : > { %v886_v14 = vsel %vm740_vm0, %v885_v13, 0.0 }
  0xf6   : > { %887 = vadd.xlane.f32.xlu1 %v886_v14 }
 0x17b   : > { %v750_v20 = vpop.xlane.xlu1 %749 }
 0x17c   : > { %v751_v21 = vmul.f32 0.03125, %v750_v20 }
 0x17e   : > { %v752_v22 = vadd.f32 1e-12, %v751_v21 }
 0x17f   : > { %v888_v23 = vpop.xlane.xlu1 %887 }
 0x180   : > { %2495 = vrsqrt.f32 %v752_v22  ;;  %v889_v24 = vmul.f32 0.03125, %v888_v23 }
 0x182   : > { %v890_v25 = vadd.f32 1e-12, %v889_v24 }
 0x184   : > { %2497 = vrsqrt.f32 %v890_v25 }
 0x18d   : > { %v2496_v26 = vpop.eup %2495 }
 0x18e   : > { %v754_v28 = vmul.f32 %v2496_v26, %v746_v7 }
 0x190   : > { %v761_v30 = vmul.f32 %v2147_v27, %v754_v28 }
 0x191   : > { %v2498_v31 = vpop.eup %2497 }
 0x192   : > { %v768_v32 = vadd.f32 %v2148_v29, %v761_v30  ;;  %v892_v33 = vmul.f32 %v2498_v31, %v884_v11 }
 0x194   : > { %v769_v34 = vpack.c.bf16 %v768_v32, %v768_v32  ;;  %v899_v35 = vmul.f32 %v2147_v27, %v892_v33 }
 0x196   : > { %2272 = vmatmul.mubr.msk.bf16.vlgmr.msra.gmra.mxu0 %vm740_vm0, %v769_v34  ;;  %v906_v36 = vadd.f32 %v2148_v29, %v899_v35 }
 0x198   : > { %v907_v37 = vpack.c.bf16 %v906_v36, %v906_v36 }
 0x19a   : > { %2280 = vmatmul.mubr.msk.bf16.vlgmr.msra.gmra.mxu1 %vm740_vm0, %v907_v37 }
 0x256   : > { %v830_v39 = vpop.f32.mrf.mxu0 }
 0x257   : > { %v831_v40 = vadd.f32 %v2149_v38, %v830_v39 }
 0x258   : > { %v2273_v41 = vpop.f32.mrf.mxu0 }
 0x259   : > { %v836_v42 = vpack.c.bf16 %v831_v40, %v831_v40 }
 0x25a   : > { %v833_v43 = vpop.f32.mrf.mxu0  ;;  %v968_v44 = vpop.f32.mrf.mxu1 }
 0x25b   : > { %848 = vst.msk [vmem:[#allocation2] sm:$0xf] %vm847_vm2, %v836_v42  ;;  %v969_v45 = vadd.f32 %v2149_v38, %v968_v44  ;;  %838 = vrot.lane.b32.xlu0 %v836_v42, %s2707_s24  ;;  %841 = vrot.lane.b32.xlu1 %v836_v42, %s2708_s23 }
 0x25c   : > { %v2274_v46 = vpop.f32.mrf.mxu0  ;;  %v2281_v47 = vpop.f32.mrf.mxu1 }
 0x25d   : > { %v974_v48 = vpack.c.bf16 %v969_v45, %v969_v45 }
 0x25e   : > { %v971_v49 = vpop.f32.mrf.mxu1 }
 0x25f   : > { %985 = vst.msk [vmem:[#allocation2 + $0x4] sm:$0xf] %vm847_vm2, %v974_v48  ;;  %844 = vrot.lane.b32.xlu1 %v836_v42, %s2709_s20  ;;  %979 = vrot.lane.b32.xlu0 %v974_v48, %s2708_s23 }
 0x260   : > { %v2282_v50 = vpop.f32.mrf.mxu1 }
 0x263   : > { %860 = vrot.lane.b32.xlu0 %v836_v42, %s2710_s4  ;;  %976 = vrot.lane.b32.xlu1 %v974_v48, %s2707_s24 }
 0x267   : > { %997 = vrot.lane.b32.xlu0 %v974_v48, %s2710_s4  ;;  %982 = vrot.lane.b32.xlu1 %v974_v48, %s2709_s20 }
 0x2cd   : > { %v842_v51 = vpop.permute.xlu1 %841  ;;  %v839_v52 = vpop.permute.xlu0 %838 }
 0x2ce   : > { %850 = vst.msk [vmem:[#allocation2 + $0x10] sm:$0xf] %vm847_vm2, %v842_v51  ;;  %v2155_v53 = vcombine.low %v842_v51, %v842_v51  ;;  %849 = vst.msk [vmem:[#allocation2 + $0x8] sm:$0xf] %vm847_vm2, %v839_v52  ;;  %v2154_v54 = vcombine.low %v839_v52, %v839_v52 }
 0x2d0   : > { %864 = vrot.lane.b32.xlu0 %v2155_v53, %s2710_s4  ;;  %862 = vrot.lane.b32.xlu1 %v2154_v54, %s2710_s4 }
 0x2d1   : > { %v845_v55 = vpop.permute.xlu1 %844  ;;  %v980_v56 = vpop.permute.xlu0 %979 }
 0x2d2   : > { %851 = vst.msk [vmem:[#allocation2 + $0x18] sm:$0xf] %vm847_vm2, %v845_v55  ;;  %v2156_v57 = vcombine.low %v845_v55, %v845_v55  ;;  %987 = vst.msk [vmem:[#allocation2 + $0x14] sm:$0xf] %vm847_vm2, %v980_v56  ;;  %v2165_v58 = vcombine.low %v980_v56, %v980_v56 }
 0x2d4   : > { %866 = vrot.lane.b32.xlu1 %v2156_v57, %s2710_s4  ;;  %1001 = vrot.lane.b32.xlu0 %v2165_v58, %s2710_s4 }
 0x2d5   : > { %v977_v59 = vpop.permute.xlu1 %976  ;;  %v861_v60 = vpop.permute.xlu0 %860 }
 0x2d6   : > { %986 = vst.msk [vmem:[#allocation2 + $0xc] sm:$0xf] %vm847_vm2, %v977_v59  ;;  %v2164_v61 = vcombine.low %v977_v59, %v977_v59  ;;  %872 = vst.msk [vmem:[#allocation3] sm:$0xf] %vm847_vm2, %v861_v60 }
 0x2d8   : > { %999 = vrot.lane.b32.xlu1 %v2164_v61, %s2710_s4 }
 0x2d9   : > { %v983_v62 = vpop.permute.xlu1 %982  ;;  %v998_v63 = vpop.permute.xlu0 %997 }
 0x2da   : > { %988 = vst.msk [vmem:[#allocation2 + $0x1c] sm:$0xf] %vm847_vm2, %v983_v62  ;;  %v2166_v0 = vcombine.low %v983_v62, %v983_v62  ;;  %1009 = vst.msk [vmem:[#allocation3 + $0x4] sm:$0xf] %vm847_vm2, %v998_v63 }
 0x2dc   : > { %1003 = vrot.lane.b32.xlu1 %v2166_v0, %s2710_s4 }
 0x342   : > { %v863_v1 = vpop.permute.xlu1 %862  ;;  %v865_v2 = vpop.permute.xlu0 %864 }
 0x343   : > { %873 = vst.msk [vmem:[#allocation3 + $0x8] sm:$0xf] %vm847_vm2, %v863_v1  ;;  %874 = vst.msk [vmem:[#allocation3 + $0x10] sm:$0xf] %vm847_vm2, %v865_v2 }
 0x346   : > { %v867_v3 = vpop.permute.xlu1 %866  ;;  %v1002_v4 = vpop.permute.xlu0 %1001 }
 0x347   : > { %875 = vst.msk [vmem:[#allocation3 + $0x18] sm:$0xf] %vm847_vm2, %v867_v3  ;;  %1011 = vst.msk [vmem:[#allocation3 + $0x14] sm:$0xf] %vm847_vm2, %v1002_v4 }
 0x34a   : > { %v1000_v5 = vpop.permute.xlu1 %999 }
 0x34b   : > { %1010 = vst.msk [vmem:[#allocation3 + $0xc] sm:$0xf] %vm847_vm2, %v1000_v5 }
 0x34e   : > { %v1004_v6 = vpop.permute.xlu1 %1003 }
 0x34f   : > { %1012 = vst.msk [vmem:[#allocation3 + $0x1c] sm:$0xf] %vm847_vm2, %v1004_v6 }
 0x350 PF: > { %s2167_s27 = sshll.u32 %s2683_s29, 3  ;;  %vm1022_vm3 = vcmask 261120   ;;  %s3308_s30 = sld [smem:[#allocation28_spill]]  ;;  %v2711_v16 = vmov 0.0   ;;  %vm2712_vm4 = vmmov 0   ;;  %v2501_v26 = vld [vmem:[#allocation2] sm:$0xff]  }
 0x351   : > { %s1014_s2 = sshra.s32 %s2167_s27, 3  ;;  %2283 = vmatprep.subr.bf16.mxu1 %v2711_v16  ;;  %2287 = vmatprep.mubr.msk.bf16.mxu1 %vm2712_vm4, %v2711_v16  ;;  %s3310_s4 = sld [smem:[#allocation26_spill]]  ;;  %vm1139_vm5 = vcmask 64512   ;;  %v2503_v30 = vld [vmem:[#allocation2 + $0x18] sm:$0xff]   ;;  %v2171_v32 = vld [vmem:[%s3248_s6] ss:$0 sm:$0xff] }
 0x352   : > { %s2168_s25 = sshll.u32 %s1014_s2, 2  ;;  %2309 = vmatprep.subr.bf16.mxu0 %v2711_v16  ;;  %2311 = vmatprep.mubr.msk.bf16.mxu0 %vm2712_vm4, %v2711_v16  ;;  %v1144_v29 = vsel %vm1139_vm5, %v2501_v26, 0  ;;  %v1297_v31 = vsel %vm1139_vm5, %v2503_v30, 0  ;;  %v2502_v34 = vld [vmem:[#allocation2 + $0x8] sm:$0xff]   ;;  %s2713_s17 = smov 104   ;;  %v2504_v41 = vld [vmem:[#allocation2 + $0x10] sm:$0xff]  }
 0x353   : > { %s1017_s18 = scalar_lea.vmem %s2960_s22, %s2168_s25  ;;  %s3311_s25 = sld [smem:[#allocation27_spill]]  ;;  %2310 = vmatpush3.bf16.xpose.msra.mxu0 %v1297_v31  ;;  %v1195_v39 = vsel %vm1139_vm5, %v2502_v34, 0  ;;  %v1246_v42 = vsel %vm1139_vm5, %v2504_v41, 0  ;;  %vm1339_vm6 = vcmask 130048   ;;  %vm1610_vm7 = vcmask 195584  }
 0x354   : > { %v1018_v7 = vld [vmem:[%s1017_s18] sm:$0xf]  ;;  %2321 = vmatprep.subr.bf16.mxu0 %v2711_v16  ;;  %s2715_s22 = smov 112   ;;  %s2716_s18 = smov 8   ;;  %vm2000_vm8 = vcmask 257024  }
 0x355   : > { %v3023_v8 = vunpack.c.l.bf16 %v1018_v7  ;;  %v2505_v7 = vld [vmem:[#allocation3] sm:$0xff]   ;;  %s2717_s13 = smov 16   ;;  %s3313_s20 = sld [smem:[#allocation32_spill]] }
 0x356   : > { %s3309_s1 = smov %s3308_s30  ;;  %v2499_v15 = vld [vmem:[%s3308_s30 + $0x8] sm:$0xff]   ;;  %s2714_s30 = smov 120  }
 0x357   : > { %v1023_v9 = vsel %vm1022_vm3, %v3023_v8, 0.0  ;;  %2284 = vmatpush3.bf16.msra.mxu1 %v2499_v15  ;;  %v2500_v17 = vld [vmem:[%s3309_s1] sm:$0xff]   ;;  %s2018_s2 = sshll.u32 %s717_s21, 4  ;;  %s2019_s2 = int_to_ptr.vmem [resolvable:$true] %s2018_s2 }
 0x358   : > { %1024 = vadd.xlane.f32.xlu0 %v1023_v9  ;;  %2285 = vmatprep.subr.bf16.mxu1 %v2711_v16  ;;  %v2169_v22 = vld [vmem:[%s3310_s4] ss:$0 sm:$0xff] }
 0x359   : > { %v2170_v24 = vld [vmem:[%s3311_s25] ss:$0 sm:$0xff] }
 0x35b   : > { %2286 = vmatpush3.bf16.msra.mxu1 %v2500_v17 }
 0x35c   : > { %2291 = vmatprep.subr.bf16.mxu1 %v2711_v16 }
 0x3e1   : > { %v1025_v10 = vpop.xlane.xlu0 %1024 }
 0x3e2   : > { %v1027_v11 = vmul.f32 0.03125, %v1025_v10 }
 0x3e4   : > { %v1028_v12 = vsub.f32 %v3023_v8, %v1027_v11 }
 0x3e6   : > { %v1029_v13 = vmul.f32 %v1028_v12, %v1028_v12 }
 0x3e8   : > { %v1030_v14 = vsel %vm1022_vm3, %v1029_v13, 0.0 }
 0x3e9   : > { %1031 = vadd.xlane.f32.xlu0 %v1030_v14 }
 0x472   : > { %v1032_v18 = vpop.xlane.xlu0 %1031 }
 0x473   : > { %v1033_v19 = vmul.f32 0.03125, %v1032_v18 }
 0x475   : > { %v1034_v20 = vadd.f32 1e-12, %v1033_v19 }
 0x477   : > { %2523 = vrsqrt.f32 %v1034_v20 }
 0x484   : > { %v2524_v21 = vpop.eup %2523 }
 0x485   : > { %v1036_v23 = vmul.f32 %v2524_v21, %v1028_v12  ;;  %v1679_v21 = vld [vmem:[%s2965_s5] sm:$0xf]  ;;  %s2217_s5 = sshll.u32 %s2687_s0, 1 }
 0x486   : > { %s2014_s4 = sadd.s32 %s2683_s29, %s2217_s5  ;;  %s3315_s29 = sand.u32 1, %s2675_s3  }
 0x487   : > { %v1043_v25 = vmul.f32 %v2169_v22, %v1036_v23  ;;  %v1680_v22 = vunpack.c.l.bf16 %v1679_v21  ;;  %s2218_s27 = sshll.u32 %s2014_s4, 6 }
 0x489   : > { %v1050_v27 = vadd.f32 %v2170_v24, %v1043_v25  ;;  %v1683_v25 = vsel %vm1022_vm3, %v1680_v22, 0.0 }
 0x48b   : > { %v1051_v28 = vpack.c.bf16 %v1050_v27, %v1050_v27 }
 0x48d   : > { %2288 = vmatmul.mubr.msk.bf16.vlgmr.msra.gmra.mxu1 %vm1022_vm3, %v1051_v28 }
 0x48e   : > { %2292 = vmatpush3.bf16.xpose.msra.mxu1 %v1144_v29  ;;  %2293 = vmatprep.mubr.msk.bf16.mxu1 %vm2712_vm4, %v2711_v16  ;;  %v2506_v29 = vld [vmem:[#allocation3 + $0x8] sm:$0xff]  }
 0x48f   : > { %2297 = vmatprep.subr.bf16.mxu1 %v2711_v16 }
 0x54d   : > { %v1112_v33 = vpop.f32.mrf.mxu1 }
 0x54e   : > { %v1113_v35 = vadd.f32 %v2171_v32, %v1112_v33  ;;  %v2507_v32 = vld [vmem:[#allocation3 + $0x10] sm:$0xff]  }
 0x54f   : > { %v2289_v36 = vpop.f32.mrf.mxu1 }
 0x550   : > { %v1118_v37 = vpack.c.bf16 %v1113_v35, %v1113_v35 }
 0x551   : > { %v1115_v38 = vpop.f32.mrf.mxu1 }
 0x552   : > { %1124 = vrot.lane.b32.xlu0 %v1118_v37, %s2713_s17  ;;  %1120 = vrot.lane.b32.xlu1 %v1118_v37, %s2714_s30  ;;  %s2718_s17 = smov 24   ;;  %s1777_s30 = sld [smem:[#allocation4]] }
 0x553   : > { %2294 = vmatmul.mubr.msk.bf16.vlgmr.msra.gmra.mxu1 %vm1139_vm5, %v1118_v37  ;;  %v2290_v40 = vpop.f32.mrf.mxu1 }
 0x554   : > { %2298 = vmatpush3.bf16.xpose.msra.mxu1 %v1195_v39  ;;  %2299 = vmatprep.mubr.msk.bf16.mxu1 %vm2712_vm4, %v2711_v16 }
 0x555   : > { %2303 = vmatprep.subr.bf16.mxu1 %v2711_v16 }
 0x556   : > { %1122 = vrot.lane.b32.xlu1 %v1118_v37, %s2715_s22  ;;  %s3312_s22 = sld [smem:[#allocation31_spill]] }
 0x5c4   : > { %v1125_v43 = vpop.permute.xlu0 %1124  ;;  %v1121_v44 = vpop.permute.xlu1 %1120 }
 0x5c5   : > { %2300 = vmatmul.mubr.msk.bf16.vlgmr.msra.gmra.mxu1 %vm1139_vm5, %v1121_v44  ;;  %2312 = vmatmul.mubr.msk.bf16.vlgmr.msra.gmra.mxu0 %vm1139_vm5, %v1125_v43 }
 0x5c6   : > { %2304 = vmatpush3.bf16.xpose.msra.mxu1 %v1246_v42  ;;  %2305 = vmatprep.mubr.msk.bf16.mxu1 %vm2712_vm4, %v2711_v16  ;;  %v2508_v42 = vld [vmem:[#allocation3 + $0x18] sm:$0xff]  }
 0x5c7   : > { %2315 = vmatprep.subr.bf16.mxu1 %v2711_v16  ;;  %2323 = vmatprep.mubr.msk.bf16.mxu0 %vm2712_vm4, %v2711_v16 }
 0x5c8   : > { %v1123_v45 = vpop.permute.xlu1 %1122  ;;  %2322 = vmatpush3.bf16.msra.mxu0 %v2506_v29 }
 0x5c9   : > { %2333 = vmatprep.subr.bf16.mxu0 %v2711_v16 }
 0x5cd   : > { %2306 = vmatmul.mubr.msk.bf16.vlgmr.msra.gmra.mxu1 %vm1139_vm5, %v1123_v45 }
 0x5ce   : > { %2317 = vmatprep.mubr.msk.bf16.mxu1 %vm2712_vm4, %v2711_v16  ;;  %2316 = vmatpush3.bf16.msra.mxu1 %v2505_v7 }
 0x5cf   : > { %2327 = vmatprep.subr.bf16.mxu1 %v2711_v16 }
 0x613   : > { %v1180_v46 = vpop.f32.mrf.mxu1 }
 0x614   : > { %v1340_v47 = vsel %vm1339_vm6, %v1180_v46, -inf }
 0x615   : > { %1341 = vmax.xlane.f32.xlu1 %v1340_v47  ;;  %v2295_v48 = vpop.f32.mrf.mxu1 }
 0x617   : > { %v1183_v49 = vpop.f32.mrf.mxu1 }
 0x619   : > { %v2296_v50 = vpop.f32.mrf.mxu1 }
 0x685   : > { %v1231_v51 = vpop.f32.mrf.mxu1  ;;  %v1333_v52 = vpop.f32.mrf.mxu0 }
 0x686   : > { %v1343_v53 = vsel %vm1339_vm6, %v1231_v51, -inf  ;;  %v1349_v0 = vsel %vm1339_vm6, %v1333_v52, -inf }
 0x687   : > { %v2313_v54 = vpop.f32.mrf.mxu0  ;;  %1344 = vmax.xlane.f32.xlu0 %v1343_v53  ;;  %v2301_v55 = vpop.f32.mrf.mxu1  ;;  %v2510_v53 = vld [vmem:[#allocation5] sm:$0xff]  }
 0x689   : > { %v1234_v56 = vpop.f32.mrf.mxu1  ;;  %v1336_v57 = vpop.f32.mrf.mxu0 }
 0x68b   : > { %v2302_v58 = vpop.f32.mrf.mxu1  ;;  %v2314_v59 = vpop.f32.mrf.mxu0 }
 0x68d   : > { %v1282_v60 = vpop.f32.mrf.mxu1 }
 0x68e   : > { %v1346_v61 = vsel %vm1339_vm6, %v1282_v60, -inf }
 0x68f   : > { %1347 = vmax.xlane.f32.xlu1 %v1346_v61  ;;  %v2307_v62 = vpop.f32.mrf.mxu1 }
 0x690   : > { %v2195_v62 = vld [vmem:[%s3253_s11] ss:$0 sm:$0xff] }
 0x691   : > { %v1285_v63 = vpop.f32.mrf.mxu1 }
 0x693   : > { %1350 = vmax.xlane.f32.xlu1 %v1349_v0  ;;  %v2308_v1 = vpop.f32.mrf.mxu1  ;;  %v2196_v0 = vld [vmem:[%s3254_s12] ss:$0 sm:$0xff] }
 0x69e   : > { %v1342_v2 = vpop.xlane.xlu1 %1341 }
 0x69f   : > { %v1352_v3 = vsub.f32 %v1180_v46, %v1342_v2 }
 0x6a1   : > { %v1356_v4 = vmul.f32 1.442695, %v1352_v3 }
 0x6a3   : > { %2525 = vpow2.f32 %v1356_v4  ;;  %v2511_v4 = vld [vmem:[%s3251_s9 + $0x8] sm:$0xff]  }
 0x6b0   : > { %v2526_v5 = vpop.eup %2525 }
 0x6b1   : > { %v1364_v6 = vsel %vm1339_vm6, %v2526_v5, 0.0 }
 0x6b2   : > { %1365 = vadd.xlane.f32.xlu1 %v1364_v6 }
 0x710   : > { %v1345_v9 = vpop.xlane.xlu0 %1344 }
 0x711   : > { %v1353_v10 = vsub.f32 %v1231_v51, %v1345_v9 }
 0x713   : > { %v1358_v11 = vmul.f32 1.442695, %v1353_v10 }
 0x715   : > { %2527 = vpow2.f32 %v1358_v11 }
 0x718   : > { %v1348_v12 = vpop.xlane.xlu1 %1347 }
 0x719   : > { %v1354_v13 = vsub.f32 %v1282_v60, %v1348_v12 }
 0x71b   : > { %v1360_v14 = vmul.f32 1.442695, %v1354_v13 }
 0x71c   : > { %v1351_v15 = vpop.xlane.xlu1 %1350 }
 0x71d   : > { %2529 = vpow2.f32 %v1360_v14  ;;  %v1355_v17 = vsub.f32 %v1333_v52, %v1351_v15  ;;  %v2509_v52 = vld [vmem:[#allocation5 + $0x8] sm:$0xff]  }
 0x71f   : > { %v1362_v18 = vmul.f32 1.442695, %v1355_v17 }
 0x721   : > { %2531 = vpow2.f32 %v1362_v18 }
 0x722   : > { %v2528_v19 = vpop.eup %2527 }
 0x723   : > { %v1367_v20 = vsel %vm1339_vm6, %v2528_v19, 0.0 }
 0x724   : > { %1368 = vadd.xlane.f32.xlu1 %v1367_v20 }
 0x72a   : > { %v2530_v23 = vpop.eup %2529 }
 0x72b   : > { %v1370_v24 = vsel %vm1339_vm6, %v2530_v23, 0.0 }
 0x72c   : > { %1371 = vadd.xlane.f32.xlu1 %v1370_v24 }
 0x72e   : > { %v2532_v26 = vpop.eup %2531 }
 0x72f   : > { %v1373_v27 = vsel %vm1339_vm6, %v2532_v26, 0.0 }
 0x730   : > { %1684 = vadd.xlane.f32.xlu1 %v1683_v25  ;;  %1374 = vadd.xlane.f32.xlu0 %v1373_v27 }
 0x73b   : > { %v1366_v28 = vpop.xlane.xlu1 %1365 }
 0x73c   : > { %2533 = vrcp.f32 %v1366_v28 }
 0x749   : > { %v2534_v30 = vpop.eup %2533 }
 0x74a   : > { %v1380_v31 = vmul.f32 %v2534_v30, %v2526_v5  ;;  %v2512_v5 = vld [vmem:[%s3251_s9] sm:$0xff]  }
 0x74c   : > { %v1384_v33 = vpack.c.bf16 %v1380_v31, %v1380_v31 }
 0x74e   : > { %2318 = vmatmul.mubr.msk.bf16.vlgmr.msra.gmra.mxu1 %vm1339_vm6, %v1384_v33 }
 0x74f   : > { %2328 = vmatpush3.bf16.msra.mxu1 %v2507_v32  ;;  %2329 = vmatprep.mubr.msk.bf16.mxu1 %vm2712_vm4, %v2711_v16 }
 0x750   : > { %2339 = vmatprep.subr.bf16.mxu1 %v2711_v16 }
 0x7ad   : > { %v1369_v34 = vpop.xlane.xlu1 %1368 }
 0x7ae   : > { %2535 = vrcp.f32 %v1369_v34  ;;  %v2191_v34 = vld [vmem:[%s3252_s10] ss:$0 sm:$0xff] }
 0x7b5   : > { %v1372_v35 = vpop.xlane.xlu1 %1371 }
 0x7b6   : > { %2537 = vrcp.f32 %v1372_v35 }
 0x7b9   : > { %v1375_v36 = vpop.xlane.xlu0 %1374  ;;  %v1685_v37 = vpop.xlane.xlu1 %1684 }
 0x7ba   : > { %2539 = vrcp.f32 %v1375_v36  ;;  %v1686_v38 = vmul.f32 0.03125, %v1685_v37  ;;  %v2197_v37 = vld [vmem:[%s3256_s14] ss:$0 sm:$0xff] }
 0x7bb   : > { %v2536_v39 = vpop.eup %2535 }
 0x7bc   : > { %v1687_v40 = vsub.f32 %v1680_v22, %v1686_v38  ;;  %v1381_v41 = vmul.f32 %v2536_v39, %v2528_v19  ;;  %v1778_v38 = vstv %s1777_s30  ;;  %s2599_s30 = scalar_lea.vmem %s2019_s2, 64 }
 0x7bd   : > { %p2600_p1 = scmp.ne.s32.totalorder %s2019_s2, %s2599_s30 }
 0x7be   : > { %v1385_v43 = vpack.c.bf16 %v1381_v41, %v1381_v41  ;;  %v1688_v44 = vmul.f32 %v1687_v40, %v1687_v40 }
 0x7bf   : > { %p2601_p11 = pnand %p2600_p1, %p2885_p3 }
 0x7c0   : > { %2324 = vmatmul.mubr.msk.bf16.vlgmr.msra.gmra.mxu0 %vm1339_vm6, %v1385_v43  ;;  %v1689_v45 = vsel %vm1022_vm3, %v1688_v44, 0.0 }
 0x7c1   : > { %1690 = vadd.xlane.f32.xlu0 %v1689_v45  ;;  %2334 = vmatpush3.bf16.msra.mxu0 %v2508_v42  ;;  %p2602_p13 = pneg %p2601_p11 }
 0x7c2   : > { %2335 = vmatprep.mubr.msk.bf16.mxu0 %vm2712_vm4, %v2711_v16  ;;  %2347 = vmatprep.subr.bf16.mxu0 %v2711_v16 }
 0x7c3   : > { %v2538_v46 = vpop.eup %2537 }
 0x7c4   : > { %v1382_v47 = vmul.f32 %v2538_v46, %v2530_v23 }
 0x7c6   : > { %v1386_v48 = vpack.c.bf16 %v1382_v47, %v1382_v47 }
 0x7c7   : > { %v2540_v49 = vpop.eup %2539 }
 0x7c8   : > { %2330 = vmatmul.mubr.msk.bf16.vlgmr.msra.gmra.mxu1 %vm1339_vm6, %v1386_v48  ;;  %v1383_v50 = vmul.f32 %v2540_v49, %v2532_v26 }
 0x7c9   : > { %2343 = vmatprep.mubr.msk.bf16.mxu1 %vm2712_vm4, %v2711_v16  ;;  %2340 = vmatpush3.bf16.msra.mxu1 %v2511_v4  ;;  %v2520_v4 = vld [vmem:[%s3261_s19 + $0x10] sm:$0xff]  }
 0x7ca   : > { %v1387_v51 = vpack.c.bf16 %v1383_v50, %v1383_v50  ;;  %2341 = vmatprep.subr.bf16.mxu1 %v2711_v16 }
 0x7cc   : > { %2336 = vmatmul.mubr.msk.bf16.vlgmr.msra.gmra.mxu0 %vm1339_vm6, %v1387_v51 }
 0x7cd   : > { %2351 = vmatprep.mubr.msk.bf16.mxu0 %vm2712_vm4, %v2711_v16  ;;  %2348 = vmatpush3.bf16.msra.mxu0 %v2509_v52  ;;  %v2513_v52 = vld [vmem:[#allocation8 + $0x8] sm:$0xff]  }
 0x7ce   : > { %2349 = vmatprep.subr.bf16.mxu0 %v2711_v16  ;;  %2342 = vmatpush3.bf16.msra.mxu1 %v2512_v5  ;;  %v2521_v5 = vld [vmem:[%s3261_s19 + $0x8] sm:$0xff]  }
 0x7cf   : > { %2355 = vmatprep.subr.bf16.mxu1 %v2711_v16 }
 0x7d1   : > { %2350 = vmatpush3.bf16.msra.mxu0 %v2510_v53 }
 0x7d2   : > { %2363 = vmatprep.subr.bf16.mxu0 %v2711_v16 }
 0x80e   : > { %v1439_v54 = vpop.f32.mrf.mxu1 }
 0x80f   : > { %v1592_v24 = vpack.c.bf16 %v1439_v54, %v1439_v54 }
 0x810   : > { %v2319_v55 = vpop.f32.mrf.mxu1 }
 0x812   : > { %v1442_v56 = vpop.f32.mrf.mxu1 }
 0x814   : > { %v2320_v57 = vpop.f32.mrf.mxu1 }
 0x815   : > { %v2201_v57 = vld [vmem:[%s3257_s15] ss:$0 sm:$0xff] }
 0x84a   : > { %v1691_v58 = vpop.xlane.xlu0 %1690 }
 0x84b   : > { %v1692_v59 = vmul.f32 0.03125, %v1691_v58 }
 0x84d   : > { %v1693_v60 = vadd.f32 1e-12, %v1692_v59  ;;  %v2202_v59 = vld [vmem:[%s3258_s16] ss:$0 sm:$0xff] }
 0x84f   : > { %2541 = vrsqrt.f32 %v1693_v60 }
 0x85c   : > { %v2542_v61 = vpop.eup %2541 }
 0x85d   : > { %v1695_v63 = vmul.f32 %v2542_v61, %v1687_v40 }
 0x85f   : > { %v1702_v1 = vmul.f32 %v2195_v62, %v1695_v63  ;;  %v2515_v63 = vld [vmem:[%s3261_s19 + $0x38] sm:$0xff]  }
 0x861   : > { %v1709_v2 = vadd.f32 %v2196_v0, %v1702_v1  ;;  %v2516_v0 = vld [vmem:[%s3261_s19 + $0x30] sm:$0xff]   ;;  %v2517_v1 = vld [vmem:[%s3261_s19 + $0x28] sm:$0xff]  }
 0x863   : > { %v1710_v3 = vpack.c.bf16 %v1709_v2, %v1709_v2  ;;  %v2518_v2 = vld [vmem:[%s3261_s19 + $0x20] sm:$0xff]  }
 0x865   : > { %2352 = vmatmul.mubr.msk.bf16.vlgmr.msra.gmra.mxu0 %vm1022_vm3, %v1710_v3  ;;  %v2519_v3 = vld [vmem:[%s3261_s19 + $0x18] sm:$0xff]  }
 0x866   : > { %2379 = vmatprep.mubr.msk.bf16.mxu0 %vm2712_vm4, %v2711_v16  ;;  %2364 = vmatpush3.bf16.msra.mxu0 %v2515_v63 }
 0x867   : > { %2365 = vmatprep.subr.bf16.mxu0 %v2711_v16 }
 0x86a   : > { %2366 = vmatpush3.bf16.msra.mxu0 %v2516_v0 }
 0x86b   : > { %2367 = vmatprep.subr.bf16.mxu0 %v2711_v16 }
 0x86e   : > { %2368 = vmatpush3.bf16.msra.mxu0 %v2517_v1 }
 0x86f   : > { %2369 = vmatprep.subr.bf16.mxu0 %v2711_v16 }
 0x872   : > { %2370 = vmatpush3.bf16.msra.mxu0 %v2518_v2 }
 0x873   : > { %2371 = vmatprep.subr.bf16.mxu0 %v2711_v16 }
 0x876   : > { %2372 = vmatpush3.bf16.msra.mxu0 %v2519_v3 }
 0x877   : > { %2373 = vmatprep.subr.bf16.mxu0 %v2711_v16 }
 0x87a   : > { %2374 = vmatpush3.bf16.msra.mxu0 %v2520_v4 }
 0x87b   : > { %2375 = vmatprep.subr.bf16.mxu0 %v2711_v16 }
 0x87e   : > { %2376 = vmatpush3.bf16.msra.mxu0 %v2521_v5 }
 0x87f   : > { %2377 = vmatprep.subr.bf16.mxu0 %v2711_v16 }
 0x880   : > { %v1488_v6 = vpop.f32.mrf.mxu0 }
 0x881   : > { %v1593_v7 = vpack.c.bf16 %v1488_v6, %v1488_v6  ;;  %v2522_v6 = vld [vmem:[%s3261_s19] sm:$0xff]  }
 0x882   : > { %v2325_v9 = vpop.f32.mrf.mxu0  ;;  %2378 = vmatpush3.bf16.msra.mxu0 %v2522_v6 }
 0x883   : > { %1597 = vrot.lane.b32.xlu1 %v1593_v7, %s2716_s18  ;;  %v2203_v7 = vld [vmem:[%s3312_s22] ss:$0 sm:$0xff]  ;;  %s3314_s18 = sld [smem:[#allocation33_spill]]  ;;  %s2719_s22 = smov [#allocation10]  }
 0x884   : > { %v1491_v10 = vpop.f32.mrf.mxu0  ;;  %s2603_s5 = sshll.u32 %s2719_s22, 4  ;;  %s2604_s5 = int_to_ptr.vmem [resolvable:$false] %s2603_s5 }
 0x885   : > { %s2605_s24 = scalar_lea.vmem %s2604_s5, 128  ;;  %p2606_p2 = scmp.lt.s32.totalorder %s2019_s2, %s2604_s5 }
 0x886   : > { %v2326_v11 = vpop.f32.mrf.mxu0  ;;  %p2607_p4 = scmp.lt.s32.totalorder %s2605_s24, %s2599_s30 }
 0x888   : > { %v1537_v12 = vpop.f32.mrf.mxu1  ;;  %p2608_p5 = por %p2607_p4, %p2606_p2 }
 0x889   : > { %v1594_v13 = vpack.c.bf16 %v1537_v12, %v1537_v12 }
 0x88a   : > { %v2331_v14 = vpop.f32.mrf.mxu1  ;;  %p2609_p6 = pnand %p2608_p5, %p2602_p13 }
 0x88b   : > { %1600 = vrot.lane.b32.xlu0 %v1594_v13, %s2717_s13  ;;  %s3192_s13 = scalar_lea.hbm %s3314_s18, %s2218_s27 }
 0x88c   : > { %v1540_v15 = vpop.f32.mrf.mxu1  ;;  %v1586_v17 = vpop.f32.mrf.mxu0 }
 0x88d   : > { %v1595_v18 = vpack.c.bf16 %v1586_v17, %v1586_v17 }
 0x88e   : > { %v2332_v19 = vpop.f32.mrf.mxu1  ;;  %v2337_v20 = vpop.f32.mrf.mxu0 }
 0x88f   : > { %1603 = vrot.lane.b32.xlu1 %v1595_v18, %s2718_s17  ;;  %s2003_s17 = scalar_lea.sflag [#allocation7], %s3315_s29 }
 0x890   : > { %v1589_v21 = vpop.f32.mrf.mxu0 }
 0x892   : > { %v2338_v22 = vpop.f32.mrf.mxu0 }
 0x8f5   : > { %v1598_v23 = vpop.permute.xlu1 %1597 }
 0x8f6   : > { %v1607_v26 = vsel %vm1139_vm5, %v1592_v24, %v1598_v23  ;;  %v2207_v24 = vld [vmem:[%s3313_s20] ss:$0 sm:$0xff] }
 0x8fd   : > { %v1601_v25 = vpop.permute.xlu0 %1600 }
 0x8fe   : > { %v1609_v27 = vsel %vm1339_vm6, %v1607_v26, %v1601_v25 }
 0x901   : > { %v1604_v28 = vpop.permute.xlu1 %1603 }
 0x902   : > { %v1612_v29 = vsel %vm1610_vm7, %v1609_v27, %v1604_v28 }
 0x903   : > { %2344 = vmatmul.mubr.msk.bf16.vlgmr.msra.gmra.mxu1 %vm1022_vm3, %v1612_v29 }
 0x904   : > { %2359 = vmatprep.mubr.msk.bf16.mxu1 %vm2712_vm4, %v2711_v16  ;;  %2356 = vmatpush3.bf16.msra.mxu1 %v2513_v52 }
 0x905   : > { %2357 = vmatprep.subr.bf16.mxu1 %v2711_v16 }
 0x925   : > { %v1771_v30 = vpop.f32.mrf.mxu0 }
 0x926   : > { %v1772_v42 = vadd.f32 %v2197_v37, %v1771_v30 }
 0x927   : > { %v2353_v31 = vpop.f32.mrf.mxu0 }
 0x929   : > { %v1774_v32 = vpop.f32.mrf.mxu0 }
 0x92b   : > { %v2354_v33 = vpop.f32.mrf.mxu0 }
 0x9c3   : > { %v1672_v35 = vpop.f32.mrf.mxu1 }
 0x9c4   : > { %v1673_v36 = vadd.f32 %v2191_v34, %v1672_v35 }
 0x9c5   : > { %v2345_v39 = vpop.f32.mrf.mxu1 }
 0x9c6   : > { %v1678_v40 = vadd.f32 %v1673_v36, %v3023_v8  ;;  %v2514_v8 = vld [vmem:[#allocation8] sm:$0xff]  }
 0x9c7   : > { %v1675_v41 = vpop.f32.mrf.mxu1  ;;  %2358 = vmatpush3.bf16.msra.mxu1 %v2514_v8 }
 0x9c8   : > { %v1779_v43 = vmul.f32 %v1778_v38, %v1678_v40 }
 0x9c9   : > { %v2346_v44 = vpop.f32.mrf.mxu1 }
 0x9ca   : > { %v3133_v45 = vadd.f32 %v1779_v43, %v1772_v42 }
 0x9cc   : > { %v1783_v46 = vsel %vm1022_vm3, %v3133_v45, 0.0 }
 0x9cd   : > { %1784 = vadd.xlane.f32.xlu1 %v1783_v46 }
 0xa56   : > { %v1785_v47 = vpop.xlane.xlu1 %1784 }
 0xa57   : > { %v1786_v48 = vmul.f32 0.03125, %v1785_v47 }
 0xa59   : > { %v1787_v49 = vsub.f32 %v3133_v45, %v1786_v48 }
 0xa5b   : > { %v1788_v50 = vmul.f32 %v1787_v49, %v1787_v49 }
 0xa5d   : > { %v1789_v51 = vsel %vm1022_vm3, %v1788_v50, 0.0 }
 0xa5e   : > { %1790 = vadd.xlane.f32.xlu0 %v1789_v51 }
 0xae7   : > { %v1791_v53 = vpop.xlane.xlu0 %1790 }
 0xae8   : > { %v1792_v54 = vmul.f32 0.03125, %v1791_v53 }
 0xaea   : > { %v1793_v55 = vadd.f32 1e-12, %v1792_v54 }
 0xaec   : > { %2543 = vrsqrt.f32 %v1793_v55 }
 0xaf9   : > { %v2544_v56 = vpop.eup %2543 }
 0xafa   : > { %v1795_v58 = vmul.f32 %v2544_v56, %v1787_v49 }
 0xafc   : > { %v1802_v60 = vmul.f32 %v2201_v57, %v1795_v58 }
 0xafe   : > { %v1809_v61 = vadd.f32 %v2202_v59, %v1802_v60 }
 0xb00   : > { %v1810_v62 = vpack.c.bf16 %v1809_v61, %v1809_v61 }
 0xb02   : > { %2360 = vmatmul.mubr.msk.bf16.vlgmr.msra.gmra.mxu1 %vm1022_vm3, %v1810_v62 }
 0xbc2   : > { %v1871_v9 = vpop.f32.mrf.mxu1 }
 0xbc3   : > { %v1872_v10 = vadd.f32 %v2203_v7, %v1871_v9 }
 0xbc4   : > { %v2361_v11 = vpop.f32.mrf.mxu1 }
 0xbc5   : > { %v1877_v12 = vmul.f32 %v1872_v10, %v1872_v10 }
 0xbc6   : > { %v1874_v13 = vpop.f32.mrf.mxu1 }
 0xbc7   : > { %v1878_v14 = vmul.f32 %v1877_v12, %v1872_v10 }
 0xbc8   : > { %v2362_v15 = vpop.f32.mrf.mxu1 }
 0xbc9   : > { %v1879_v17 = vmul.f32 0.044715, %v1878_v14 }
 0xbcb   : > { %v1880_v18 = vadd.f32 %v1879_v17, %v1872_v10 }
 0xbcd   : > { %v1881_v19 = vmul.f32 0.7978846, %v1880_v18 }
 0xbcf   : > { %2545 = vtanh.f32 %v1881_v19 }
 0xbdc   : > { %v2546_v16 = vpop.eup %2545 }
 0xbdd   : > { %v1883_v20 = vadd.f32 1.0, %v2546_v16 }
 0xbdf   : > { %v1884_v21 = vmul.f32 0.5, %v1883_v20 }
 0xbe1   : > { %v1885_v22 = vmul.f32 %v1884_v21, %v1872_v10 }
 0xbe3   : > { %v1886_v23 = vpack.c.bf16 %v1885_v22, %v1885_v22 }
 0xbe5   : > { %2380 = vmatmul.mubr.bf16.vlgmr.msra.gmra.mxu0 %v1886_v23 }
 0xca5   : > { %v1992_v25 = vpop.f32.mrf.mxu0 }
 0xca6   : > { %v1993_v26 = vadd.f32 %v2207_v24, %v1992_v25 }
 0xca7   : > { %v2381_v27 = vpop.f32.mrf.mxu0 }
 0xca8   : > { %v1998_v28 = vadd.f32 %v1993_v26, %v3133_v45 }
 0xca9   : > { %v1995_v29 = vpop.f32.mrf.mxu0 }
 0xcaa   : > { %v1999_v30 = vpack.c.bf16 %v1998_v28, %v1998_v28 }
 0xcab   : > { %v2382_v31 = vpop.f32.mrf.mxu0 }
 0xcac   : > { %2001 = vst.msk [vmem:[%s717_s21] sm:$0xf] %vm2000_vm8, %v1999_v30 }
 0xcad   : > { %2612 = shalt.err (!%p2609_p6)
}
 0xcae   : > { %s2613_s21 = scalar_lea.hbm %s3192_s13, 64  ;;  %s2617_s20 = scalar_lea.hbm %s3314_s18, 256 }
 0xcaf   : > { %p2614_p7 = scmp.ne.s32.totalorder %s3192_s13, %s2613_s21  ;;  %p2618_p0 = scmp.lt.s32.totalorder %s3192_s13, %s3314_s18 }
 0xcb0   : > { %p2619_p12 = scmp.lt.s32.totalorder %s2617_s20, %s2613_s21 }
 0xcb1   : > { %p2615_p9 = pnand %p2614_p7, %p2885_p3 }
 0xcb2   : > { %p2620_p1 = por %p2619_p12, %p2618_p0 }
 0xcb3   : > { %p2616_p10 = pneg %p2615_p9 }
 0xcb5   : > { %p2621_p11 = pnand %p2620_p1, %p2616_p10 }
 0xcb7   : > { %2624 = shalt.err (!%p2621_p11)
}
 0xcb8   : > { %2391 = dma.vmem_to_hbm [thread:$0]  (%p2885_p3), %s2019_s2, 64, %s3192_s13, %s2003_s17  }
 0xcb9 PF: > { %s3316_s25 = sld [smem:[#allocation18_spill]] }
 0xcba   : > { %s3317_s0 = sld [smem:[#allocation14_spill]] }
 0xcbf   : > { %p2408_p13 = scmp.ge.s32.totalorder %s3316_s25, 2 }
 0xcc0   : > { %s2030_s30 = sand.u32 1, %s3317_s0  }
 0xcc1   : > { %p2401_p2 = pnand %p2408_p13, %p2894_p8  ;;  %s2031_s22 = scalar_lea.sflag [#allocation7], %s2030_s30 }
 0xcc3   : > { %p2402_p4 = pneg %p2401_p2 }
 0xcc5   : > { %2666 = dma.done.wait (%p2402_p4), %s2031_s22, 64  }
 0xcc6   : > { %2668 = vsyncadd (%p2402_p4), %s2031_s22, 4294967232  ;;  %s37_s5 = sadd.s32 1, %s3316_s25   ;;  %s3319_s24 = sld [smem:[#allocation15_spill]] }
 0xcc7   : > { %p34_p5 = scmp.ge.s32.totalorder %s37_s5, 6   ;;  %s3320_s28 = sld [smem:[#allocation22_spill]] }
 0xcc8   : > { %s3321_s29 = sld [smem:[#allocation16_spill]]  ;;  %s3325_s27 = smov %s2675_s3 }
 0xcc9   : > { %s3322_s0 = sld [smem:[#allocation17_spill]]  ;;  %36 = sbr.rel (!%p34_p5) target bundleno = 26 (0x1a), region = 156 }
 0xcca   : > { %s3323_s4 = sld [smem:[#allocation19_spill]] }
 0xccb   : > { %s3324_s30 = sld [smem:[#allocation20_spill]] }
 0xccc   : > { %s3326_s3 = smov %s3319_s24 }
 0xcce   :  { %2036 = vsyncpa [#allocation6], 1 }
 0xccf   :  { %2038 = vsyncpa [#allocation6 + $0x1], 1 }
 0xcd0   :  { %2039 = vsyncpa [#allocation9], 1 }
 0xcd1   :  { %2040 = vsyncpa [#allocation7], 1 }
 0xcd2   :  { %2042 = vsyncpa [#allocation7 + $0x1], 1 }

</bundles_post_ra>
